<compile_context>
chip_gen: v6e
topology: v6e:2x2x1
jax: 0.10.0
libtpu: 0.0.40
codegen_flags: <defaults>
</compile_context>

<pallas_src>
import jax
import jax.numpy as jnp
from jax.experimental import pallas as pl
from jax.experimental.pallas import tpu as pltpu

LANE = 128   # vreg lane width / MXU N tile: every layer's Cout is zero-padded to this
TAPS = 9     # 3x3 kernel taps


def _round_up(x, m):
    return (x + m - 1) // m * m


def make_smaller_conv_net(input_channels: int, H: int, W: int):
    """Build (pack_params, forward) specialized to (Cin, H, W)."""
    Cin = input_channels
    CINP = _round_up(Cin, 8)                   # padded conv1 input-channel (lane) width
    ph, pw = (H - 4) // 2, (W - 4) // 2        # pooled spatial size
    oh, ow = ph - 2, pw - 2                    # conv3 output spatial size
    assert oh >= 1 and ow >= 1, "input spatial size too small for SmallerConvNet"

    # Flat-layout row counts (row stride is always W; tails are junk, never read back).
    M4 = oh * W                                # conv3 output rows
    M3 = _round_up(M4 + 2 * W + 2, 8)          # pooled rows        (conv3 reads <= M4-1+2W+2)
    LV = 2 * M3 - 1                            # sliding-2x2-max rows (pool picks v[2*i])
    M2 = _round_up(LV + W + 1, 8)              # conv2 output rows  (sliding max reads <= LV-1+W+1)
    M1 = _round_up(M2 + 2 * W + 2, 8)          # conv1 output rows  (conv2 reads <= M2-1+2W+2)
    XF = _round_up(M1 + 2 * W + 2, 8)          # zero-padded flat input rows
    offs = tuple(dy * W + dx for dy in range(3) for dx in range(3))

    # Stride-2 row-selection matrix for the pool: pooled[i] = v[2*i]  (0/1, exact under bf16 dot).
    idx = jnp.arange(M3)
    sel = jnp.zeros((M3, LV), jnp.float32).at[idx, 2 * idx].set(1.0).astype(jnp.bfloat16)

    def pack_params(params):
        """(3,3,cin,cout) conv weights -> (9, K_pad, 128) bf16 tap weights + (1,128) f32 biases."""
        packed = {"sel": sel}
        for name, cin, kpad, cout in (("conv1", Cin, CINP, 16),
                                      ("conv2", 16, LANE, 32),
                                      ("conv3", 32, LANE, 64)):
            w = params[name + "_w"].reshape(TAPS, cin, cout)
            packed[name + "_w"] = jnp.pad(
                w, ((0, 0), (0, kpad - cin), (0, LANE - cout))).astype(jnp.bfloat16)
            packed[name + "_b"] = jnp.pad(
                params[name + "_b"], (0, LANE - cout)).reshape(1, LANE).astype(jnp.float32)
        return packed

    bf = jnp.bfloat16

    def kernel(x_ref, w1_ref, b1_ref, w2_ref, b2_ref, w3_ref, b3_ref, sel_ref, o_ref,
               y1_ref, y2_ref, p_ref):
        def conv3x3(load, w_ref, rows):
            # 3x3 valid conv on the flat layout: 9 shifted (rows, K) x (K, 128) MXU matmuls,
            # f32 accumulation.  All slice starts/sizes are static.
            acc = jnp.dot(load(offs[0], rows), w_ref[0], preferred_element_type=jnp.float32)
            for t in range(1, TAPS):
                acc = acc + jnp.dot(load(offs[t], rows), w_ref[t],
                                    preferred_element_type=jnp.float32)
            return acc

        # conv1 + ReLU  (input: zero-padded flat image, CINP lanes)
        a1 = conv3x3(lambda s, r: x_ref[0, s:s + r, :].astype(bf), w1_ref, M1)
        y1_ref[...] = jnp.maximum(a1 + b1_ref[...], 0.0)

        # conv2 + ReLU  (lanes >= 16 of y1 are exactly zero; K rows >= 16 of w2 are zero)
        a2 = conv3x3(lambda s, r: y1_ref[s:s + r, :].astype(bf), w2_ref, M2)
        y2_ref[...] = jnp.maximum(a2 + b2_ref[...], 0.0)

        # MaxPool 2x2 / stride 2: sliding 2x2 max, then pooled[i] = v[2*i] via a 0/1 MXU matmul.
        v = jnp.maximum(jnp.maximum(y2_ref[0:LV, :], y2_ref[1:LV + 1, :]),
                        jnp.maximum(y2_ref[W:W + LV, :], y2_ref[W + 1:W + 1 + LV, :]))
        p_ref[...] = jnp.dot(sel_ref[...], v.astype(bf), preferred_element_type=jnp.float32)

        # conv3 + ReLU  (lane-dense (M4, 128) f32 output store)
        a3 = conv3x3(lambda s, r: p_ref[s:s + r, :].astype(bf), w3_ref, M4)
        o_ref[0] = jnp.maximum(a3 + b3_ref[...], 0.0)

    def forward(packed, x_nchw):
        B, c, h, w = x_nchw.shape
        assert (c, h, w) == (Cin, H, W), "forward built for a different input shape"
        x = x_nchw.astype(jnp.float32)
        # TODO(synk): standardize_tensor is defined outside the provided source; implemented as
        # whole-tensor zero-mean / unit-std standardization (same as the pure-JAX reference).
        x = (x - jnp.mean(x)) / (jnp.std(x) + 1e-8)
        # NCHW -> flat (H*W, C) row-major layout, zero-padded to (XF, CINP).
        x = jnp.transpose(x, (0, 2, 3, 1)).reshape(B, H * W, Cin)
        x = jnp.pad(x, ((0, 0), (0, XF - H * W), (0, CINP - Cin)))

        out = pl.pallas_call(
            kernel,
            out_shape=jax.ShapeDtypeStruct((B, M4, LANE), jnp.float32),
            grid_spec=pltpu.PrefetchScalarGridSpec(
                num_scalar_prefetch=0,
                grid=(B,),
                in_specs=[
                    pl.BlockSpec((1, XF, CINP), lambda i: (i, 0, 0)),       # one image
                    pl.BlockSpec((TAPS, CINP, LANE), lambda i: (0, 0, 0)),  # conv1 taps (resident)
                    pl.BlockSpec((1, LANE), lambda i: (0, 0)),              # conv1 bias
                    pl.BlockSpec((TAPS, LANE, LANE), lambda i: (0, 0, 0)),  # conv2 taps
                    pl.BlockSpec((1, LANE), lambda i: (0, 0)),              # conv2 bias
                    pl.BlockSpec((TAPS, LANE, LANE), lambda i: (0, 0, 0)),  # conv3 taps
                    pl.BlockSpec((1, LANE), lambda i: (0, 0)),              # conv3 bias
                    pl.BlockSpec((M3, LV), lambda i: (0, 0)),               # pool selection matrix
                ],
                out_specs=pl.BlockSpec((1, M4, LANE), lambda i: (i, 0, 0)),
                scratch_shapes=[
                    pltpu.VMEM((M1, LANE), jnp.float32),   # conv1 activations
                    pltpu.VMEM((M2, LANE), jnp.float32),   # conv2 activations
                    pltpu.VMEM((M3, LANE), jnp.float32),   # pooled activations
                ],
            ),
            compiler_params=pltpu.CompilerParams(dimension_semantics=("parallel",)),
        )(x, packed["conv1_w"], packed["conv1_b"], packed["conv2_w"], packed["conv2_b"],
          packed["conv3_w"], packed["conv3_b"], packed["sel"])

        # Valid output rows are r*W + c for r < oh, c < ow; channels 0..63.  Return NCHW.
        out = out.reshape(B, oh, W, LANE)[:, :, :ow, :64]
        return jnp.transpose(out, (0, 3, 1, 2))

    return pack_params, forward


def init_params(key, input_channels):
    """PyTorch-equivalent conv parameters in (kh, kw, cin, cout) layout (deterministic init)."""
    shapes = {
        "conv1_w": (3, 3, input_channels, 16), "conv1_b": (16,),
        "conv2_w": (3, 3, 16, 32),             "conv2_b": (32,),
        "conv3_w": (3, 3, 32, 64),             "conv3_b": (64,),
    }
    keys = jax.random.split(key, len(shapes))
    return {name: 0.05 * jax.random.normal(k, shp, dtype=jnp.float32)
            for (name, shp), k in zip(shapes.items(), keys)}


def reference_forward(params, x_nchw):
    """Pure-JAX f32 reference of SmallerConvNet.forward (eval mode) for correctness checking."""
    x = x_nchw.astype(jnp.float32)
    x = (x - jnp.mean(x)) / (jnp.std(x) + 1e-8)
    x = jnp.transpose(x, (0, 2, 3, 1))                                   # NHWC

    def conv_relu(x, w, b):
        y = jax.lax.conv_general_dilated(x, w, (1, 1), "VALID",
                                         dimension_numbers=("NHWC", "HWIO", "NHWC"))
        return jnp.maximum(y + b, 0.0)

    x = conv_relu(x, params["conv1_w"], params["conv1_b"])
    x = conv_relu(x, params["conv2_w"], params["conv2_b"])
    B, Hh, Ww, C = x.shape
    x = x[:, :Hh // 2 * 2, :Ww // 2 * 2, :]
    x = x.reshape(B, Hh // 2, 2, Ww // 2, 2, C).max(axis=(2, 4))         # maxpool 2x2 / 2
    x = conv_relu(x, params["conv3_w"], params["conv3_b"])
    return jnp.transpose(x, (0, 3, 1, 2))                                # NCHW


if __name__ == "__main__":
    key = jax.random.PRNGKey(0)
    kx, kp = jax.random.split(key)

    B, Cin, H, W = 2, 4, 16, 16
    x_img = jax.random.normal(kx, (B, Cin, H, W), dtype=jnp.float32)
    params = init_params(kp, Cin)

    pack_params, forward = make_smaller_conv_net(Cin, H, W)
    packed = pack_params(params)

    fwd = jax.jit(forward)
    out = fwd(packed, x_img)
    jax.block_until_ready(out)

    # 16x16 input -> 14 -> 12 -> pool 6 -> 4 ; 64 output channels, NCHW like the PyTorch module.
    assert out.shape == (B, 64, 4, 4), out.shape
    assert bool(jnp.all(out >= 0.0))            # ReLU output
    assert bool(jnp.all(jnp.isfinite(out)))

    # Correctness vs. a pure-JAX f32 reference (bf16 MXU operands => small tolerance).
    ref = reference_forward(params, x_img)
    err = float(jnp.max(jnp.abs(out - ref)))
    assert err < 5e-2, f"max |pallas - reference| = {err}"

    print("KERNEL_OK")
</pallas_src>

<mosaic_0001>
module attributes {stable_mosaic.version = 11 : i64} {
  func.func @kernel(%arg0: i32, %arg1: memref<1x304x8xf32, #tpu.memory_space<vmem>>, %arg2: memref<9x8x128xbf16, #tpu.memory_space<vmem>>, %arg3: memref<1x128xf32, #tpu.memory_space<vmem>>, %arg4: memref<9x128x128xbf16, #tpu.memory_space<vmem>>, %arg5: memref<1x128xf32, #tpu.memory_space<vmem>>, %arg6: memref<9x128x128xbf16, #tpu.memory_space<vmem>>, %arg7: memref<1x128xf32, #tpu.memory_space<vmem>>, %arg8: memref<104x207xbf16, #tpu.memory_space<vmem>>, %arg9: memref<1x64x128xf32, #tpu.memory_space<vmem>>, %arg10: memref<264x128xf32, #tpu.memory_space<vmem>>, %arg11: memref<224x128xf32, #tpu.memory_space<vmem>>, %arg12: memref<104x128xf32, #tpu.memory_space<vmem>>) attributes {dimension_semantics = [#tpu.dimension_semantics<parallel>], iteration_bounds = array<i64: 2>, scalar_prefetch = 0 : i64, scratch_operands = 3 : i64, tpu.core_type = #tpu.core_type<tc>, window_params = [{transform_indices = @transform_0, window_bounds = array<i64: 1, 304, 8>}, {pipeline_mode = #tpu.pipeline_mode<synchronous>, transform_indices = @transform_1, window_bounds = array<i64: 9, 8, 128>}, {pipeline_mode = #tpu.pipeline_mode<synchronous>, transform_indices = @transform_2, window_bounds = array<i64: 1, 128>}, {pipeline_mode = #tpu.pipeline_mode<synchronous>, transform_indices = @transform_3, window_bounds = array<i64: 9, 128, 128>}, {pipeline_mode = #tpu.pipeline_mode<synchronous>, transform_indices = @transform_4, window_bounds = array<i64: 1, 128>}, {pipeline_mode = #tpu.pipeline_mode<synchronous>, transform_indices = @transform_5, window_bounds = array<i64: 9, 128, 128>}, {pipeline_mode = #tpu.pipeline_mode<synchronous>, transform_indices = @transform_6, window_bounds = array<i64: 1, 128>}, {pipeline_mode = #tpu.pipeline_mode<synchronous>, transform_indices = @transform_7, window_bounds = array<i64: 104, 207>}, {transform_indices = @transform_8, window_bounds = array<i64: 1, 64, 128>}]} {
    %c0 = arith.constant 0 : index
    %c0_0 = arith.constant 0 : index
    %c0_1 = arith.constant 0 : index
    %0 = vector.load %arg1[%c0, %c0_0, %c0_1] : memref<1x304x8xf32, #tpu.memory_space<vmem>>, vector<1x264x8xf32>
    %1 = vector.shape_cast %0 : vector<1x264x8xf32> to vector<264x8xf32>
    %2 = arith.truncf %1 : vector<264x8xf32> to vector<264x8xbf16>
    %c0_2 = arith.constant 0 : index
    %c0_3 = arith.constant 0 : index
    %c0_4 = arith.constant 0 : index
    %3 = vector.load %arg2[%c0_2, %c0_3, %c0_4] : memref<9x8x128xbf16, #tpu.memory_space<vmem>>, vector<1x8x128xbf16>
    %4 = vector.shape_cast %3 : vector<1x8x128xbf16> to vector<8x128xbf16>
    %cst = arith.constant dense<0.000000e+00> : vector<264x128xf32>
    %5 = tpu.matmul %2, %4, %cst {dimension_numbers = #tpu.dot_dimension_numbers<[1], [0], [0], [1], [0, 0, 1, 1], [], []>} : vector<264x8xbf16>, vector<8x128xbf16>, vector<264x128xf32> -> vector<264x128xf32>
    %c0_5 = arith.constant 0 : index
    %c1 = arith.constant 1 : index
    %c0_6 = arith.constant 0 : index
    %6 = vector.load %arg1[%c0_5, %c1, %c0_6] : memref<1x304x8xf32, #tpu.memory_space<vmem>>, vector<1x264x8xf32>
    %7 = vector.shape_cast %6 : vector<1x264x8xf32> to vector<264x8xf32>
    %8 = arith.truncf %7 : vector<264x8xf32> to vector<264x8xbf16>
    %c1_7 = arith.constant 1 : index
    %c0_8 = arith.constant 0 : index
    %c0_9 = arith.constant 0 : index
    %9 = vector.load %arg2[%c1_7, %c0_8, %c0_9] : memref<9x8x128xbf16, #tpu.memory_space<vmem>>, vector<1x8x128xbf16>
    %10 = vector.shape_cast %9 : vector<1x8x128xbf16> to vector<8x128xbf16>
    %cst_10 = arith.constant dense<0.000000e+00> : vector<264x128xf32>
    %11 = tpu.matmul %8, %10, %cst_10 {dimension_numbers = #tpu.dot_dimension_numbers<[1], [0], [0], [1], [0, 0, 1, 1], [], []>} : vector<264x8xbf16>, vector<8x128xbf16>, vector<264x128xf32> -> vector<264x128xf32>
    %12 = arith.addf %5, %11 : vector<264x128xf32>
    %c0_11 = arith.constant 0 : index
    %c2 = arith.constant 2 : index
    %c0_12 = arith.constant 0 : index
    %13 = vector.load %arg1[%c0_11, %c2, %c0_12] : memref<1x304x8xf32, #tpu.memory_space<vmem>>, vector<1x264x8xf32>
    %14 = vector.shape_cast %13 : vector<1x264x8xf32> to vector<264x8xf32>
    %15 = arith.truncf %14 : vector<264x8xf32> to vector<264x8xbf16>
    %c2_13 = arith.constant 2 : index
    %c0_14 = arith.constant 0 : index
    %c0_15 = arith.constant 0 : index
    %16 = vector.load %arg2[%c2_13, %c0_14, %c0_15] : memref<9x8x128xbf16, #tpu.memory_space<vmem>>, vector<1x8x128xbf16>
    %17 = vector.shape_cast %16 : vector<1x8x128xbf16> to vector<8x128xbf16>
    %cst_16 = arith.constant dense<0.000000e+00> : vector<264x128xf32>
    %18 = tpu.matmul %15, %17, %cst_16 {dimension_numbers = #tpu.dot_dimension_numbers<[1], [0], [0], [1], [0, 0, 1, 1], [], []>} : vector<264x8xbf16>, vector<8x128xbf16>, vector<264x128xf32> -> vector<264x128xf32>
    %19 = arith.addf %12, %18 : vector<264x128xf32>
    %c0_17 = arith.constant 0 : index
    %c16 = arith.constant 16 : index
    %c0_18 = arith.constant 0 : index
    %20 = vector.load %arg1[%c0_17, %c16, %c0_18] : memref<1x304x8xf32, #tpu.memory_space<vmem>>, vector<1x264x8xf32>
    %21 = vector.shape_cast %20 : vector<1x264x8xf32> to vector<264x8xf32>
    %22 = arith.truncf %21 : vector<264x8xf32> to vector<264x8xbf16>
    %c3 = arith.constant 3 : index
    %c0_19 = arith.constant 0 : index
    %c0_20 = arith.constant 0 : index
    %23 = vector.load %arg2[%c3, %c0_19, %c0_20] : memref<9x8x128xbf16, #tpu.memory_space<vmem>>, vector<1x8x128xbf16>
    %24 = vector.shape_cast %23 : vector<1x8x128xbf16> to vector<8x128xbf16>
    %cst_21 = arith.constant dense<0.000000e+00> : vector<264x128xf32>
    %25 = tpu.matmul %22, %24, %cst_21 {dimension_numbers = #tpu.dot_dimension_numbers<[1], [0], [0], [1], [0, 0, 1, 1], [], []>} : vector<264x8xbf16>, vector<8x128xbf16>, vector<264x128xf32> -> vector<264x128xf32>
    %26 = arith.addf %19, %25 : vector<264x128xf32>
    %c0_22 = arith.constant 0 : index
    %c17 = arith.constant 17 : index
    %c0_23 = arith.constant 0 : index
    %27 = vector.load %arg1[%c0_22, %c17, %c0_23] : memref<1x304x8xf32, #tpu.memory_space<vmem>>, vector<1x264x8xf32>
    %28 = vector.shape_cast %27 : vector<1x264x8xf32> to vector<264x8xf32>
    %29 = arith.truncf %28 : vector<264x8xf32> to vector<264x8xbf16>
    %c4 = arith.constant 4 : index
    %c0_24 = arith.constant 0 : index
    %c0_25 = arith.constant 0 : index
    %30 = vector.load %arg2[%c4, %c0_24, %c0_25] : memref<9x8x128xbf16, #tpu.memory_space<vmem>>, vector<1x8x128xbf16>
    %31 = vector.shape_cast %30 : vector<1x8x128xbf16> to vector<8x128xbf16>
    %cst_26 = arith.constant dense<0.000000e+00> : vector<264x128xf32>
    %32 = tpu.matmul %29, %31, %cst_26 {dimension_numbers = #tpu.dot_dimension_numbers<[1], [0], [0], [1], [0, 0, 1, 1], [], []>} : vector<264x8xbf16>, vector<8x128xbf16>, vector<264x128xf32> -> vector<264x128xf32>
    %33 = arith.addf %26, %32 : vector<264x128xf32>
    %c0_27 = arith.constant 0 : index
    %c18 = arith.constant 18 : index
    %c0_28 = arith.constant 0 : index
    %34 = vector.load %arg1[%c0_27, %c18, %c0_28] : memref<1x304x8xf32, #tpu.memory_space<vmem>>, vector<1x264x8xf32>
    %35 = vector.shape_cast %34 : vector<1x264x8xf32> to vector<264x8xf32>
    %36 = arith.truncf %35 : vector<264x8xf32> to vector<264x8xbf16>
    %c5 = arith.constant 5 : index
    %c0_29 = arith.constant 0 : index
    %c0_30 = arith.constant 0 : index
    %37 = vector.load %arg2[%c5, %c0_29, %c0_30] : memref<9x8x128xbf16, #tpu.memory_space<vmem>>, vector<1x8x128xbf16>
    %38 = vector.shape_cast %37 : vector<1x8x128xbf16> to vector<8x128xbf16>
    %cst_31 = arith.constant dense<0.000000e+00> : vector<264x128xf32>
    %39 = tpu.matmul %36, %38, %cst_31 {dimension_numbers = #tpu.dot_dimension_numbers<[1], [0], [0], [1], [0, 0, 1, 1], [], []>} : vector<264x8xbf16>, vector<8x128xbf16>, vector<264x128xf32> -> vector<264x128xf32>
    %40 = arith.addf %33, %39 : vector<264x128xf32>
    %c0_32 = arith.constant 0 : index
    %c32 = arith.constant 32 : index
    %c0_33 = arith.constant 0 : index
    %41 = vector.load %arg1[%c0_32, %c32, %c0_33] : memref<1x304x8xf32, #tpu.memory_space<vmem>>, vector<1x264x8xf32>
    %42 = vector.shape_cast %41 : vector<1x264x8xf32> to vector<264x8xf32>
    %43 = arith.truncf %42 : vector<264x8xf32> to vector<264x8xbf16>
    %c6 = arith.constant 6 : index
    %c0_34 = arith.constant 0 : index
    %c0_35 = arith.constant 0 : index
    %44 = vector.load %arg2[%c6, %c0_34, %c0_35] : memref<9x8x128xbf16, #tpu.memory_space<vmem>>, vector<1x8x128xbf16>
    %45 = vector.shape_cast %44 : vector<1x8x128xbf16> to vector<8x128xbf16>
    %cst_36 = arith.constant dense<0.000000e+00> : vector<264x128xf32>
    %46 = tpu.matmul %43, %45, %cst_36 {dimension_numbers = #tpu.dot_dimension_numbers<[1], [0], [0], [1], [0, 0, 1, 1], [], []>} : vector<264x8xbf16>, vector<8x128xbf16>, vector<264x128xf32> -> vector<264x128xf32>
    %47 = arith.addf %40, %46 : vector<264x128xf32>
    %c0_37 = arith.constant 0 : index
    %c33 = arith.constant 33 : index
    %c0_38 = arith.constant 0 : index
    %48 = vector.load %arg1[%c0_37, %c33, %c0_38] : memref<1x304x8xf32, #tpu.memory_space<vmem>>, vector<1x264x8xf32>
    %49 = vector.shape_cast %48 : vector<1x264x8xf32> to vector<264x8xf32>
    %50 = arith.truncf %49 : vector<264x8xf32> to vector<264x8xbf16>
    %c7 = arith.constant 7 : index
    %c0_39 = arith.constant 0 : index
    %c0_40 = arith.constant 0 : index
    %51 = vector.load %arg2[%c7, %c0_39, %c0_40] : memref<9x8x128xbf16, #tpu.memory_space<vmem>>, vector<1x8x128xbf16>
    %52 = vector.shape_cast %51 : vector<1x8x128xbf16> to vector<8x128xbf16>
    %cst_41 = arith.constant dense<0.000000e+00> : vector<264x128xf32>
    %53 = tpu.matmul %50, %52, %cst_41 {dimension_numbers = #tpu.dot_dimension_numbers<[1], [0], [0], [1], [0, 0, 1, 1], [], []>} : vector<264x8xbf16>, vector<8x128xbf16>, vector<264x128xf32> -> vector<264x128xf32>
    %54 = arith.addf %47, %53 : vector<264x128xf32>
    %c0_42 = arith.constant 0 : index
    %c34 = arith.constant 34 : index
    %c0_43 = arith.constant 0 : index
    %55 = vector.load %arg1[%c0_42, %c34, %c0_43] : memref<1x304x8xf32, #tpu.memory_space<vmem>>, vector<1x264x8xf32>
    %56 = vector.shape_cast %55 : vector<1x264x8xf32> to vector<264x8xf32>
    %57 = arith.truncf %56 : vector<264x8xf32> to vector<264x8xbf16>
    %c8 = arith.constant 8 : index
    %c0_44 = arith.constant 0 : index
    %c0_45 = arith.constant 0 : index
    %58 = vector.load %arg2[%c8, %c0_44, %c0_45] : memref<9x8x128xbf16, #tpu.memory_space<vmem>>, vector<1x8x128xbf16>
    %59 = vector.shape_cast %58 : vector<1x8x128xbf16> to vector<8x128xbf16>
    %cst_46 = arith.constant dense<0.000000e+00> : vector<264x128xf32>
    %60 = tpu.matmul %57, %59, %cst_46 {dimension_numbers = #tpu.dot_dimension_numbers<[1], [0], [0], [1], [0, 0, 1, 1], [], []>} : vector<264x8xbf16>, vector<8x128xbf16>, vector<264x128xf32> -> vector<264x128xf32>
    %61 = arith.addf %54, %60 : vector<264x128xf32>
    %c0_47 = arith.constant 0 : index
    %c0_48 = arith.constant 0 : index
    %62 = vector.load %arg3[%c0_47, %c0_48] : memref<1x128xf32, #tpu.memory_space<vmem>>, vector<1x128xf32>
    %63 = vector.broadcast %62 : vector<1x128xf32> to vector<264x128xf32>
    %64 = arith.addf %61, %63 : vector<264x128xf32>
    %cst_49 = arith.constant 0.000000e+00 : f32
    %65 = vector.broadcast %cst_49 : f32 to vector<264x128xf32>
    %66 = arith.maximumf %64, %65 : vector<264x128xf32>
    %c0_50 = arith.constant 0 : index
    %c0_51 = arith.constant 0 : index
    %67 = vector.load %arg10[%c0_50, %c0_51] : memref<264x128xf32, #tpu.memory_space<vmem>>, vector<264x128xf32>
    tpu.vector_store %arg10[%c0_50, %c0_51], %66 {strides = array<i32>} : memref<264x128xf32, #tpu.memory_space<vmem>>, vector<264x128xf32>,
    %c0_52 = arith.constant 0 : index
    %c0_53 = arith.constant 0 : index
    %68 = vector.load %arg10[%c0_52, %c0_53] : memref<264x128xf32, #tpu.memory_space<vmem>>, vector<224x128xf32>
    %69 = arith.truncf %68 : vector<224x128xf32> to vector<224x128xbf16>
    %c0_54 = arith.constant 0 : index
    %c0_55 = arith.constant 0 : index
    %c0_56 = arith.constant 0 : index
    %70 = vector.load %arg4[%c0_54, %c0_55, %c0_56] : memref<9x128x128xbf16, #tpu.memory_space<vmem>>, vector<1x128x128xbf16>
    %71 = vector.shape_cast %70 : vector<1x128x128xbf16> to vector<128x128xbf16>
    %cst_57 = arith.constant dense<0.000000e+00> : vector<224x128xf32>
    %72 = tpu.matmul %69, %71, %cst_57 {dimension_numbers = #tpu.dot_dimension_numbers<[1], [0], [0], [1], [0, 0, 1, 1], [], []>} : vector<224x128xbf16>, vector<128x128xbf16>, vector<224x128xf32> -> vector<224x128xf32>
    %c1_58 = arith.constant 1 : index
    %c0_59 = arith.constant 0 : index
    %73 = vector.load %arg10[%c1_58, %c0_59] : memref<264x128xf32, #tpu.memory_space<vmem>>, vector<224x128xf32>
    %74 = arith.truncf %73 : vector<224x128xf32> to vector<224x128xbf16>
    %c1_60 = arith.constant 1 : index
    %c0_61 = arith.constant 0 : index
    %c0_62 = arith.constant 0 : index
    %75 = vector.load %arg4[%c1_60, %c0_61, %c0_62] : memref<9x128x128xbf16, #tpu.memory_space<vmem>>, vector<1x128x128xbf16>
    %76 = vector.shape_cast %75 : vector<1x128x128xbf16> to vector<128x128xbf16>
    %cst_63 = arith.constant dense<0.000000e+00> : vector<224x128xf32>
    %77 = tpu.matmul %74, %76, %cst_63 {dimension_numbers = #tpu.dot_dimension_numbers<[1], [0], [0], [1], [0, 0, 1, 1], [], []>} : vector<224x128xbf16>, vector<128x128xbf16>, vector<224x128xf32> -> vector<224x128xf32>
    %78 = arith.addf %72, %77 : vector<224x128xf32>
    %c2_64 = arith.constant 2 : index
    %c0_65 = arith.constant 0 : index
    %79 = vector.load %arg10[%c2_64, %c0_65] : memref<264x128xf32, #tpu.memory_space<vmem>>, vector<224x128xf32>
    %80 = arith.truncf %79 : vector<224x128xf32> to vector<224x128xbf16>
    %c2_66 = arith.constant 2 : index
    %c0_67 = arith.constant 0 : index
    %c0_68 = arith.constant 0 : index
    %81 = vector.load %arg4[%c2_66, %c0_67, %c0_68] : memref<9x128x128xbf16, #tpu.memory_space<vmem>>, vector<1x128x128xbf16>
    %82 = vector.shape_cast %81 : vector<1x128x128xbf16> to vector<128x128xbf16>
    %cst_69 = arith.constant dense<0.000000e+00> : vector<224x128xf32>
    %83 = tpu.matmul %80, %82, %cst_69 {dimension_numbers = #tpu.dot_dimension_numbers<[1], [0], [0], [1], [0, 0, 1, 1], [], []>} : vector<224x128xbf16>, vector<128x128xbf16>, vector<224x128xf32> -> vector<224x128xf32>
    %84 = arith.addf %78, %83 : vector<224x128xf32>
    %c16_70 = arith.constant 16 : index
    %c0_71 = arith.constant 0 : index
    %85 = vector.load %arg10[%c16_70, %c0_71] : memref<264x128xf32, #tpu.memory_space<vmem>>, vector<224x128xf32>
    %86 = arith.truncf %85 : vector<224x128xf32> to vector<224x128xbf16>
    %c3_72 = arith.constant 3 : index
    %c0_73 = arith.constant 0 : index
    %c0_74 = arith.constant 0 : index
    %87 = vector.load %arg4[%c3_72, %c0_73, %c0_74] : memref<9x128x128xbf16, #tpu.memory_space<vmem>>, vector<1x128x128xbf16>
    %88 = vector.shape_cast %87 : vector<1x128x128xbf16> to vector<128x128xbf16>
    %cst_75 = arith.constant dense<0.000000e+00> : vector<224x128xf32>
    %89 = tpu.matmul %86, %88, %cst_75 {dimension_numbers = #tpu.dot_dimension_numbers<[1], [0], [0], [1], [0, 0, 1, 1], [], []>} : vector<224x128xbf16>, vector<128x128xbf16>, vector<224x128xf32> -> vector<224x128xf32>
    %90 = arith.addf %84, %89 : vector<224x128xf32>
    %c17_76 = arith.constant 17 : index
    %c0_77 = arith.constant 0 : index
    %91 = vector.load %arg10[%c17_76, %c0_77] : memref<264x128xf32, #tpu.memory_space<vmem>>, vector<224x128xf32>
    %92 = arith.truncf %91 : vector<224x128xf32> to vector<224x128xbf16>
    %c4_78 = arith.constant 4 : index
    %c0_79 = arith.constant 0 : index
    %c0_80 = arith.constant 0 : index
    %93 = vector.load %arg4[%c4_78, %c0_79, %c0_80] : memref<9x128x128xbf16, #tpu.memory_space<vmem>>, vector<1x128x128xbf16>
    %94 = vector.shape_cast %93 : vector<1x128x128xbf16> to vector<128x128xbf16>
    %cst_81 = arith.constant dense<0.000000e+00> : vector<224x128xf32>
    %95 = tpu.matmul %92, %94, %cst_81 {dimension_numbers = #tpu.dot_dimension_numbers<[1], [0], [0], [1], [0, 0, 1, 1], [], []>} : vector<224x128xbf16>, vector<128x128xbf16>, vector<224x128xf32> -> vector<224x128xf32>
    %96 = arith.addf %90, %95 : vector<224x128xf32>
    %c18_82 = arith.constant 18 : index
    %c0_83 = arith.constant 0 : index
    %97 = vector.load %arg10[%c18_82, %c0_83] : memref<264x128xf32, #tpu.memory_space<vmem>>, vector<224x128xf32>
    %98 = arith.truncf %97 : vector<224x128xf32> to vector<224x128xbf16>
    %c5_84 = arith.constant 5 : index
    %c0_85 = arith.constant 0 : index
    %c0_86 = arith.constant 0 : index
    %99 = vector.load %arg4[%c5_84, %c0_85, %c0_86] : memref<9x128x128xbf16, #tpu.memory_space<vmem>>, vector<1x128x128xbf16>
    %100 = vector.shape_cast %99 : vector<1x128x128xbf16> to vector<128x128xbf16>
    %cst_87 = arith.constant dense<0.000000e+00> : vector<224x128xf32>
    %101 = tpu.matmul %98, %100, %cst_87 {dimension_numbers = #tpu.dot_dimension_numbers<[1], [0], [0], [1], [0, 0, 1, 1], [], []>} : vector<224x128xbf16>, vector<128x128xbf16>, vector<224x128xf32> -> vector<224x128xf32>
    %102 = arith.addf %96, %101 : vector<224x128xf32>
    %c32_88 = arith.constant 32 : index
    %c0_89 = arith.constant 0 : index
    %103 = vector.load %arg10[%c32_88, %c0_89] : memref<264x128xf32, #tpu.memory_space<vmem>>, vector<224x128xf32>
    %104 = arith.truncf %103 : vector<224x128xf32> to vector<224x128xbf16>
    %c6_90 = arith.constant 6 : index
    %c0_91 = arith.constant 0 : index
    %c0_92 = arith.constant 0 : index
    %105 = vector.load %arg4[%c6_90, %c0_91, %c0_92] : memref<9x128x128xbf16, #tpu.memory_space<vmem>>, vector<1x128x128xbf16>
    %106 = vector.shape_cast %105 : vector<1x128x128xbf16> to vector<128x128xbf16>
    %cst_93 = arith.constant dense<0.000000e+00> : vector<224x128xf32>
    %107 = tpu.matmul %104, %106, %cst_93 {dimension_numbers = #tpu.dot_dimension_numbers<[1], [0], [0], [1], [0, 0, 1, 1], [], []>} : vector<224x128xbf16>, vector<128x128xbf16>, vector<224x128xf32> -> vector<224x128xf32>
    %108 = arith.addf %102, %107 : vector<224x128xf32>
    %c33_94 = arith.constant 33 : index
    %c0_95 = arith.constant 0 : index
    %109 = vector.load %arg10[%c33_94, %c0_95] : memref<264x128xf32, #tpu.memory_space<vmem>>, vector<224x128xf32>
    %110 = arith.truncf %109 : vector<224x128xf32> to vector<224x128xbf16>
    %c7_96 = arith.constant 7 : index
    %c0_97 = arith.constant 0 : index
    %c0_98 = arith.constant 0 : index
    %111 = vector.load %arg4[%c7_96, %c0_97, %c0_98] : memref<9x128x128xbf16, #tpu.memory_space<vmem>>, vector<1x128x128xbf16>
    %112 = vector.shape_cast %111 : vector<1x128x128xbf16> to vector<128x128xbf16>
    %cst_99 = arith.constant dense<0.000000e+00> : vector<224x128xf32>
    %113 = tpu.matmul %110, %112, %cst_99 {dimension_numbers = #tpu.dot_dimension_numbers<[1], [0], [0], [1], [0, 0, 1, 1], [], []>} : vector<224x128xbf16>, vector<128x128xbf16>, vector<224x128xf32> -> vector<224x128xf32>
    %114 = arith.addf %108, %113 : vector<224x128xf32>
    %c34_100 = arith.constant 34 : index
    %c0_101 = arith.constant 0 : index
    %115 = vector.load %arg10[%c34_100, %c0_101] : memref<264x128xf32, #tpu.memory_space<vmem>>, vector<224x128xf32>
    %116 = arith.truncf %115 : vector<224x128xf32> to vector<224x128xbf16>
    %c8_102 = arith.constant 8 : index
    %c0_103 = arith.constant 0 : index
    %c0_104 = arith.constant 0 : index
    %117 = vector.load %arg4[%c8_102, %c0_103, %c0_104] : memref<9x128x128xbf16, #tpu.memory_space<vmem>>, vector<1x128x128xbf16>
    %118 = vector.shape_cast %117 : vector<1x128x128xbf16> to vector<128x128xbf16>
    %cst_105 = arith.constant dense<0.000000e+00> : vector<224x128xf32>
    %119 = tpu.matmul %116, %118, %cst_105 {dimension_numbers = #tpu.dot_dimension_numbers<[1], [0], [0], [1], [0, 0, 1, 1], [], []>} : vector<224x128xbf16>, vector<128x128xbf16>, vector<224x128xf32> -> vector<224x128xf32>
    %120 = arith.addf %114, %119 : vector<224x128xf32>
    %c0_106 = arith.constant 0 : index
    %c0_107 = arith.constant 0 : index
    %121 = vector.load %arg5[%c0_106, %c0_107] : memref<1x128xf32, #tpu.memory_space<vmem>>, vector<1x128xf32>
    %122 = vector.broadcast %121 : vector<1x128xf32> to vector<224x128xf32>
    %123 = arith.addf %120, %122 : vector<224x128xf32>
    %cst_108 = arith.constant 0.000000e+00 : f32
    %124 = vector.broadcast %cst_108 : f32 to vector<224x128xf32>
    %125 = arith.maximumf %123, %124 : vector<224x128xf32>
    %c0_109 = arith.constant 0 : index
    %c0_110 = arith.constant 0 : index
    %126 = vector.load %arg11[%c0_109, %c0_110] : memref<224x128xf32, #tpu.memory_space<vmem>>, vector<224x128xf32>
    tpu.vector_store %arg11[%c0_109, %c0_110], %125 {strides = array<i32>} : memref<224x128xf32, #tpu.memory_space<vmem>>, vector<224x128xf32>,
    %c0_111 = arith.constant 0 : index
    %c0_112 = arith.constant 0 : index
    %127 = vector.load %arg11[%c0_111, %c0_112] : memref<224x128xf32, #tpu.memory_space<vmem>>, vector<207x128xf32>
    %c1_113 = arith.constant 1 : index
    %c0_114 = arith.constant 0 : index
    %128 = vector.load %arg11[%c1_113, %c0_114] : memref<224x128xf32, #tpu.memory_space<vmem>>, vector<207x128xf32>
    %129 = arith.maximumf %127, %128 : vector<207x128xf32>
    %c16_115 = arith.constant 16 : index
    %c0_116 = arith.constant 0 : index
    %130 = vector.load %arg11[%c16_115, %c0_116] : memref<224x128xf32, #tpu.memory_space<vmem>>, vector<207x128xf32>
    %c17_117 = arith.constant 17 : index
    %c0_118 = arith.constant 0 : index
    %131 = vector.load %arg11[%c17_117, %c0_118] : memref<224x128xf32, #tpu.memory_space<vmem>>, vector<207x128xf32>
    %132 = arith.maximumf %130, %131 : vector<207x128xf32>
    %133 = arith.maximumf %129, %132 : vector<207x128xf32>
    %c0_119 = arith.constant 0 : index
    %c0_120 = arith.constant 0 : index
    %134 = vector.load %arg8[%c0_119, %c0_120] : memref<104x207xbf16, #tpu.memory_space<vmem>>, vector<104x207xbf16>
    %135 = arith.truncf %133 : vector<207x128xf32> to vector<207x128xbf16>
    %cst_121 = arith.constant dense<0.000000e+00> : vector<104x128xf32>
    %136 = tpu.matmul %134, %135, %cst_121 {dimension_numbers = #tpu.dot_dimension_numbers<[1], [0], [0], [1], [0, 0, 1, 1], [], []>} : vector<104x207xbf16>, vector<207x128xbf16>, vector<104x128xf32> -> vector<104x128xf32>
    %c0_122 = arith.constant 0 : index
    %c0_123 = arith.constant 0 : index
    %137 = vector.load %arg12[%c0_122, %c0_123] : memref<104x128xf32, #tpu.memory_space<vmem>>, vector<104x128xf32>
    tpu.vector_store %arg12[%c0_122, %c0_123], %136 {strides = array<i32>} : memref<104x128xf32, #tpu.memory_space<vmem>>, vector<104x128xf32>,
    %c0_124 = arith.constant 0 : index
    %c0_125 = arith.constant 0 : index
    %138 = vector.load %arg12[%c0_124, %c0_125] : memref<104x128xf32, #tpu.memory_space<vmem>>, vector<64x128xf32>
    %139 = arith.truncf %138 : vector<64x128xf32> to vector<64x128xbf16>
    %c0_126 = arith.constant 0 : index
    %c0_127 = arith.constant 0 : index
    %c0_128 = arith.constant 0 : index
    %140 = vector.load %arg6[%c0_126, %c0_127, %c0_128] : memref<9x128x128xbf16, #tpu.memory_space<vmem>>, vector<1x128x128xbf16>
    %141 = vector.shape_cast %140 : vector<1x128x128xbf16> to vector<128x128xbf16>
    %cst_129 = arith.constant dense<0.000000e+00> : vector<64x128xf32>
    %142 = tpu.matmul %139, %141, %cst_129 {dimension_numbers = #tpu.dot_dimension_numbers<[1], [0], [0], [1], [0, 0, 1, 1], [], []>} : vector<64x128xbf16>, vector<128x128xbf16>, vector<64x128xf32> -> vector<64x128xf32>
    %c1_130 = arith.constant 1 : index
    %c0_131 = arith.constant 0 : index
    %143 = vector.load %arg12[%c1_130, %c0_131] : memref<104x128xf32, #tpu.memory_space<vmem>>, vector<64x128xf32>
    %144 = arith.truncf %143 : vector<64x128xf32> to vector<64x128xbf16>
    %c1_132 = arith.constant 1 : index
    %c0_133 = arith.constant 0 : index
    %c0_134 = arith.constant 0 : index
    %145 = vector.load %arg6[%c1_132, %c0_133, %c0_134] : memref<9x128x128xbf16, #tpu.memory_space<vmem>>, vector<1x128x128xbf16>
    %146 = vector.shape_cast %145 : vector<1x128x128xbf16> to vector<128x128xbf16>
    %cst_135 = arith.constant dense<0.000000e+00> : vector<64x128xf32>
    %147 = tpu.matmul %144, %146, %cst_135 {dimension_numbers = #tpu.dot_dimension_numbers<[1], [0], [0], [1], [0, 0, 1, 1], [], []>} : vector<64x128xbf16>, vector<128x128xbf16>, vector<64x128xf32> -> vector<64x128xf32>
    %148 = arith.addf %142, %147 : vector<64x128xf32>
    %c2_136 = arith.constant 2 : index
    %c0_137 = arith.constant 0 : index
    %149 = vector.load %arg12[%c2_136, %c0_137] : memref<104x128xf32, #tpu.memory_space<vmem>>, vector<64x128xf32>
    %150 = arith.truncf %149 : vector<64x128xf32> to vector<64x128xbf16>
    %c2_138 = arith.constant 2 : index
    %c0_139 = arith.constant 0 : index
    %c0_140 = arith.constant 0 : index
    %151 = vector.load %arg6[%c2_138, %c0_139, %c0_140] : memref<9x128x128xbf16, #tpu.memory_space<vmem>>, vector<1x128x128xbf16>
    %152 = vector.shape_cast %151 : vector<1x128x128xbf16> to vector<128x128xbf16>
    %cst_141 = arith.constant dense<0.000000e+00> : vector<64x128xf32>
    %153 = tpu.matmul %150, %152, %cst_141 {dimension_numbers = #tpu.dot_dimension_numbers<[1], [0], [0], [1], [0, 0, 1, 1], [], []>} : vector<64x128xbf16>, vector<128x128xbf16>, vector<64x128xf32> -> vector<64x128xf32>
    %154 = arith.addf %148, %153 : vector<64x128xf32>
    %c16_142 = arith.constant 16 : index
    %c0_143 = arith.constant 0 : index
    %155 = vector.load %arg12[%c16_142, %c0_143] : memref<104x128xf32, #tpu.memory_space<vmem>>, vector<64x128xf32>
    %156 = arith.truncf %155 : vector<64x128xf32> to vector<64x128xbf16>
    %c3_144 = arith.constant 3 : index
    %c0_145 = arith.constant 0 : index
    %c0_146 = arith.constant 0 : index
    %157 = vector.load %arg6[%c3_144, %c0_145, %c0_146] : memref<9x128x128xbf16, #tpu.memory_space<vmem>>, vector<1x128x128xbf16>
    %158 = vector.shape_cast %157 : vector<1x128x128xbf16> to vector<128x128xbf16>
    %cst_147 = arith.constant dense<0.000000e+00> : vector<64x128xf32>
    %159 = tpu.matmul %156, %158, %cst_147 {dimension_numbers = #tpu.dot_dimension_numbers<[1], [0], [0], [1], [0, 0, 1, 1], [], []>} : vector<64x128xbf16>, vector<128x128xbf16>, vector<64x128xf32> -> vector<64x128xf32>
    %160 = arith.addf %154, %159 : vector<64x128xf32>
    %c17_148 = arith.constant 17 : index
    %c0_149 = arith.constant 0 : index
    %161 = vector.load %arg12[%c17_148, %c0_149] : memref<104x128xf32, #tpu.memory_space<vmem>>, vector<64x128xf32>
    %162 = arith.truncf %161 : vector<64x128xf32> to vector<64x128xbf16>
    %c4_150 = arith.constant 4 : index
    %c0_151 = arith.constant 0 : index
    %c0_152 = arith.constant 0 : index
    %163 = vector.load %arg6[%c4_150, %c0_151, %c0_152] : memref<9x128x128xbf16, #tpu.memory_space<vmem>>, vector<1x128x128xbf16>
    %164 = vector.shape_cast %163 : vector<1x128x128xbf16> to vector<128x128xbf16>
    %cst_153 = arith.constant dense<0.000000e+00> : vector<64x128xf32>
    %165 = tpu.matmul %162, %164, %cst_153 {dimension_numbers = #tpu.dot_dimension_numbers<[1], [0], [0], [1], [0, 0, 1, 1], [], []>} : vector<64x128xbf16>, vector<128x128xbf16>, vector<64x128xf32> -> vector<64x128xf32>
    %166 = arith.addf %160, %165 : vector<64x128xf32>
    %c18_154 = arith.constant 18 : index
    %c0_155 = arith.constant 0 : index
    %167 = vector.load %arg12[%c18_154, %c0_155] : memref<104x128xf32, #tpu.memory_space<vmem>>, vector<64x128xf32>
    %168 = arith.truncf %167 : vector<64x128xf32> to vector<64x128xbf16>
    %c5_156 = arith.constant 5 : index
    %c0_157 = arith.constant 0 : index
    %c0_158 = arith.constant 0 : index
    %169 = vector.load %arg6[%c5_156, %c0_157, %c0_158] : memref<9x128x128xbf16, #tpu.memory_space<vmem>>, vector<1x128x128xbf16>
    %170 = vector.shape_cast %169 : vector<1x128x128xbf16> to vector<128x128xbf16>
    %cst_159 = arith.constant dense<0.000000e+00> : vector<64x128xf32>
    %171 = tpu.matmul %168, %170, %cst_159 {dimension_numbers = #tpu.dot_dimension_numbers<[1], [0], [0], [1], [0, 0, 1, 1], [], []>} : vector<64x128xbf16>, vector<128x128xbf16>, vector<64x128xf32> -> vector<64x128xf32>
    %172 = arith.addf %166, %171 : vector<64x128xf32>
    %c32_160 = arith.constant 32 : index
    %c0_161 = arith.constant 0 : index
    %173 = vector.load %arg12[%c32_160, %c0_161] : memref<104x128xf32, #tpu.memory_space<vmem>>, vector<64x128xf32>
    %174 = arith.truncf %173 : vector<64x128xf32> to vector<64x128xbf16>
    %c6_162 = arith.constant 6 : index
    %c0_163 = arith.constant 0 : index
    %c0_164 = arith.constant 0 : index
    %175 = vector.load %arg6[%c6_162, %c0_163, %c0_164] : memref<9x128x128xbf16, #tpu.memory_space<vmem>>, vector<1x128x128xbf16>
    %176 = vector.shape_cast %175 : vector<1x128x128xbf16> to vector<128x128xbf16>
    %cst_165 = arith.constant dense<0.000000e+00> : vector<64x128xf32>
    %177 = tpu.matmul %174, %176, %cst_165 {dimension_numbers = #tpu.dot_dimension_numbers<[1], [0], [0], [1], [0, 0, 1, 1], [], []>} : vector<64x128xbf16>, vector<128x128xbf16>, vector<64x128xf32> -> vector<64x128xf32>
    %178 = arith.addf %172, %177 : vector<64x128xf32>
    %c33_166 = arith.constant 33 : index
    %c0_167 = arith.constant 0 : index
    %179 = vector.load %arg12[%c33_166, %c0_167] : memref<104x128xf32, #tpu.memory_space<vmem>>, vector<64x128xf32>
    %180 = arith.truncf %179 : vector<64x128xf32> to vector<64x128xbf16>
    %c7_168 = arith.constant 7 : index
    %c0_169 = arith.constant 0 : index
    %c0_170 = arith.constant 0 : index
    %181 = vector.load %arg6[%c7_168, %c0_169, %c0_170] : memref<9x128x128xbf16, #tpu.memory_space<vmem>>, vector<1x128x128xbf16>
    %182 = vector.shape_cast %181 : vector<1x128x128xbf16> to vector<128x128xbf16>
    %cst_171 = arith.constant dense<0.000000e+00> : vector<64x128xf32>
    %183 = tpu.matmul %180, %182, %cst_171 {dimension_numbers = #tpu.dot_dimension_numbers<[1], [0], [0], [1], [0, 0, 1, 1], [], []>} : vector<64x128xbf16>, vector<128x128xbf16>, vector<64x128xf32> -> vector<64x128xf32>
    %184 = arith.addf %178, %183 : vector<64x128xf32>
    %c34_172 = arith.constant 34 : index
    %c0_173 = arith.constant 0 : index
    %185 = vector.load %arg12[%c34_172, %c0_173] : memref<104x128xf32, #tpu.memory_space<vmem>>, vector<64x128xf32>
    %186 = arith.truncf %185 : vector<64x128xf32> to vector<64x128xbf16>
    %c8_174 = arith.constant 8 : index
    %c0_175 = arith.constant 0 : index
    %c0_176 = arith.constant 0 : index
    %187 = vector.load %arg6[%c8_174, %c0_175, %c0_176] : memref<9x128x128xbf16, #tpu.memory_space<vmem>>, vector<1x128x128xbf16>
    %188 = vector.shape_cast %187 : vector<1x128x128xbf16> to vector<128x128xbf16>
    %cst_177 = arith.constant dense<0.000000e+00> : vector<64x128xf32>
    %189 = tpu.matmul %186, %188, %cst_177 {dimension_numbers = #tpu.dot_dimension_numbers<[1], [0], [0], [1], [0, 0, 1, 1], [], []>} : vector<64x128xbf16>, vector<128x128xbf16>, vector<64x128xf32> -> vector<64x128xf32>
    %190 = arith.addf %184, %189 : vector<64x128xf32>
    %c0_178 = arith.constant 0 : index
    %c0_179 = arith.constant 0 : index
    %191 = vector.load %arg7[%c0_178, %c0_179] : memref<1x128xf32, #tpu.memory_space<vmem>>, vector<1x128xf32>
    %192 = vector.broadcast %191 : vector<1x128xf32> to vector<64x128xf32>
    %193 = arith.addf %190, %192 : vector<64x128xf32>
    %cst_180 = arith.constant 0.000000e+00 : f32
    %194 = vector.broadcast %cst_180 : f32 to vector<64x128xf32>
    %195 = arith.maximumf %193, %194 : vector<64x128xf32>
    %c0_181 = arith.constant 0 : index
    %c0_182 = arith.constant 0 : index
    %c0_183 = arith.constant 0 : index
    %196 = vector.load %arg9[%c0_181, %c0_182, %c0_183] : memref<1x64x128xf32, #tpu.memory_space<vmem>>, vector<1x64x128xf32>
    %197 = vector.shape_cast %196 : vector<1x64x128xf32> to vector<64x128xf32>
    %198 = vector.shape_cast %195 : vector<64x128xf32> to vector<1x64x128xf32>
    tpu.vector_store %arg9[%c0_181, %c0_182, %c0_183], %198 {strides = array<i32>} : memref<1x64x128xf32, #tpu.memory_space<vmem>>, vector<1x64x128xf32>,
    return
  }
  func.func @transform_0(%arg0: i32) -> (i32, i32, i32) {
    %c0_i32 = arith.constant 0 : i32
    %c0_i32_0 = arith.constant 0 : i32
    %c0_i32_1 = arith.constant 0 : i32
    return %arg0, %c0_i32, %c0_i32_0 : i32, i32, i32
  }
  func.func @transform_1(%arg0: i32) -> (i32, i32, i32) {
    %c0_i32 = arith.constant 0 : i32
    %c0_i32_0 = arith.constant 0 : i32
    %c0_i32_1 = arith.constant 0 : i32
    %c0_i32_2 = arith.constant 0 : i32
    return %c0_i32, %c0_i32_0, %c0_i32_1 : i32, i32, i32
  }
  func.func @transform_2(%arg0: i32) -> (i32, i32) {
    %c0_i32 = arith.constant 0 : i32
    %c0_i32_0 = arith.constant 0 : i32
    %c0_i32_1 = arith.constant 0 : i32
    return %c0_i32, %c0_i32_0 : i32, i32
  }
  func.func @transform_3(%arg0: i32) -> (i32, i32, i32) {
    %c0_i32 = arith.constant 0 : i32
    %c0_i32_0 = arith.constant 0 : i32
    %c0_i32_1 = arith.constant 0 : i32
    %c0_i32_2 = arith.constant 0 : i32
    return %c0_i32, %c0_i32_0, %c0_i32_1 : i32, i32, i32
  }
  func.func @transform_4(%arg0: i32) -> (i32, i32) {
    %c0_i32 = arith.constant 0 : i32
    %c0_i32_0 = arith.constant 0 : i32
    %c0_i32_1 = arith.constant 0 : i32
    return %c0_i32, %c0_i32_0 : i32, i32
  }
  func.func @transform_5(%arg0: i32) -> (i32, i32, i32) {
    %c0_i32 = arith.constant 0 : i32
    %c0_i32_0 = arith.constant 0 : i32
    %c0_i32_1 = arith.constant 0 : i32
    %c0_i32_2 = arith.constant 0 : i32
    return %c0_i32, %c0_i32_0, %c0_i32_1 : i32, i32, i32
  }
  func.func @transform_6(%arg0: i32) -> (i32, i32) {
    %c0_i32 = arith.constant 0 : i32
    %c0_i32_0 = arith.constant 0 : i32
    %c0_i32_1 = arith.constant 0 : i32
    return %c0_i32, %c0_i32_0 : i32, i32
  }
  func.func @transform_7(%arg0: i32) -> (i32, i32) {
    %c0_i32 = arith.constant 0 : i32
    %c0_i32_0 = arith.constant 0 : i32
    %c0_i32_1 = arith.constant 0 : i32
    return %c0_i32, %c0_i32_0 : i32, i32
  }
  func.func @transform_8(%arg0: i32) -> (i32, i32, i32) {
    %c0_i32 = arith.constant 0 : i32
    %c0_i32_0 = arith.constant 0 : i32
    %c0_i32_1 = arith.constant 0 : i32
    return %arg0, %c0_i32, %c0_i32_0 : i32, i32, i32
  }
}

</mosaic_0001>

<bundles_post_ra>
// kernel: forward.1
= control target key start
LH: loop header
LB: loop body
LE: loop exit
PB: predicated region body
PF: predicated region fallthrough
CT: control target
= control target key end

     0   :  { %s9999_s27 = smov 0   ;;  %s12983_s0 = inlined_call_operand.vmem [shape: f32[2,304,8], index: 0, kind: input, shape index: {}]   ;;  %s12984_s1 = inlined_call_operand.vmem [shape: bf16[9,8,128], index: 1, kind: input, shape index: {}]   ;;  %s12985_s2 = inlined_call_operand.vmem [shape: f32[1,128], index: 2, kind: input, shape index: {}]   ;;  %s12986_s3 = inlined_call_operand.vmem [shape: bf16[9,128,128], index: 3, kind: input, shape index: {}]   ;;  %s12987_s4 = inlined_call_operand.vmem [shape: f32[1,128], index: 4, kind: input, shape index: {}]   ;;  %s12988_s5 = inlined_call_operand.vmem [shape: bf16[9,128,128], index: 5, kind: input, shape index: {}]   ;;  %s12989_s6 = inlined_call_operand.vmem [shape: f32[1,128], index: 6, kind: input, shape index: {}]   ;;  %s12990_s7 = inlined_call_operand.vmem [shape: bf16[104,207], index: 7, kind: input, shape index: {}]   ;;  %s12991_s8 = inlined_call_operand.vmem [shape: f32[2,64,128], index: 8, kind: output, shape index: {}]  }
   0x1 LB: > { %s7459_s28 = sadd.s32 4294967295, %s9948_s27   ;;  %p7463_p0 = scmp.ge.s32.totalorder %s9948_s27, 1  ;;  %s9948_s27 = sphi %s9999_s27, %s18_s27  }
   0x2   : > { %p262_p1 = scmp.lt.s32.totalorder %s9948_s27, 3 }
   0x4   : > { %p263_p2 = pnand %p7463_p0, %p262_p1 }
   0x6   : > { %266 = sbr.rel (%p263_p2) target bundleno = 1982 (0x7be), region = 52 }
   0xb   : > { %v7467_v0 = vld [vmem:[%s12984_s1 + $0x4] sm:$0xf]  ;;  %vm462_vm0 = vcmask 1043456   ;;  %v357_v1 = vld [vmem:[%s12984_s1] sm:$0xf]  ;;  %v9950_v2 = vmov 0.0  }
   0xc   : > { %8523 = vmatprep.subr.bf16.mxu0 %v9950_v2  ;;  %8593 = vmatprep.subr.bf16.mxu1 %v9950_v2  ;;  %v464_v3 = vsel %vm462_vm0, %v7467_v0, 0  ;;  %v686_v4 = vsel %vm462_vm0, %v357_v1, 0  ;;  %p296_p3 = scmp.lt.s32.totalorder %s7459_s28, 1  ;;  %vm9951_vm1 = vmmov 0   ;;  %v7502_v5 = vld [vmem:[%s12984_s1 + $0x8] sm:$0xf] }
   0xd   : > { %8524 = vmatpush3.bf16.msra.mxu0 %v464_v3  ;;  %8594 = vmatpush3.bf16.msra.mxu1 %v686_v4  ;;  %vm410_vm2 = vcmask 64512   ;;  %v960_v11 = vsel %vm462_vm0, %v7502_v5, 0  ;;  %v7520_v29 = vld [vmem:[%s12984_s1 + $0xc] sm:$0xf]  ;;  %vm5910_vm3 = vcmask 646144   ;;  %vm5932_vm4 = vcmask 1046528  }
   0xe   : > { %8525 = vmatprep.mubr.msk.bf16.mxu0 %vm9951_vm1, %v9950_v2  ;;  %8595 = vmatprep.mubr.msk.bf16.mxu1 %vm9951_vm1, %v9950_v2  ;;  %s13152_s28 = smov (!%p296_p3, %s7459_s28), 1  ;;  %v1267_v31 = vsel %vm462_vm0, %v7520_v29, 0  ;;  %vm5933_vm5 = vcmask 1047552  }
   0xf   : > { %8663 = vmatprep.subr.bf16.mxu0 %v9950_v2  ;;  %8733 = vmatprep.subr.bf16.mxu1 %v9950_v2  ;;  %s9765_s13 = smul.u32 304, %s13152_s28  ;;  %s8054_s10 = sshll.u32 %s13152_s28, 6 }
  0x11   : > { %s10032_s16 = scalar_lea.vmem %s12983_s0, %s9765_s13  ;;  %s12969_s13 = scalar_lea.vmem %s12991_s8, %s8054_s10 }
  0x12   : > { %v358_v6 = vld [vmem:[%s10032_s16 + $0x1] sm:$0xff]  ;;  %v359_v7 = vld [vmem:[%s10032_s16 + $0x9] sm:$0xff]  ;;  %v360_v13 = vld [vmem:[%s10032_s16 + $0x11] sm:$0xff] }
  0x13   : > { %v307_v8 = vld [vmem:[%s10032_s16] sm:$0xff]  ;;  %v391_v9 = vpack.c.bf16 %v359_v7, %v358_v6  ;;  %v308_v10 = vld [vmem:[%s10032_s16 + $0x8] sm:$0xff]  ;;  %v309_v15 = vld [vmem:[%s10032_s16 + $0x10] sm:$0xff] }
  0x14   : > { %v340_v12 = vpack.c.bf16 %v308_v10, %v307_v8  ;;  %v361_v14 = vld [vmem:[%s10032_s16 + $0x19] sm:$0xff]  ;;  %v362_v19 = vld [vmem:[%s10032_s16 + $0x21] sm:$0xff]  ;;  %v363_v20 = vld [vmem:[%s10032_s16 + $0x29] sm:$0xff] }
  0x15   : > { %8526 = vmatmul.mubr.msk.bf16.vlgmr.msra.gmra.mxu0 %vm410_vm2, %v391_v9  ;;  %v310_v16 = vld [vmem:[%s10032_s16 + $0x18] sm:$0xff]  ;;  %v10050_v17 = vpack.c.bf16 %v361_v14, %v360_v13  ;;  %v311_v21 = vld [vmem:[%s10032_s16 + $0x20] sm:$0xff]  ;;  %v312_v22 = vld [vmem:[%s10032_s16 + $0x28] sm:$0xff]  ;;  %v10066_v23 = vpack.c.bf16 %v363_v20, %v362_v19 }
  0x16   : > { %8596 = vmatmul.mubr.msk.bf16.vlgmr.msra.gmra.mxu1 %vm410_vm2, %v340_v12  ;;  %8664 = vmatpush3.bf16.msra.mxu0 %v960_v11  ;;  %v10052_v18 = vpack.c.bf16 %v310_v16, %v309_v15  ;;  %v10068_v24 = vpack.c.bf16 %v312_v22, %v311_v21  ;;  %v364_v25 = vld [vmem:[%s10032_s16 + $0x31] sm:$0xff]  ;;  %v365_v26 = vld [vmem:[%s10032_s16 + $0x39] sm:$0xff]  ;;  %v366_v33 = vld [vmem:[%s10032_s16 + $0x41] sm:$0xff] }
  0x17   : > { %8529 = vmatprep.mubr.msk.bf16.mxu0 %vm9951_vm1, %v9950_v2  ;;  %8599 = vmatprep.mubr.msk.bf16.mxu1 %vm9951_vm1, %v9950_v2  ;;  %v313_v27 = vld [vmem:[%s10032_s16 + $0x30] sm:$0xff]  ;;  %v314_v28 = vld [vmem:[%s10032_s16 + $0x38] sm:$0xff]  ;;  %v10085_v30 = vpack.c.bf16 %v365_v26, %v364_v25  ;;  %v315_v35 = vld [vmem:[%s10032_s16 + $0x40] sm:$0xff] }
  0x18   : > { %8803 = vmatprep.subr.bf16.mxu0 %v9950_v2  ;;  %v10088_v32 = vpack.c.bf16 %v314_v28, %v313_v27  ;;  %8734 = vmatpush3.bf16.msra.mxu1 %v1267_v31  ;;  %v367_v34 = vld [vmem:[%s10032_s16 + $0x49] sm:$0xff]  ;;  %v368_v39 = vld [vmem:[%s10032_s16 + $0x51] sm:$0xff]  ;;  %v369_v40 = vld [vmem:[%s10032_s16 + $0x59] sm:$0xff] }
  0x19   : > { %8873 = vmatprep.subr.bf16.mxu1 %v9950_v2  ;;  %v316_v36 = vld [vmem:[%s10032_s16 + $0x48] sm:$0xff]  ;;  %v10103_v37 = vpack.c.bf16 %v367_v34, %v366_v33  ;;  %v317_v41 = vld [vmem:[%s10032_s16 + $0x50] sm:$0xff]  ;;  %v318_v42 = vld [vmem:[%s10032_s16 + $0x58] sm:$0xff]  ;;  %v10119_v43 = vpack.c.bf16 %v369_v40, %v368_v39 }
  0x1a   : > { %v10105_v38 = vpack.c.bf16 %v316_v36, %v315_v35  ;;  %v10121_v44 = vpack.c.bf16 %v318_v42, %v317_v41  ;;  %v370_v45 = vld [vmem:[%s10032_s16 + $0x61] sm:$0xff]  ;;  %v371_v46 = vld [vmem:[%s10032_s16 + $0x69] sm:$0xff]  ;;  %v372_v51 = vld [vmem:[%s10032_s16 + $0x71] sm:$0xff] }
  0x1b   : > { %v319_v47 = vld [vmem:[%s10032_s16 + $0x60] sm:$0xff]  ;;  %v320_v48 = vld [vmem:[%s10032_s16 + $0x68] sm:$0xff]  ;;  %v10135_v49 = vpack.c.bf16 %v371_v46, %v370_v45  ;;  %v321_v53 = vld [vmem:[%s10032_s16 + $0x70] sm:$0xff] }
  0x1c   : > { %v10137_v50 = vpack.c.bf16 %v320_v48, %v319_v47  ;;  %v373_v52 = vld [vmem:[%s10032_s16 + $0x79] sm:$0xff]  ;;  %v374_v57 = vld [vmem:[%s10032_s16 + $0x81] sm:$0xff]  ;;  %v375_v58 = vld [vmem:[%s10032_s16 + $0x89] sm:$0xff] }
  0x1d   : > { %8530 = vmatmul.mubr.msk.bf16.gmra.mxu0 %vm410_vm2, %v10050_v17  ;;  %v322_v54 = vld [vmem:[%s10032_s16 + $0x78] sm:$0xff]  ;;  %v10151_v55 = vpack.c.bf16 %v373_v52, %v372_v51  ;;  %v323_v59 = vld [vmem:[%s10032_s16 + $0x80] sm:$0xff]  ;;  %v324_v60 = vld [vmem:[%s10032_s16 + $0x88] sm:$0xff]  ;;  %v10167_v61 = vpack.c.bf16 %v375_v58, %v374_v57 }
  0x1e   : > { %8600 = vmatmul.mubr.msk.bf16.gmra.mxu1 %vm410_vm2, %v10052_v18  ;;  %8533 = vmatprep.mubr.msk.bf16.mxu0 %vm9951_vm1, %v9950_v2  ;;  %v10153_v56 = vpack.c.bf16 %v322_v54, %v321_v53  ;;  %v10169_v62 = vpack.c.bf16 %v324_v60, %v323_v59  ;;  %v376_v63 = vld [vmem:[%s10032_s16 + $0x91] sm:$0xff]  ;;  %v377_v0 = vld [vmem:[%s10032_s16 + $0x99] sm:$0xff]  ;;  %v378_v6 = vld [vmem:[%s10032_s16 + $0xa1] sm:$0xff] }
  0x1f   : > { %8603 = vmatprep.mubr.msk.bf16.mxu1 %vm9951_vm1, %v9950_v2  ;;  %v325_v1 = vld [vmem:[%s10032_s16 + $0x90] sm:$0xff]  ;;  %v326_v3 = vld [vmem:[%s10032_s16 + $0x98] sm:$0xff]  ;;  %v400_v4 = vpack.c.bf16 %v377_v0, %v376_v63  ;;  %v327_v8 = vld [vmem:[%s10032_s16 + $0xa0] sm:$0xff] }
  0x20   : > { %v10183_v5 = vpack.c.bf16 %v326_v3, %v325_v1  ;;  %v379_v7 = vld [vmem:[%s10032_s16 + $0xa9] sm:$0xff]  ;;  %v380_v12 = vld [vmem:[%s10032_s16 + $0xb1] sm:$0xff]  ;;  %v381_v13 = vld [vmem:[%s10032_s16 + $0xb9] sm:$0xff] }
  0x21   : > { %v328_v9 = vld [vmem:[%s10032_s16 + $0xa8] sm:$0xff]  ;;  %v401_v10 = vpack.c.bf16 %v379_v7, %v378_v6  ;;  %v329_v14 = vld [vmem:[%s10032_s16 + $0xb0] sm:$0xff]  ;;  %v330_v15 = vld [vmem:[%s10032_s16 + $0xb8] sm:$0xff]  ;;  %v402_v16 = vpack.c.bf16 %v381_v13, %v380_v12 }
  0x22   : > { %v10196_v11 = vpack.c.bf16 %v328_v9, %v327_v8  ;;  %v10209_v19 = vpack.c.bf16 %v330_v15, %v329_v14  ;;  %v382_v20 = vld [vmem:[%s10032_s16 + $0xc1] sm:$0xff]  ;;  %v383_v21 = vld [vmem:[%s10032_s16 + $0xc9] sm:$0xff]  ;;  %v384_v28 = vld [vmem:[%s10032_s16 + $0xd1] sm:$0xff] }
  0x23   : > { %v331_v22 = vld [vmem:[%s10032_s16 + $0xc0] sm:$0xff]  ;;  %v332_v25 = vld [vmem:[%s10032_s16 + $0xc8] sm:$0xff]  ;;  %v403_v26 = vpack.c.bf16 %v383_v21, %v382_v20  ;;  %v333_v31 = vld [vmem:[%s10032_s16 + $0xd0] sm:$0xff] }
  0x24   : > { %v10222_v27 = vpack.c.bf16 %v332_v25, %v331_v22  ;;  %v385_v29 = vld [vmem:[%s10032_s16 + $0xd9] sm:$0xff]  ;;  %v386_v36 = vld [vmem:[%s10032_s16 + $0xe1] sm:$0xff]  ;;  %v387_v39 = vld [vmem:[%s10032_s16 + $0xe9] sm:$0xff] }
  0x25   : > { %8534 = vmatmul.mubr.msk.bf16.gmra.mxu0 %vm410_vm2, %v10066_v23  ;;  %v334_v33 = vld [vmem:[%s10032_s16 + $0xd8] sm:$0xff]  ;;  %v404_v34 = vpack.c.bf16 %v385_v29, %v384_v28  ;;  %v335_v40 = vld [vmem:[%s10032_s16 + $0xe0] sm:$0xff]  ;;  %v336_v41 = vld [vmem:[%s10032_s16 + $0xe8] sm:$0xff]  ;;  %v405_v42 = vpack.c.bf16 %v387_v39, %v386_v36 }
  0x26   : > { %8604 = vmatmul.mubr.msk.bf16.gmra.mxu1 %vm410_vm2, %v10068_v24  ;;  %8537 = vmatprep.mubr.msk.bf16.mxu0 %vm9951_vm1, %v9950_v2  ;;  %v10235_v35 = vpack.c.bf16 %v334_v33, %v333_v31  ;;  %v10248_v45 = vpack.c.bf16 %v336_v41, %v335_v40  ;;  %v388_v46 = vld [vmem:[%s10032_s16 + $0xf1] sm:$0xff]  ;;  %v389_v47 = vld [vmem:[%s10032_s16 + $0xf9] sm:$0xff]  ;;  %v390_v54 = vld [vmem:[%s10032_s16 + $0x101] sm:$0xff] }
  0x27   : > { %8607 = vmatprep.mubr.msk.bf16.mxu1 %vm9951_vm1, %v9950_v2  ;;  %v337_v48 = vld [vmem:[%s10032_s16 + $0xf0] sm:$0xff]  ;;  %v338_v51 = vld [vmem:[%s10032_s16 + $0xf8] sm:$0xff]  ;;  %v406_v52 = vpack.c.bf16 %v389_v47, %v388_v46  ;;  %v10266_v57 = vld [vmem:[%s10032_s16 + $0x100] sm:$0xff]  ;;  %v407_v58 = vpack.c.bf16 %v390_v54, %v390_v54 }
  0x28   : > { %v10261_v53 = vpack.c.bf16 %v338_v51, %v337_v48  ;;  %v356_v59 = vpack.c.bf16 %v10266_v57, %v10266_v57  ;;  %v856_v60 = vld [vmem:[%s10032_s16 + $0x2] sm:$0xff]  ;;  %v857_v63 = vld [vmem:[%s10032_s16 + $0xa] sm:$0xff]  ;;  %v859_v6 = vld [vmem:[%s10032_s16 + $0x1a] sm:$0xff] }
  0x29   : > { %v7538_v0 = vld [vmem:[%s12984_s1 + $0x10] sm:$0xf]  ;;  %v889_v1 = vpack.c.bf16 %v857_v63, %v856_v60  ;;  %v7556_v8 = vld [vmem:[%s12984_s1 + $0x14] sm:$0xf]  ;;  %v860_v9 = vld [vmem:[%s10032_s16 + $0x22] sm:$0xff] }
  0x2a   : > { %v1574_v3 = vsel %vm462_vm0, %v7538_v0, 0  ;;  %v863_v13 = vld [vmem:[%s10032_s16 + $0x3a] sm:$0xff]  ;;  %v865_v15 = vld [vmem:[%s10032_s16 + $0x4a] sm:$0xff] }
  0x2b   : > { %v867_v20 = vld [vmem:[%s10032_s16 + $0x5a] sm:$0xff]  ;;  %v869_v22 = vld [vmem:[%s10032_s16 + $0x6a] sm:$0xff] }
  0x2c   : > { %v873_v33 = vld [vmem:[%s10032_s16 + $0x8a] sm:$0xff]  ;;  %v875_v54 = vld [vmem:[%s10032_s16 + $0x9a] sm:$0xff] }
  0x2d   : > { %8538 = vmatmul.mubr.msk.bf16.gmra.mxu0 %vm410_vm2, %v10085_v30 }
  0x2e   : > { %8608 = vmatmul.mubr.msk.bf16.gmra.mxu1 %vm410_vm2, %v10088_v32  ;;  %8541 = vmatprep.mubr.msk.bf16.mxu0 %vm9951_vm1, %v9950_v2 }
  0x2f   : > { %8611 = vmatprep.mubr.msk.bf16.mxu1 %vm9951_vm1, %v9950_v2 }
  0x35   : > { %8542 = vmatmul.mubr.msk.bf16.gmra.mxu0 %vm410_vm2, %v10103_v37 }
  0x36   : > { %8612 = vmatmul.mubr.msk.bf16.gmra.mxu1 %vm410_vm2, %v10105_v38  ;;  %8545 = vmatprep.mubr.msk.bf16.mxu0 %vm9951_vm1, %v9950_v2 }
  0x37   : > { %8615 = vmatprep.mubr.msk.bf16.mxu1 %vm9951_vm1, %v9950_v2 }
  0x3d   : > { %8546 = vmatmul.mubr.msk.bf16.gmra.mxu0 %vm410_vm2, %v10119_v43 }
  0x3e   : > { %8616 = vmatmul.mubr.msk.bf16.gmra.mxu1 %vm410_vm2, %v10121_v44  ;;  %8549 = vmatprep.mubr.msk.bf16.mxu0 %vm9951_vm1, %v9950_v2 }
  0x3f   : > { %8619 = vmatprep.mubr.msk.bf16.mxu1 %vm9951_vm1, %v9950_v2 }
  0x45   : > { %8550 = vmatmul.mubr.msk.bf16.gmra.mxu0 %vm410_vm2, %v10135_v49 }
  0x46   : > { %8620 = vmatmul.mubr.msk.bf16.gmra.mxu1 %vm410_vm2, %v10137_v50  ;;  %8553 = vmatprep.mubr.msk.bf16.mxu0 %vm9951_vm1, %v9950_v2 }
  0x47   : > { %8623 = vmatprep.mubr.msk.bf16.mxu1 %vm9951_vm1, %v9950_v2 }
  0x4d   : > { %8554 = vmatmul.mubr.msk.bf16.gmra.mxu0 %vm410_vm2, %v10151_v55 }
  0x4e   : > { %8624 = vmatmul.mubr.msk.bf16.gmra.mxu1 %vm410_vm2, %v10153_v56  ;;  %8557 = vmatprep.mubr.msk.bf16.mxu0 %vm9951_vm1, %v9950_v2 }
  0x4f   : > { %8627 = vmatprep.mubr.msk.bf16.mxu1 %vm9951_vm1, %v9950_v2 }
  0x55   : > { %8558 = vmatmul.mubr.msk.bf16.gmra.mxu0 %vm410_vm2, %v10167_v61 }
  0x56   : > { %8628 = vmatmul.mubr.msk.bf16.gmra.mxu1 %vm410_vm2, %v10169_v62  ;;  %8561 = vmatprep.mubr.msk.bf16.mxu0 %vm9951_vm1, %v9950_v2 }
  0x57   : > { %8631 = vmatprep.mubr.msk.bf16.mxu1 %vm9951_vm1, %v9950_v2 }
  0x5d   : > { %8562 = vmatmul.mubr.msk.bf16.gmra.mxu0 %vm410_vm2, %v400_v4  ;;  %v858_v4 = vld [vmem:[%s10032_s16 + $0x12] sm:$0xff] }
  0x5e   : > { %8632 = vmatmul.mubr.msk.bf16.gmra.mxu1 %vm410_vm2, %v10183_v5  ;;  %8565 = vmatprep.mubr.msk.bf16.mxu0 %vm9951_vm1, %v9950_v2  ;;  %v10298_v7 = vpack.c.bf16 %v859_v6, %v858_v4 }
  0x5f   : > { %8635 = vmatprep.mubr.msk.bf16.mxu1 %vm9951_vm1, %v9950_v2 }
  0x65   : > { %8566 = vmatmul.mubr.msk.bf16.gmra.mxu0 %vm410_vm2, %v401_v10  ;;  %v861_v10 = vld [vmem:[%s10032_s16 + $0x2a] sm:$0xff] }
  0x66   : > { %8636 = vmatmul.mubr.msk.bf16.gmra.mxu1 %vm410_vm2, %v10196_v11  ;;  %8569 = vmatprep.mubr.msk.bf16.mxu0 %vm9951_vm1, %v9950_v2  ;;  %v10315_v12 = vpack.c.bf16 %v861_v10, %v860_v9  ;;  %v877_v9 = vld [vmem:[%s10032_s16 + $0xaa] sm:$0xff] }
  0x67   : > { %8639 = vmatprep.mubr.msk.bf16.mxu1 %vm9951_vm1, %v9950_v2 }
  0x6d   : > { %8570 = vmatmul.mubr.msk.bf16.gmra.mxu0 %vm410_vm2, %v402_v16 }
  0x6e   : > { %8640 = vmatmul.mubr.msk.bf16.gmra.mxu1 %vm410_vm2, %v10209_v19  ;;  %8573 = vmatprep.mubr.msk.bf16.mxu0 %vm9951_vm1, %v9950_v2 }
  0x6f   : > { %8643 = vmatprep.mubr.msk.bf16.mxu1 %vm9951_vm1, %v9950_v2 }
  0x75   : > { %8574 = vmatmul.mubr.msk.bf16.gmra.mxu0 %vm410_vm2, %v403_v26  ;;  %v871_v26 = vld [vmem:[%s10032_s16 + $0x7a] sm:$0xff] }
  0x76   : > { %8644 = vmatmul.mubr.msk.bf16.gmra.mxu1 %vm410_vm2, %v10222_v27  ;;  %8577 = vmatprep.mubr.msk.bf16.mxu0 %vm9951_vm1, %v9950_v2 }
  0x77   : > { %8647 = vmatprep.mubr.msk.bf16.mxu1 %vm9951_vm1, %v9950_v2 }
  0x7d   : > { %8578 = vmatmul.mubr.msk.bf16.gmra.mxu0 %vm410_vm2, %v404_v34 }
  0x7e   : > { %8648 = vmatmul.mubr.msk.bf16.gmra.mxu1 %vm410_vm2, %v10235_v35  ;;  %8581 = vmatprep.mubr.msk.bf16.mxu0 %vm9951_vm1, %v9950_v2 }
  0x7f   : > { %8651 = vmatprep.mubr.msk.bf16.mxu1 %vm9951_vm1, %v9950_v2 }
  0x85   : > { %8582 = vmatmul.mubr.msk.bf16.gmra.mxu0 %vm410_vm2, %v405_v42 }
  0x86   : > { %8652 = vmatmul.mubr.msk.bf16.gmra.mxu1 %vm410_vm2, %v10248_v45  ;;  %8585 = vmatprep.mubr.msk.bf16.mxu0 %vm9951_vm1, %v9950_v2 }
  0x87   : > { %8655 = vmatprep.mubr.msk.bf16.mxu1 %vm9951_vm1, %v9950_v2 }
  0x8d   : > { %8586 = vmatmul.mubr.msk.bf16.gmra.mxu0 %vm410_vm2, %v406_v52  ;;  %v874_v52 = vld [vmem:[%s10032_s16 + $0x92] sm:$0xff] }
  0x8e   : > { %8656 = vmatmul.mubr.msk.bf16.gmra.mxu1 %vm410_vm2, %v10261_v53  ;;  %8589 = vmatprep.mubr.msk.bf16.mxu0 %vm9951_vm1, %v9950_v2  ;;  %v10405_v0 = vpack.c.bf16 %v875_v54, %v874_v52  ;;  %v881_v52 = vld [vmem:[%s10032_s16 + $0xca] sm:$0xff] }
  0x8f   : > { %8659 = vmatprep.mubr.msk.bf16.mxu1 %vm9951_vm1, %v9950_v2 }
  0x95   : > { %8590 = vmatmul.mubr.msk.bf16.gmra.mxu0 %vm410_vm2, %v407_v58 }
  0x96   : > { %8660 = vmatmul.mubr.msk.bf16.gmra.mxu1 %vm410_vm2, %v356_v59  ;;  %8665 = vmatprep.mubr.msk.bf16.mxu0 %vm9951_vm1, %v9950_v2 }
  0x97   : > { %8735 = vmatprep.mubr.msk.bf16.mxu1 %vm9951_vm1, %v9950_v2 }
  0x9d   : > { %8666 = vmatmul.mubr.msk.bf16.vlgmr.msra.gmra.mxu0 %vm410_vm2, %v889_v1 }
  0x9e   : > { %8736 = vmatmul.mubr.msk.bf16.vlgmr.msra.gmra.mxu1 %vm410_vm2, %v10052_v18  ;;  %8804 = vmatpush3.bf16.msra.mxu0 %v1574_v3  ;;  %v1881_v18 = vsel %vm462_vm0, %v7556_v8, 0 }
  0x9f   : > { %8669 = vmatprep.mubr.msk.bf16.mxu0 %vm9951_vm1, %v9950_v2  ;;  %8739 = vmatprep.mubr.msk.bf16.mxu1 %vm9951_vm1, %v9950_v2 }
  0xa0   : > { %8943 = vmatprep.subr.bf16.mxu0 %v9950_v2  ;;  %8874 = vmatpush3.bf16.msra.mxu1 %v1881_v18  ;;  %v876_v18 = vld [vmem:[%s10032_s16 + $0xa2] sm:$0xff] }
  0xa1   : > { %9013 = vmatprep.subr.bf16.mxu1 %v9950_v2 }
  0xa5   : > { %8670 = vmatmul.mubr.msk.bf16.gmra.mxu0 %vm410_vm2, %v10298_v7 }
  0xa6   : > { %8740 = vmatmul.mubr.msk.bf16.gmra.mxu1 %vm410_vm2, %v10068_v24  ;;  %8673 = vmatprep.mubr.msk.bf16.mxu0 %vm9951_vm1, %v9950_v2  ;;  %v862_v24 = vld [vmem:[%s10032_s16 + $0x32] sm:$0xff] }
  0xa7   : > { %8743 = vmatprep.mubr.msk.bf16.mxu1 %vm9951_vm1, %v9950_v2  ;;  %v10327_v14 = vpack.c.bf16 %v863_v13, %v862_v24 }
  0xad   : > { %8674 = vmatmul.mubr.msk.bf16.gmra.mxu0 %vm410_vm2, %v10315_v12 }
  0xae   : > { %8744 = vmatmul.mubr.msk.bf16.gmra.mxu1 %vm410_vm2, %v10088_v32  ;;  %8677 = vmatprep.mubr.msk.bf16.mxu0 %vm9951_vm1, %v9950_v2  ;;  %v864_v32 = vld [vmem:[%s10032_s16 + $0x42] sm:$0xff] }
  0xaf   : > { %8747 = vmatprep.mubr.msk.bf16.mxu1 %vm9951_vm1, %v9950_v2  ;;  %v10339_v16 = vpack.c.bf16 %v865_v15, %v864_v32  ;;  %v10421_v15 = vpack.c.bf16 %v877_v9, %v876_v18  ;;  %v882_v9 = vld [vmem:[%s10032_s16 + $0xd2] sm:$0xff] }
  0xb5   : > { %8678 = vmatmul.mubr.msk.bf16.gmra.mxu0 %vm410_vm2, %v10327_v14 }
  0xb6   : > { %8748 = vmatmul.mubr.msk.bf16.gmra.mxu1 %vm410_vm2, %v10105_v38  ;;  %8681 = vmatprep.mubr.msk.bf16.mxu0 %vm9951_vm1, %v9950_v2  ;;  %v866_v38 = vld [vmem:[%s10032_s16 + $0x52] sm:$0xff] }
  0xb7   : > { %8751 = vmatprep.mubr.msk.bf16.mxu1 %vm9951_vm1, %v9950_v2  ;;  %v10351_v21 = vpack.c.bf16 %v867_v20, %v866_v38 }
  0xbd   : > { %8682 = vmatmul.mubr.msk.bf16.gmra.mxu0 %vm410_vm2, %v10339_v16 }
  0xbe   : > { %8752 = vmatmul.mubr.msk.bf16.gmra.mxu1 %vm410_vm2, %v10121_v44  ;;  %8685 = vmatprep.mubr.msk.bf16.mxu0 %vm9951_vm1, %v9950_v2  ;;  %v868_v44 = vld [vmem:[%s10032_s16 + $0x62] sm:$0xff] }
  0xbf   : > { %8755 = vmatprep.mubr.msk.bf16.mxu1 %vm9951_vm1, %v9950_v2  ;;  %v10363_v25 = vpack.c.bf16 %v869_v22, %v868_v44 }
  0xc5   : > { %8686 = vmatmul.mubr.msk.bf16.gmra.mxu0 %vm410_vm2, %v10351_v21 }
  0xc6   : > { %8756 = vmatmul.mubr.msk.bf16.gmra.mxu1 %vm410_vm2, %v10137_v50  ;;  %8689 = vmatprep.mubr.msk.bf16.mxu0 %vm9951_vm1, %v9950_v2  ;;  %v870_v50 = vld [vmem:[%s10032_s16 + $0x72] sm:$0xff] }
  0xc7   : > { %8759 = vmatprep.mubr.msk.bf16.mxu1 %vm9951_vm1, %v9950_v2  ;;  %v10375_v28 = vpack.c.bf16 %v871_v26, %v870_v50  ;;  %v878_v26 = vld [vmem:[%s10032_s16 + $0xb2] sm:$0xff] }
  0xcd   : > { %8690 = vmatmul.mubr.msk.bf16.gmra.mxu0 %vm410_vm2, %v10363_v25 }
  0xce   : > { %8760 = vmatmul.mubr.msk.bf16.gmra.mxu1 %vm410_vm2, %v10153_v56  ;;  %8693 = vmatprep.mubr.msk.bf16.mxu0 %vm9951_vm1, %v9950_v2  ;;  %v872_v56 = vld [vmem:[%s10032_s16 + $0x82] sm:$0xff] }
  0xcf   : > { %8763 = vmatprep.mubr.msk.bf16.mxu1 %vm9951_vm1, %v9950_v2  ;;  %v10389_v41 = vpack.c.bf16 %v873_v33, %v872_v56 }
  0xd5   : > { %v500_v29 = vpop.f32.mrf.mxu0  ;;  %8694 = vmatmul.mubr.msk.bf16.gmra.mxu0 %vm410_vm2, %v10375_v28 }
  0xd6   : > { %v722_v31 = vpop.f32.mrf.mxu1  ;;  %8764 = vmatmul.mubr.msk.bf16.gmra.mxu1 %vm410_vm2, %v10169_v62  ;;  %8697 = vmatprep.mubr.msk.bf16.mxu0 %vm9951_vm1, %v9950_v2 }
  0xd7   : > { %v10385_v34 = vadd.f32 %v722_v31, %v500_v29  ;;  %v8527_v36 = vpop.f32.mrf.mxu0  ;;  %8767 = vmatprep.mubr.msk.bf16.mxu1 %vm9951_vm1, %v9950_v2  ;;  %v879_v29 = vld [vmem:[%s10032_s16 + $0xba] sm:$0xff] }
  0xd8   : > { %v8597_v39 = vpop.f32.mrf.mxu1 }
  0xd9   : > { %v503_v40 = vpop.f32.mrf.mxu0  ;;  %v10437_v39 = vpack.c.bf16 %v879_v29, %v878_v26 }
  0xda   : > { %v725_v42 = vpop.f32.mrf.mxu1 }
  0xdb   : > { %v10391_v46 = vadd.f32 %v725_v42, %v503_v40  ;;  %v8528_v62 = vpop.f32.mrf.mxu0 }
  0xdc   : > { %v8598_v47 = vpop.f32.mrf.mxu1 }
  0xdd   : > { %v508_v48 = vpop.f32.mrf.mxu0  ;;  %8698 = vmatmul.mubr.msk.bf16.gmra.mxu0 %vm410_vm2, %v10389_v41 }
  0xde   : > { %v730_v51 = vpop.f32.mrf.mxu1  ;;  %8768 = vmatmul.mubr.msk.bf16.gmra.mxu1 %vm410_vm2, %v10183_v5  ;;  %8701 = vmatprep.mubr.msk.bf16.mxu0 %vm9951_vm1, %v9950_v2 }
  0xdf   : > { %v10401_v58 = vadd.f32 %v730_v51, %v508_v48  ;;  %v8531_v59 = vpop.f32.mrf.mxu0  ;;  %8771 = vmatprep.mubr.msk.bf16.mxu1 %vm9951_vm1, %v9950_v2  ;;  %v880_v51 = vld [vmem:[%s10032_s16 + $0xc2] sm:$0xff] }
  0xe0   : > { %v8601_v60 = vpop.f32.mrf.mxu1 }
  0xe1   : > { %v511_v63 = vpop.f32.mrf.mxu0 }
  0xe2   : > { %v733_v1 = vpop.f32.mrf.mxu1 }
  0xe3   : > { %v10407_v3 = vadd.f32 %v733_v1, %v511_v63  ;;  %v8532_v5 = vpop.f32.mrf.mxu0  ;;  %v10453_v1 = vpack.c.bf16 %v881_v52, %v880_v51 }
  0xe4   : > { %v8602_v4 = vpop.f32.mrf.mxu1 }
  0xe5   : > { %v516_v6 = vpop.f32.mrf.mxu0  ;;  %8702 = vmatmul.mubr.msk.bf16.gmra.mxu0 %vm410_vm2, %v10405_v0 }
  0xe6   : > { %v738_v8 = vpop.f32.mrf.mxu1  ;;  %8772 = vmatmul.mubr.msk.bf16.gmra.mxu1 %vm410_vm2, %v10196_v11  ;;  %8705 = vmatprep.mubr.msk.bf16.mxu0 %vm9951_vm1, %v9950_v2 }
  0xe7   : > { %v10417_v10 = vadd.f32 %v738_v8, %v516_v6  ;;  %v8535_v24 = vpop.f32.mrf.mxu0  ;;  %8775 = vmatprep.mubr.msk.bf16.mxu1 %vm9951_vm1, %v9950_v2 }
  0xe8   : > { %v8605_v13 = vpop.f32.mrf.mxu1  ;;  %v883_v24 = vld [vmem:[%s10032_s16 + $0xda] sm:$0xff] }
  0xe9   : > { %v519_v32 = vpop.f32.mrf.mxu0 }
  0xea   : > { %v741_v38 = vpop.f32.mrf.mxu1 }
  0xeb   : > { %v10423_v20 = vadd.f32 %v741_v38, %v519_v32  ;;  %v8536_v11 = vpop.f32.mrf.mxu0 }
  0xec   : > { %v8606_v44 = vpop.f32.mrf.mxu1 }
  0xed   : > { %v524_v22 = vpop.f32.mrf.mxu0  ;;  %8706 = vmatmul.mubr.msk.bf16.gmra.mxu0 %vm410_vm2, %v10421_v15  ;;  %v10469_v44 = vpack.c.bf16 %v883_v24, %v882_v9 }
  0xee   : > { %v746_v50 = vpop.f32.mrf.mxu1  ;;  %8776 = vmatmul.mubr.msk.bf16.gmra.mxu1 %vm410_vm2, %v10209_v19  ;;  %8709 = vmatprep.mubr.msk.bf16.mxu0 %vm9951_vm1, %v9950_v2 }
  0xef   : > { %v10433_v31 = vadd.f32 %v746_v50, %v524_v22  ;;  %v8539_v56 = vpop.f32.mrf.mxu0  ;;  %8779 = vmatprep.mubr.msk.bf16.mxu1 %vm9951_vm1, %v9950_v2 }
  0xf0   : > { %v8609_v33 = vpop.f32.mrf.mxu1 }
  0xf1   : > { %v527_v36 = vpop.f32.mrf.mxu0  ;;  %v884_v33 = vld [vmem:[%s10032_s16 + $0xe2] sm:$0xff] }
  0xf2   : > { %v749_v40 = vpop.f32.mrf.mxu1 }
  0xf3   : > { %v10439_v42 = vadd.f32 %v749_v40, %v527_v36  ;;  %v8540_v19 = vpop.f32.mrf.mxu0  ;;  %v885_v36 = vld [vmem:[%s10032_s16 + $0xea] sm:$0xff] }
  0xf4   : > { %v8610_v62 = vpop.f32.mrf.mxu1 }
  0xf5   : > { %v532_v47 = vpop.f32.mrf.mxu0  ;;  %8710 = vmatmul.mubr.msk.bf16.gmra.mxu0 %vm410_vm2, %v10437_v39 }
  0xf6   : > { %v754_v48 = vpop.f32.mrf.mxu1  ;;  %8780 = vmatmul.mubr.msk.bf16.gmra.mxu1 %vm410_vm2, %v10222_v27  ;;  %8713 = vmatprep.mubr.msk.bf16.mxu0 %vm9951_vm1, %v9950_v2 }
  0xf7   : > { %v10449_v54 = vadd.f32 %v754_v48, %v532_v47  ;;  %v8543_v59 = vpop.f32.mrf.mxu0  ;;  %8783 = vmatprep.mubr.msk.bf16.mxu1 %vm9951_vm1, %v9950_v2  ;;  %v10485_v48 = vpack.c.bf16 %v885_v36, %v884_v33 }
  0xf8   : > { %v8613_v60 = vpop.f32.mrf.mxu1 }
  0xf9   : > { %v535_v63 = vpop.f32.mrf.mxu0 }
  0xfa   : > { %v757_v5 = vpop.f32.mrf.mxu1 }
  0xfb   : > { %v10455_v4 = vadd.f32 %v757_v5, %v535_v63  ;;  %v8544_v27 = vpop.f32.mrf.mxu0  ;;  %v886_v5 = vld [vmem:[%s10032_s16 + $0xf2] sm:$0xff] }
  0xfc   : > { %v8614_v6 = vpop.f32.mrf.mxu1  ;;  %v887_v27 = vld [vmem:[%s10032_s16 + $0xfa] sm:$0xff] }
  0xfd   : > { %v540_v8 = vpop.f32.mrf.mxu0  ;;  %8714 = vmatmul.mubr.msk.bf16.gmra.mxu0 %vm410_vm2, %v10453_v1 }
  0xfe   : > { %v762_v18 = vpop.f32.mrf.mxu1  ;;  %8784 = vmatmul.mubr.msk.bf16.gmra.mxu1 %vm410_vm2, %v10235_v35  ;;  %8717 = vmatprep.mubr.msk.bf16.mxu0 %vm9951_vm1, %v9950_v2 }
  0xff   : > { %v10465_v13 = vadd.f32 %v762_v18, %v540_v8  ;;  %v8547_v32 = vpop.f32.mrf.mxu0  ;;  %8787 = vmatprep.mubr.msk.bf16.mxu1 %vm9951_vm1, %v9950_v2  ;;  %v1194_v18 = vld [vmem:[%s10032_s16 + $0x108] sm:$0xff] }
 0x100   : > { %v8617_v38 = vpop.f32.mrf.mxu1  ;;  %v10502_v32 = vpack.c.bf16 %v887_v27, %v886_v5 }
 0x101   : > { %v543_v11 = vpop.f32.mrf.mxu0 }
 0x102   : > { %v765_v22 = vpop.f32.mrf.mxu1 }
 0x103   : > { %v10471_v50 = vadd.f32 %v765_v22, %v543_v11  ;;  %v8548_v35 = vpop.f32.mrf.mxu0 }
 0x104   : > { %v8618_v26 = vpop.f32.mrf.mxu1 }
 0x105   : > { %v548_v29 = vpop.f32.mrf.mxu0  ;;  %8718 = vmatmul.mubr.msk.bf16.gmra.mxu0 %vm410_vm2, %v10469_v44 }
 0x106   : > { %v770_v56 = vpop.f32.mrf.mxu1  ;;  %8788 = vmatmul.mubr.msk.bf16.gmra.mxu1 %vm410_vm2, %v10248_v45  ;;  %8721 = vmatprep.mubr.msk.bf16.mxu0 %vm9951_vm1, %v9950_v2 }
 0x107   : > { %v10481_v40 = vadd.f32 %v770_v56, %v548_v29  ;;  %v8551_v19 = vpop.f32.mrf.mxu0  ;;  %8791 = vmatprep.mubr.msk.bf16.mxu1 %vm9951_vm1, %v9950_v2  ;;  %v10513_v56 = vld [vmem:[%s10032_s16 + $0x102] sm:$0xff] }
 0x108   : > { %v8621_v62 = vpop.f32.mrf.mxu1 }
 0x109   : > { %v551_v47 = vpop.f32.mrf.mxu0 }
 0x10a   : > { %v773_v51 = vpop.f32.mrf.mxu1 }
 0x10b   : > { %v10487_v45 = vadd.f32 %v773_v51, %v551_v47  ;;  %v8552_v52 = vpop.f32.mrf.mxu0  ;;  %v905_v47 = vpack.c.bf16 %v10513_v56, %v10513_v56 }
 0x10c   : > { %v8622_v59 = vpop.f32.mrf.mxu1 }
 0x10d   : > { %v556_v60 = vpop.f32.mrf.mxu0  ;;  %8722 = vmatmul.mubr.msk.bf16.gmra.mxu0 %vm410_vm2, %v10485_v48 }
 0x10e   : > { %v778_v63 = vpop.f32.mrf.mxu1  ;;  %8792 = vmatmul.mubr.msk.bf16.gmra.mxu1 %vm410_vm2, %v10261_v53  ;;  %8725 = vmatprep.mubr.msk.bf16.mxu0 %vm9951_vm1, %v9950_v2  ;;  %v1211_v53 = vpack.c.bf16 %v1194_v18, %v10266_v57  ;;  %v1195_v57 = vld [vmem:[%s10032_s16 + $0x110] sm:$0xff] }
 0x10f   : > { %v10497_v6 = vadd.f32 %v778_v63, %v556_v60  ;;  %v8555_v8 = vpop.f32.mrf.mxu0  ;;  %8795 = vmatprep.mubr.msk.bf16.mxu1 %vm9951_vm1, %v9950_v2  ;;  %v1212_v52 = vpack.c.bf16 %v1195_v57, %v1195_v57 }
 0x110   : > { %v8625_v9 = vpop.f32.mrf.mxu1 }
 0x111   : > { %v559_v24 = vpop.f32.mrf.mxu0 }
 0x112   : > { %v781_v38 = vpop.f32.mrf.mxu1 }
 0x113   : > { %v10505_v11 = vadd.f32 %v781_v38, %v559_v24  ;;  %v8556_v22 = vpop.f32.mrf.mxu0  ;;  %v7574_v24 = vld [vmem:[%s12984_s1 + $0x18] sm:$0xf] }
 0x114   : > { %v8626_v35 = vpop.f32.mrf.mxu1 }
 0x115   : > { %v564_v26 = vpop.f32.mrf.mxu0  ;;  %8726 = vmatmul.mubr.msk.bf16.gmra.mxu0 %vm410_vm2, %v10502_v32 }
 0x116   : > { %v786_v29 = vpop.f32.mrf.mxu1  ;;  %8796 = vmatmul.mubr.msk.bf16.gmra.mxu1 %vm410_vm2, %v1211_v53  ;;  %8729 = vmatprep.mubr.msk.bf16.mxu0 %vm9951_vm1, %v9950_v2 }
 0x117   : > { %v10515_v33 = vadd.f32 %v786_v29, %v564_v26  ;;  %v8559_v36 = vpop.f32.mrf.mxu0  ;;  %8799 = vmatprep.mubr.msk.bf16.mxu1 %vm9951_vm1, %v9950_v2  ;;  %v2188_v26 = vsel %vm462_vm0, %v7574_v24, 0 }
 0x118   : > { %v8629_v19 = vpop.f32.mrf.mxu1 }
 0x119   : > { %v567_v62 = vpop.f32.mrf.mxu0 }
 0x11a   : > { %v789_v51 = vpop.f32.mrf.mxu1 }
 0x11b   : > { %v10522_v59 = vadd.f32 %v789_v51, %v567_v62  ;;  %v8560_v60 = vpop.f32.mrf.mxu0 }
 0x11c   : > { %v8630_v63 = vpop.f32.mrf.mxu1 }
 0x11d   : > { %v572_v5 = vpop.f32.mrf.mxu0  ;;  %8730 = vmatmul.mubr.msk.bf16.gmra.mxu0 %vm410_vm2, %v905_v47 }
 0x11e   : > { %v794_v27 = vpop.f32.mrf.mxu1  ;;  %8800 = vmatmul.mubr.msk.bf16.gmra.mxu1 %vm410_vm2, %v1212_v52  ;;  %8805 = vmatprep.mubr.msk.bf16.mxu0 %vm9951_vm1, %v9950_v2 }
 0x11f   : > { %v10528_v8 = vadd.f32 %v794_v27, %v572_v5  ;;  %v8563_v18 = vpop.f32.mrf.mxu0  ;;  %8875 = vmatprep.mubr.msk.bf16.mxu1 %vm9951_vm1, %v9950_v2 }
 0x120   : > { %v8633_v9 = vpop.f32.mrf.mxu1 }
 0x121   : > { %v575_v38 = vpop.f32.mrf.mxu0 }
 0x122   : > { %v797_v53 = vpop.f32.mrf.mxu1 }
 0x123   : > { %v10535_v22 = vadd.f32 %v797_v53, %v575_v38  ;;  %v8564_v35 = vpop.f32.mrf.mxu0 }
 0x124   : > { %v8634_v29 = vpop.f32.mrf.mxu1 }
 0x125   : > { %v580_v36 = vpop.f32.mrf.mxu0  ;;  %8806 = vmatmul.mubr.msk.bf16.vlgmr.msra.gmra.mxu0 %vm410_vm2, %v10050_v17 }
 0x126   : > { %v802_v57 = vpop.f32.mrf.mxu1  ;;  %8876 = vmatmul.mubr.msk.bf16.vlgmr.msra.gmra.mxu1 %vm410_vm2, %v10298_v7  ;;  %8944 = vmatpush3.bf16.msra.mxu0 %v2188_v26  ;;  %v7592_v7 = vld [vmem:[%s12984_s1 + $0x1c] sm:$0xf] }
 0x127   : > { %v10542_v19 = vadd.f32 %v802_v57, %v580_v36  ;;  %v8567_v62 = vpop.f32.mrf.mxu0  ;;  %8809 = vmatprep.mubr.msk.bf16.mxu0 %vm9951_vm1, %v9950_v2  ;;  %8879 = vmatprep.mubr.msk.bf16.mxu1 %vm9951_vm1, %v9950_v2  ;;  %v2495_v5 = vsel %vm462_vm0, %v7592_v7, 0 }
 0x128   : > { %v8637_v47 = vpop.f32.mrf.mxu1  ;;  %9083 = vmatprep.subr.bf16.mxu0 %v9950_v2  ;;  %9014 = vmatpush3.bf16.msra.mxu1 %v2495_v5 }
 0x129   : > { %v583_v51 = vpop.f32.mrf.mxu0 }
 0x12a   : > { %v805_v52 = vpop.f32.mrf.mxu1 }
 0x12b   : > { %v10549_v17 = vadd.f32 %v805_v52, %v583_v51  ;;  %v8568_v60 = vpop.f32.mrf.mxu0 }
 0x12c   : > { %v8638_v63 = vpop.f32.mrf.mxu1 }
 0x12d   : > { %v588_v27 = vpop.f32.mrf.mxu0  ;;  %8810 = vmatmul.mubr.msk.bf16.gmra.mxu0 %vm410_vm2, %v10066_v23 }
 0x12e   : > { %v810_v18 = vpop.f32.mrf.mxu1  ;;  %8880 = vmatmul.mubr.msk.bf16.gmra.mxu1 %vm410_vm2, %v10315_v12  ;;  %8813 = vmatprep.mubr.msk.bf16.mxu0 %vm9951_vm1, %v9950_v2 }
 0x12f   : > { %v10561_v9 = vadd.f32 %v810_v18, %v588_v27  ;;  %v8571_v24 = vpop.f32.mrf.mxu0  ;;  %8883 = vmatprep.mubr.msk.bf16.mxu1 %vm9951_vm1, %v9950_v2 }
 0x130   : > { %v8641_v38 = vpop.f32.mrf.mxu1 }
 0x131   : > { %v591_v53 = vpop.f32.mrf.mxu0 }
 0x132   : > { %v813_v35 = vpop.f32.mrf.mxu1 }
 0x133   : > { %v10565_v26 = vadd.f32 %v813_v35, %v591_v53  ;;  %v8572_v23 = vpop.f32.mrf.mxu0 }
 0x134   : > { %v8642_v29 = vpop.f32.mrf.mxu1 }
 0x135   : > { %v596_v36 = vpop.f32.mrf.mxu0  ;;  %8814 = vmatmul.mubr.msk.bf16.gmra.mxu0 %vm410_vm2, %v10085_v30 }
 0x136   : > { %v818_v12 = vpop.f32.mrf.mxu1  ;;  %8884 = vmatmul.mubr.msk.bf16.gmra.mxu1 %vm410_vm2, %v10327_v14  ;;  %8817 = vmatprep.mubr.msk.bf16.mxu0 %vm9951_vm1, %v9950_v2 }
 0x137   : > { %v10573_v57 = vadd.f32 %v818_v12, %v596_v36  ;;  %v8575_v62 = vpop.f32.mrf.mxu0  ;;  %8887 = vmatprep.mubr.msk.bf16.mxu1 %vm9951_vm1, %v9950_v2 }
 0x138   : > { %v8645_v47 = vpop.f32.mrf.mxu1 }
 0x139   : > { %v599_v51 = vpop.f32.mrf.mxu0 }
 0x13a   : > { %v821_v52 = vpop.f32.mrf.mxu1 }
 0x13b   : > { %v10577_v60 = vadd.f32 %v821_v52, %v599_v51  ;;  %v8576_v7 = vpop.f32.mrf.mxu0 }
 0x13c   : > { %v8646_v30 = vpop.f32.mrf.mxu1 }
 0x13d   : > { %v604_v63 = vpop.f32.mrf.mxu0  ;;  %8818 = vmatmul.mubr.msk.bf16.gmra.mxu0 %vm410_vm2, %v10103_v37 }
 0x13e   : > { %v826_v14 = vpop.f32.mrf.mxu1  ;;  %8888 = vmatmul.mubr.msk.bf16.gmra.mxu1 %vm410_vm2, %v10339_v16  ;;  %8821 = vmatprep.mubr.msk.bf16.mxu0 %vm9951_vm1, %v9950_v2 }
 0x13f   : > { %v10585_v5 = vadd.f32 %v826_v14, %v604_v63  ;;  %v8579_v27 = vpop.f32.mrf.mxu0  ;;  %8891 = vmatprep.mubr.msk.bf16.mxu1 %vm9951_vm1, %v9950_v2 }
 0x140   : > { %v8649_v18 = vpop.f32.mrf.mxu1 }
 0x141   : > { %v607_v24 = vpop.f32.mrf.mxu0 }
 0x142   : > { %v829_v38 = vpop.f32.mrf.mxu1 }
 0x143   : > { %v10589_v53 = vadd.f32 %v829_v38, %v607_v24  ;;  %v8580_v35 = vpop.f32.mrf.mxu0 }
 0x144   : > { %v8650_v37 = vpop.f32.mrf.mxu1 }
 0x145   : > { %v612_v23 = vpop.f32.mrf.mxu0  ;;  %8822 = vmatmul.mubr.msk.bf16.gmra.mxu0 %vm410_vm2, %v10119_v43 }
 0x146   : > { %v834_v16 = vpop.f32.mrf.mxu1  ;;  %8892 = vmatmul.mubr.msk.bf16.gmra.mxu1 %vm410_vm2, %v10351_v21  ;;  %8825 = vmatprep.mubr.msk.bf16.mxu0 %vm9951_vm1, %v9950_v2 }
 0x147   : > { %v10597_v29 = vadd.f32 %v834_v16, %v612_v23  ;;  %v8583_v36 = vpop.f32.mrf.mxu0  ;;  %8895 = vmatprep.mubr.msk.bf16.mxu1 %vm9951_vm1, %v9950_v2 }
 0x148   : > { %v8653_v12 = vpop.f32.mrf.mxu1 }
 0x149   : > { %v615_v62 = vpop.f32.mrf.mxu0 }
 0x14a   : > { %v837_v47 = vpop.f32.mrf.mxu1 }
 0x14b   : > { %v10601_v51 = vadd.f32 %v837_v47, %v615_v62  ;;  %v8584_v52 = vpop.f32.mrf.mxu0 }
 0x14c   : > { %v8654_v43 = vpop.f32.mrf.mxu1 }
 0x14d   : > { %v620_v7 = vpop.f32.mrf.mxu0  ;;  %8826 = vmatmul.mubr.msk.bf16.gmra.mxu0 %vm410_vm2, %v10135_v49  ;;  %v1486_v43 = vld [vmem:[%s10032_s16 + $0x91] sm:$0xff] }
 0x14e   : > { %v842_v21 = vpop.f32.mrf.mxu1  ;;  %8896 = vmatmul.mubr.msk.bf16.gmra.mxu1 %vm410_vm2, %v10363_v25  ;;  %8829 = vmatprep.mubr.msk.bf16.mxu0 %vm9951_vm1, %v9950_v2 }
 0x14f   : > { %v10609_v30 = vadd.f32 %v842_v21, %v620_v7  ;;  %v8587_v63 = vpop.f32.mrf.mxu0  ;;  %8899 = vmatprep.mubr.msk.bf16.mxu1 %vm9951_vm1, %v9950_v2  ;;  %v1487_v7 = vld [vmem:[%s10032_s16 + $0x99] sm:$0xff] }
 0x150   : > { %v8657_v14 = vpop.f32.mrf.mxu1 }
 0x151   : > { %v623_v27 = vpop.f32.mrf.mxu0 }
 0x152   : > { %v845_v18 = vpop.f32.mrf.mxu1 }
 0x153   : > { %v10613_v24 = vadd.f32 %v845_v18, %v623_v27  ;;  %v8588_v38 = vpop.f32.mrf.mxu0 }
 0x154   : > { %v8658_v49 = vpop.f32.mrf.mxu1 }
 0x155   : > { %v628_v35 = vpop.f32.mrf.mxu0  ;;  %8830 = vmatmul.mubr.msk.bf16.gmra.mxu0 %vm410_vm2, %v10151_v55 }
 0x156   : > { %v850_v25 = vpop.f32.mrf.mxu1  ;;  %8900 = vmatmul.mubr.msk.bf16.gmra.mxu1 %vm410_vm2, %v10375_v28  ;;  %8833 = vmatprep.mubr.msk.bf16.mxu0 %vm9951_vm1, %v9950_v2 }
 0x157   : > { %v10621_v37 = vadd.f32 %v850_v25, %v628_v35  ;;  %v8591_v23 = vpop.f32.mrf.mxu0  ;;  %8903 = vmatprep.mubr.msk.bf16.mxu1 %vm9951_vm1, %v9950_v2 }
 0x158   : > { %v8661_v16 = vpop.f32.mrf.mxu1 }
 0x159   : > { %v631_v36 = vpop.f32.mrf.mxu0  ;;  %v1488_v16 = vld [vmem:[%s10032_s16 + $0xa1] sm:$0xff] }
 0x15a   : > { %v853_v12 = vpop.f32.mrf.mxu1 }
 0x15b   : > { %v8592_v62 = vpop.f32.mrf.mxu0 }
 0x15c   : > { %v8662_v55 = vpop.f32.mrf.mxu1 }
 0x15d   : > { %v996_v47 = vpop.f32.mrf.mxu0  ;;  %8834 = vmatmul.mubr.msk.bf16.gmra.mxu0 %vm410_vm2, %v10167_v61 }
 0x15e   : > { %v1130_v28 = vadd.f32 %v996_v47, %v10385_v34  ;;  %v1303_v52 = vpop.f32.mrf.mxu1  ;;  %8904 = vmatmul.mubr.msk.bf16.gmra.mxu1 %vm410_vm2, %v10389_v41  ;;  %8837 = vmatprep.mubr.msk.bf16.mxu0 %vm9951_vm1, %v9950_v2  ;;  %v10638_v34 = vpack.c.bf16 %v1487_v7, %v1486_v43 }
 0x15f   : > { %v8667_v21 = vpop.f32.mrf.mxu0  ;;  %8907 = vmatprep.mubr.msk.bf16.mxu1 %vm9951_vm1, %v9950_v2 }
 0x160   : > { %v10636_v63 = vadd.f32 %v1303_v52, %v1130_v28  ;;  %v8737_v61 = vpop.f32.mrf.mxu1 }
 0x161   : > { %v999_v14 = vpop.f32.mrf.mxu0 }
 0x162   : > { %v1131_v27 = vadd.f32 %v999_v14, %v10391_v46  ;;  %v1306_v41 = vpop.f32.mrf.mxu1  ;;  %v1489_v46 = vld [vmem:[%s10032_s16 + $0xa9] sm:$0xff]  ;;  %v1490_v14 = vld [vmem:[%s10032_s16 + $0xb1] sm:$0xff] }
 0x163   : > { %v8668_v18 = vpop.f32.mrf.mxu0 }
 0x164   : > { %v10641_v38 = vadd.f32 %v1306_v41, %v1131_v27  ;;  %v8738_v49 = vpop.f32.mrf.mxu1 }
 0x165   : > { %v1004_v35 = vpop.f32.mrf.mxu0  ;;  %8838 = vmatmul.mubr.msk.bf16.gmra.mxu0 %vm410_vm2, %v10638_v34 }
 0x166   : > { %v1132_v25 = vadd.f32 %v1004_v35, %v10401_v58  ;;  %v1311_v23 = vpop.f32.mrf.mxu1  ;;  %8908 = vmatmul.mubr.msk.bf16.gmra.mxu1 %vm410_vm2, %v10405_v0  ;;  %8841 = vmatprep.mubr.msk.bf16.mxu0 %vm9951_vm1, %v9950_v2  ;;  %v10656_v58 = vpack.c.bf16 %v1489_v46, %v1488_v16 }
 0x167   : > { %v8671_v36 = vpop.f32.mrf.mxu0  ;;  %8911 = vmatprep.mubr.msk.bf16.mxu1 %vm9951_vm1, %v9950_v2 }
 0x168   : > { %v10654_v12 = vadd.f32 %v1311_v23, %v1132_v25  ;;  %v8741_v62 = vpop.f32.mrf.mxu1 }
 0x169   : > { %v1007_v55 = vpop.f32.mrf.mxu0 }
 0x16a   : > { %v1133_v47 = vadd.f32 %v1007_v55, %v10407_v3  ;;  %v1314_v0 = vpop.f32.mrf.mxu1  ;;  %v1491_v3 = vld [vmem:[%s10032_s16 + $0xb9] sm:$0xff]  ;;  %v1492_v55 = vld [vmem:[%s10032_s16 + $0xc1] sm:$0xff] }
 0x16b   : > { %v8672_v28 = vpop.f32.mrf.mxu0 }
 0x16c   : > { %v10659_v52 = vadd.f32 %v1314_v0, %v1133_v47  ;;  %v8742_v43 = vpop.f32.mrf.mxu1 }
 0x16d   : > { %v1012_v7 = vpop.f32.mrf.mxu0  ;;  %8842 = vmatmul.mubr.msk.bf16.gmra.mxu0 %vm410_vm2, %v10656_v58 }
 0x16e   : > { %v1134_v21 = vadd.f32 %v1012_v7, %v10417_v10  ;;  %v1319_v61 = vpop.f32.mrf.mxu1  ;;  %8912 = vmatmul.mubr.msk.bf16.gmra.mxu1 %vm410_vm2, %v10421_v15  ;;  %8845 = vmatprep.mubr.msk.bf16.mxu0 %vm9951_vm1, %v9950_v2  ;;  %v10674_v10 = vpack.c.bf16 %v1491_v3, %v1490_v14 }
 0x16f   : > { %v8675_v27 = vpop.f32.mrf.mxu0  ;;  %8915 = vmatprep.mubr.msk.bf16.mxu1 %vm9951_vm1, %v9950_v2 }
 0x170   : > { %v10672_v41 = vadd.f32 %v1319_v61, %v1134_v21  ;;  %v8745_v18 = vpop.f32.mrf.mxu1 }
 0x171   : > { %v1015_v49 = vpop.f32.mrf.mxu0 }
 0x172   : > { %v1135_v35 = vadd.f32 %v1015_v49, %v10423_v20  ;;  %v1322_v15 = vpop.f32.mrf.mxu1  ;;  %v1493_v20 = vld [vmem:[%s10032_s16 + $0xc9] sm:$0xff]  ;;  %v1494_v49 = vld [vmem:[%s10032_s16 + $0xd1] sm:$0xff] }
 0x173   : > { %v8676_v25 = vpop.f32.mrf.mxu0 }
 0x174   : > { %v10677_v23 = vadd.f32 %v1322_v15, %v1135_v35  ;;  %v8746_v16 = vpop.f32.mrf.mxu1 }
 0x175   : > { %v1020_v46 = vpop.f32.mrf.mxu0  ;;  %8846 = vmatmul.mubr.msk.bf16.gmra.mxu0 %vm410_vm2, %v10674_v10 }
 0x176   : > { %v1136_v36 = vadd.f32 %v1020_v46, %v10433_v31  ;;  %v1327_v62 = vpop.f32.mrf.mxu1  ;;  %8916 = vmatmul.mubr.msk.bf16.gmra.mxu1 %vm410_vm2, %v10437_v39  ;;  %8849 = vmatprep.mubr.msk.bf16.mxu0 %vm9951_vm1, %v9950_v2  ;;  %v10692_v31 = vpack.c.bf16 %v1493_v20, %v1492_v55 }
 0x177   : > { %v8679_v47 = vpop.f32.mrf.mxu0  ;;  %8919 = vmatprep.mubr.msk.bf16.mxu1 %vm9951_vm1, %v9950_v2 }
 0x178   : > { %v10690_v0 = vadd.f32 %v1327_v62, %v1136_v36  ;;  %v8749_v28 = vpop.f32.mrf.mxu1 }
 0x179   : > { %v1023_v43 = vpop.f32.mrf.mxu0 }
 0x17a   : > { %v1137_v7 = vadd.f32 %v1023_v43, %v10439_v42  ;;  %v1330_v39 = vpop.f32.mrf.mxu1  ;;  %v1495_v42 = vld [vmem:[%s10032_s16 + $0xd9] sm:$0xff]  ;;  %v1496_v43 = vld [vmem:[%s10032_s16 + $0xe1] sm:$0xff] }
 0x17b   : > { %v8680_v21 = vpop.f32.mrf.mxu0 }
 0x17c   : > { %v10695_v61 = vadd.f32 %v1330_v39, %v1137_v7  ;;  %v8750_v14 = vpop.f32.mrf.mxu1 }
 0x17d   : > { %v1028_v3 = vpop.f32.mrf.mxu0  ;;  %8850 = vmatmul.mubr.msk.bf16.gmra.mxu0 %vm410_vm2, %v10692_v31 }
 0x17e   : > { %v1138_v27 = vadd.f32 %v1028_v3, %v10449_v54  ;;  %v1335_v18 = vpop.f32.mrf.mxu1  ;;  %8920 = vmatmul.mubr.msk.bf16.gmra.mxu1 %vm410_vm2, %v10453_v1  ;;  %8853 = vmatprep.mubr.msk.bf16.mxu0 %vm9951_vm1, %v9950_v2  ;;  %v10710_v54 = vpack.c.bf16 %v1495_v42, %v1494_v49 }
 0x17f   : > { %v8683_v35 = vpop.f32.mrf.mxu0  ;;  %8923 = vmatprep.mubr.msk.bf16.mxu1 %vm9951_vm1, %v9950_v2 }
 0x180   : > { %v10708_v15 = vadd.f32 %v1335_v18, %v1138_v27  ;;  %v8753_v25 = vpop.f32.mrf.mxu1 }
 0x181   : > { %v1031_v16 = vpop.f32.mrf.mxu0 }
 0x182   : > { %v1139_v46 = vadd.f32 %v1031_v16, %v10455_v4  ;;  %v1338_v1 = vpop.f32.mrf.mxu1  ;;  %v1497_v4 = vld [vmem:[%s10032_s16 + $0xe9] sm:$0xff]  ;;  %v1498_v16 = vld [vmem:[%s10032_s16 + $0xf1] sm:$0xff] }
 0x183   : > { %v8684_v36 = vpop.f32.mrf.mxu0 }
 0x184   : > { %v10713_v62 = vadd.f32 %v1338_v1, %v1139_v46  ;;  %v8754_v55 = vpop.f32.mrf.mxu1 }
 0x185   : > { %v1036_v20 = vpop.f32.mrf.mxu0  ;;  %8854 = vmatmul.mubr.msk.bf16.gmra.mxu0 %vm410_vm2, %v10710_v54 }
 0x186   : > { %v1140_v47 = vadd.f32 %v1036_v20, %v10465_v13  ;;  %v1343_v28 = vpop.f32.mrf.mxu1  ;;  %8924 = vmatmul.mubr.msk.bf16.gmra.mxu1 %vm410_vm2, %v10469_v44  ;;  %8857 = vmatprep.mubr.msk.bf16.mxu0 %vm9951_vm1, %v9950_v2  ;;  %v10728_v13 = vpack.c.bf16 %v1497_v4, %v1496_v43 }
 0x187   : > { %v8687_v7 = vpop.f32.mrf.mxu0  ;;  %8927 = vmatprep.mubr.msk.bf16.mxu1 %vm9951_vm1, %v9950_v2 }
 0x188   : > { %v10726_v39 = vadd.f32 %v1343_v28, %v1140_v47  ;;  %v8757_v21 = vpop.f32.mrf.mxu1 }
 0x189   : > { %v1039_v14 = vpop.f32.mrf.mxu0 }
 0x18a   : > { %v1141_v3 = vadd.f32 %v1039_v14, %v10471_v50  ;;  %v1346_v44 = vpop.f32.mrf.mxu1  ;;  %v1499_v50 = vld [vmem:[%s10032_s16 + $0xf9] sm:$0xff]  ;;  %v1500_v14 = vld [vmem:[%s10032_s16 + $0x101] sm:$0xff] }
 0x18b   : > { %v8688_v27 = vpop.f32.mrf.mxu0 }
 0x18c   : > { %v10731_v18 = vadd.f32 %v1346_v44, %v1141_v3  ;;  %v8758_v49 = vpop.f32.mrf.mxu1  ;;  %v1808_v44 = vld [vmem:[%s10032_s16 + $0x10a] sm:$0xff] }
 0x18d   : > { %v1044_v42 = vpop.f32.mrf.mxu0  ;;  %8858 = vmatmul.mubr.msk.bf16.gmra.mxu0 %vm410_vm2, %v10728_v13 }
 0x18e   : > { %v1142_v35 = vadd.f32 %v1044_v42, %v10481_v40  ;;  %v1351_v25 = vpop.f32.mrf.mxu1  ;;  %8928 = vmatmul.mubr.msk.bf16.gmra.mxu1 %vm410_vm2, %v10485_v48  ;;  %8861 = vmatprep.mubr.msk.bf16.mxu0 %vm9951_vm1, %v9950_v2  ;;  %v10746_v40 = vpack.c.bf16 %v1499_v50, %v1498_v16 }
 0x18f   : > { %v8691_v46 = vpop.f32.mrf.mxu0  ;;  %8931 = vmatprep.mubr.msk.bf16.mxu1 %vm9951_vm1, %v9950_v2 }
 0x190   : > { %v10744_v1 = vadd.f32 %v1351_v25, %v1142_v35  ;;  %v8761_v36 = vpop.f32.mrf.mxu1  ;;  %v1825_v25 = vpack.c.bf16 %v1808_v44, %v10513_v56  ;;  %v1809_v56 = vld [vmem:[%s10032_s16 + $0x112] sm:$0xff] }
 0x191   : > { %v1047_v55 = vpop.f32.mrf.mxu0 }
 0x192   : > { %v1143_v48 = vadd.f32 %v1047_v55, %v10487_v45  ;;  %v1354_v20 = vpop.f32.mrf.mxu1  ;;  %v1501_v45 = vld [vmem:[%s10032_s16 + $0x109] sm:$0xff] }
 0x193   : > { %v8692_v47 = vpop.f32.mrf.mxu0 }
 0x194   : > { %v10749_v28 = vadd.f32 %v1354_v20, %v1143_v48  ;;  %v8762_v43 = vpop.f32.mrf.mxu1 }
 0x195   : > { %v1052_v4 = vpop.f32.mrf.mxu0  ;;  %8862 = vmatmul.mubr.msk.bf16.gmra.mxu0 %vm410_vm2, %v10746_v40 }
 0x196   : > { %v1144_v7 = vadd.f32 %v1052_v4, %v10497_v6  ;;  %v1359_v21 = vpop.f32.mrf.mxu1  ;;  %8932 = vmatmul.mubr.msk.bf16.gmra.mxu1 %vm410_vm2, %v10502_v32  ;;  %8865 = vmatprep.mubr.msk.bf16.mxu0 %vm9951_vm1, %v9950_v2  ;;  %v10765_v6 = vpack.c.bf16 %v1501_v45, %v1500_v14  ;;  %v1826_v14 = vpack.c.bf16 %v1809_v56, %v1809_v56 }
 0x197   : > { %v8695_v3 = vpop.f32.mrf.mxu0  ;;  %8935 = vmatprep.mubr.msk.bf16.mxu1 %vm9951_vm1, %v9950_v2 }
 0x198   : > { %v10763_v27 = vadd.f32 %v1359_v21, %v1144_v7  ;;  %v8765_v49 = vpop.f32.mrf.mxu1 }
 0x199   : > { %v1055_v42 = vpop.f32.mrf.mxu0 }
 0x19a   : > { %v1145_v32 = vadd.f32 %v1055_v42, %v10505_v11  ;;  %v1362_v35 = vpop.f32.mrf.mxu1  ;;  %v10778_v11 = vld [vmem:[%s10032_s16 + $0x111] sm:$0xff] }
 0x19b   : > { %v8696_v16 = vpop.f32.mrf.mxu0 }
 0x19c   : > { %v10769_v50 = vadd.f32 %v1362_v35, %v1145_v32  ;;  %v8766_v46 = vpop.f32.mrf.mxu1  ;;  %v2085_v35 = vld [vmem:[%s10032_s16 + $0x28] sm:$0xff] }
 0x19d   : > { %v1060_v36 = vpop.f32.mrf.mxu0  ;;  %8866 = vmatmul.mubr.msk.bf16.gmra.mxu0 %vm410_vm2, %v10765_v6  ;;  %v2391_v16 = vld [vmem:[%s10032_s16 + $0x21] sm:$0xff]  ;;  %v2392_v46 = vld [vmem:[%s10032_s16 + $0x29] sm:$0xff] }
 0x19e   : > { %v1146_v55 = vadd.f32 %v1060_v36, %v10515_v33  ;;  %v1367_v48 = vpop.f32.mrf.mxu1  ;;  %8936 = vmatmul.mubr.msk.bf16.gmra.mxu1 %vm410_vm2, %v1825_v25  ;;  %8869 = vmatprep.mubr.msk.bf16.mxu0 %vm9951_vm1, %v9950_v2  ;;  %v1519_v33 = vpack.c.bf16 %v10778_v11, %v10778_v11 }
 0x19f   : > { %v8699_v20 = vpop.f32.mrf.mxu0  ;;  %8939 = vmatprep.mubr.msk.bf16.mxu1 %vm9951_vm1, %v9950_v2 }
 0x1a0   : > { %v10783_v47 = vadd.f32 %v1367_v48, %v1146_v55  ;;  %v8769_v43 = vpop.f32.mrf.mxu1 }
 0x1a1   : > { %v1063_v4 = vpop.f32.mrf.mxu0 }
 0x1a2   : > { %v1147_v7 = vadd.f32 %v1063_v4, %v10522_v59  ;;  %v1370_v21 = vpop.f32.mrf.mxu1  ;;  %v2084_v59 = vld [vmem:[%s10032_s16 + $0x20] sm:$0xff]  ;;  %v2424_v4 = vpack.c.bf16 %v2392_v46, %v2391_v16 }
 0x1a3   : > { %v8700_v45 = vpop.f32.mrf.mxu0  ;;  %v2117_v20 = vpack.c.bf16 %v2085_v35, %v2084_v59  ;;  %v2393_v59 = vld [vmem:[%s10032_s16 + $0x31] sm:$0xff]  ;;  %v2394_v35 = vld [vmem:[%s10032_s16 + $0x39] sm:$0xff] }
 0x1a4   : > { %v10788_v3 = vadd.f32 %v1370_v21, %v1147_v7  ;;  %v8770_v44 = vpop.f32.mrf.mxu1 }
 0x1a5   : > { %v1068_v49 = vpop.f32.mrf.mxu0  ;;  %8870 = vmatmul.mubr.msk.bf16.gmra.mxu0 %vm410_vm2, %v1519_v33 }
 0x1a6   : > { %v1148_v42 = vadd.f32 %v1068_v49, %v10528_v8  ;;  %v1375_v32 = vpop.f32.mrf.mxu1  ;;  %8940 = vmatmul.mubr.msk.bf16.gmra.mxu1 %vm410_vm2, %v1826_v14  ;;  %8945 = vmatprep.mubr.msk.bf16.mxu0 %vm9951_vm1, %v9950_v2  ;;  %v7610_v8 = vld [vmem:[%s12984_s1 + $0x20] sm:$0xf] }
 0x1a7   : > { %v8703_v25 = vpop.f32.mrf.mxu0  ;;  %9015 = vmatprep.mubr.msk.bf16.mxu1 %vm9951_vm1, %v9950_v2  ;;  %v2802_v7 = vsel %vm462_vm0, %v7610_v8, 0 }
 0x1a8   : > { %v10801_v36 = vadd.f32 %v1375_v32, %v1148_v42  ;;  %v8773_v55 = vpop.f32.mrf.mxu1  ;;  %v2087_v42 = vld [vmem:[%s10032_s16 + $0x38] sm:$0xff] }
 0x1a9   : > { %v1071_v48 = vpop.f32.mrf.mxu0 }
 0x1aa   : > { %v1149_v56 = vadd.f32 %v1071_v48, %v10535_v22  ;;  %v1378_v43 = vpop.f32.mrf.mxu1  ;;  %v2086_v22 = vld [vmem:[%s10032_s16 + $0x30] sm:$0xff]  ;;  %v2425_v48 = vpack.c.bf16 %v2394_v35, %v2393_v59 }
 0x1ab   : > { %v8704_v33 = vpop.f32.mrf.mxu0  ;;  %v2118_v46 = vpack.c.bf16 %v2087_v42, %v2086_v22 }
 0x1ac   : > { %v10808_v21 = vadd.f32 %v1378_v43, %v1149_v56  ;;  %v8774_v14 = vpop.f32.mrf.mxu1 }
 0x1ad   : > { %v1076_v45 = vpop.f32.mrf.mxu0  ;;  %8946 = vmatmul.mubr.msk.bf16.vlgmr.msra.gmra.mxu0 %vm410_vm2, %v2117_v20  ;;  %v2089_v14 = vld [vmem:[%s10032_s16 + $0x48] sm:$0xff] }
 0x1ae   : > { %v1150_v44 = vadd.f32 %v1076_v45, %v10542_v19  ;;  %v1383_v49 = vpop.f32.mrf.mxu1  ;;  %9016 = vmatmul.mubr.msk.bf16.vlgmr.msra.gmra.mxu1 %vm410_vm2, %v2424_v4  ;;  %9084 = vmatpush3.bf16.msra.mxu0 %v2802_v7 }
 0x1af   : > { %v8707_v32 = vpop.f32.mrf.mxu0  ;;  %8949 = vmatprep.mubr.msk.bf16.mxu0 %vm9951_vm1, %v9950_v2  ;;  %9019 = vmatprep.mubr.msk.bf16.mxu1 %vm9951_vm1, %v9950_v2 }
 0x1b0   : > { %v10821_v25 = vadd.f32 %v1383_v49, %v1150_v44  ;;  %v8777_v16 = vpop.f32.mrf.mxu1  ;;  %v2395_v44 = vld [vmem:[%s10032_s16 + $0x41] sm:$0xff]  ;;  %v2396_v49 = vld [vmem:[%s10032_s16 + $0x49] sm:$0xff] }
 0x1b1   : > { %v1079_v19 = vpop.f32.mrf.mxu0  ;;  %v2426_v16 = vpack.c.bf16 %v2396_v49, %v2395_v44 }
 0x1b2   : > { %v1151_v55 = vadd.f32 %v1079_v19, %v10549_v17  ;;  %v1386_v8 = vpop.f32.mrf.mxu1  ;;  %v2088_v17 = vld [vmem:[%s10032_s16 + $0x40] sm:$0xff] }
 0x1b3   : > { %v8708_v20 = vpop.f32.mrf.mxu0  ;;  %v2119_v32 = vpack.c.bf16 %v2089_v14, %v2088_v17 }
 0x1b4   : > { %v10824_v56 = vadd.f32 %v1386_v8, %v1151_v55  ;;  %v8778_v43 = vpop.f32.mrf.mxu1 }
 0x1b5   : > { %v1084_v4 = vpop.f32.mrf.mxu0  ;;  %8950 = vmatmul.mubr.msk.bf16.gmra.mxu0 %vm410_vm2, %v2118_v46  ;;  %v2091_v43 = vld [vmem:[%s10032_s16 + $0x58] sm:$0xff] }
 0x1b6   : > { %v1152_v33 = vadd.f32 %v1084_v4, %v10561_v9  ;;  %v1391_v7 = vpop.f32.mrf.mxu1  ;;  %9020 = vmatmul.mubr.msk.bf16.gmra.mxu1 %vm410_vm2, %v2425_v48  ;;  %8953 = vmatprep.mubr.msk.bf16.mxu0 %vm9951_vm1, %v9950_v2 }
 0x1b7   : > { %v8711_v45 = vpop.f32.mrf.mxu0  ;;  %9023 = vmatprep.mubr.msk.bf16.mxu1 %vm9951_vm1, %v9950_v2 }
 0x1b8   : > { %v10837_v22 = vadd.f32 %v1391_v7, %v1152_v33  ;;  %v8781_v42 = vpop.f32.mrf.mxu1  ;;  %v2397_v33 = vld [vmem:[%s10032_s16 + $0x51] sm:$0xff]  ;;  %v2398_v7 = vld [vmem:[%s10032_s16 + $0x59] sm:$0xff] }
 0x1b9   : > { %v1087_v9 = vpop.f32.mrf.mxu0  ;;  %v2427_v42 = vpack.c.bf16 %v2398_v7, %v2397_v33 }
 0x1ba   : > { %v1153_v59 = vadd.f32 %v1087_v9, %v10565_v26  ;;  %v1394_v35 = vpop.f32.mrf.mxu1  ;;  %v2090_v26 = vld [vmem:[%s10032_s16 + $0x50] sm:$0xff] }
 0x1bb   : > { %v8712_v19 = vpop.f32.mrf.mxu0  ;;  %v2120_v45 = vpack.c.bf16 %v2091_v43, %v2090_v26 }
 0x1bc   : > { %v10840_v46 = vadd.f32 %v1394_v35, %v1153_v59  ;;  %v8782_v55 = vpop.f32.mrf.mxu1 }
 0x1bd   : > { %v1092_v8 = vpop.f32.mrf.mxu0  ;;  %8954 = vmatmul.mubr.msk.bf16.gmra.mxu0 %vm410_vm2, %v2119_v32  ;;  %v2093_v55 = vld [vmem:[%s10032_s16 + $0x68] sm:$0xff] }
 0x1be   : > { %v1154_v48 = vadd.f32 %v1092_v8, %v10573_v57  ;;  %v1399_v20 = vpop.f32.mrf.mxu1  ;;  %9024 = vmatmul.mubr.msk.bf16.gmra.mxu1 %vm410_vm2, %v2426_v16  ;;  %8957 = vmatprep.mubr.msk.bf16.mxu0 %vm9951_vm1, %v9950_v2 }
 0x1bf   : > { %v8715_v4 = vpop.f32.mrf.mxu0  ;;  %9027 = vmatprep.mubr.msk.bf16.mxu1 %vm9951_vm1, %v9950_v2 }
 0x1c0   : > { %v10853_v17 = vadd.f32 %v1399_v20, %v1154_v48  ;;  %v8785_v14 = vpop.f32.mrf.mxu1  ;;  %v2399_v48 = vld [vmem:[%s10032_s16 + $0x61] sm:$0xff]  ;;  %v2400_v20 = vld [vmem:[%s10032_s16 + $0x69] sm:$0xff] }
 0x1c1   : > { %v1095_v57 = vpop.f32.mrf.mxu0  ;;  %v2428_v14 = vpack.c.bf16 %v2400_v20, %v2399_v48 }
 0x1c2   : > { %v1155_v44 = vadd.f32 %v1095_v57, %v10577_v60  ;;  %v1402_v49 = vpop.f32.mrf.mxu1  ;;  %v2092_v60 = vld [vmem:[%s10032_s16 + $0x60] sm:$0xff] }
 0x1c3   : > { %v8716_v9 = vpop.f32.mrf.mxu0  ;;  %v2121_v4 = vpack.c.bf16 %v2093_v55, %v2092_v60 }
 0x1c4   : > { %v10856_v32 = vadd.f32 %v1402_v49, %v1155_v44  ;;  %v8786_v59 = vpop.f32.mrf.mxu1 }
 0x1c5   : > { %v1100_v35 = vpop.f32.mrf.mxu0  ;;  %8958 = vmatmul.mubr.msk.bf16.gmra.mxu0 %vm410_vm2, %v2120_v45  ;;  %v2095_v59 = vld [vmem:[%s10032_s16 + $0x78] sm:$0xff] }
 0x1c6   : > { %v1156_v16 = vadd.f32 %v1100_v35, %v10585_v5  ;;  %v1407_v19 = vpop.f32.mrf.mxu1  ;;  %9028 = vmatmul.mubr.msk.bf16.gmra.mxu1 %vm410_vm2, %v2427_v42  ;;  %8961 = vmatprep.mubr.msk.bf16.mxu0 %vm9951_vm1, %v9950_v2 }
 0x1c7   : > { %v8719_v8 = vpop.f32.mrf.mxu0  ;;  %9031 = vmatprep.mubr.msk.bf16.mxu1 %vm9951_vm1, %v9950_v2 }
 0x1c8   : > { %v10869_v26 = vadd.f32 %v1407_v19, %v1156_v16  ;;  %v8789_v43 = vpop.f32.mrf.mxu1  ;;  %v2401_v16 = vld [vmem:[%s10032_s16 + $0x71] sm:$0xff]  ;;  %v2402_v19 = vld [vmem:[%s10032_s16 + $0x79] sm:$0xff] }
 0x1c9   : > { %v1103_v5 = vpop.f32.mrf.mxu0  ;;  %v2429_v43 = vpack.c.bf16 %v2402_v19, %v2401_v16 }
 0x1ca   : > { %v1157_v33 = vadd.f32 %v1103_v5, %v10589_v53  ;;  %v1410_v7 = vpop.f32.mrf.mxu1  ;;  %v2094_v53 = vld [vmem:[%s10032_s16 + $0x70] sm:$0xff] }
 0x1cb   : > { %v8720_v57 = vpop.f32.mrf.mxu0  ;;  %v2122_v8 = vpack.c.bf16 %v2095_v59, %v2094_v53 }
 0x1cc   : > { %v10872_v45 = vadd.f32 %v1410_v7, %v1157_v33  ;;  %v8790_v44 = vpop.f32.mrf.mxu1 }
 0x1cd   : > { %v1108_v49 = vpop.f32.mrf.mxu0  ;;  %8962 = vmatmul.mubr.msk.bf16.gmra.mxu0 %vm410_vm2, %v2121_v4  ;;  %v2097_v44 = vld [vmem:[%s10032_s16 + $0x88] sm:$0xff] }
 0x1ce   : > { %v1158_v42 = vadd.f32 %v1108_v49, %v10597_v29  ;;  %v1415_v9 = vpop.f32.mrf.mxu1  ;;  %9032 = vmatmul.mubr.msk.bf16.gmra.mxu1 %vm410_vm2, %v2428_v14  ;;  %8965 = vmatprep.mubr.msk.bf16.mxu0 %vm9951_vm1, %v9950_v2 }
 0x1cf   : > { %v8723_v35 = vpop.f32.mrf.mxu0  ;;  %9035 = vmatprep.mubr.msk.bf16.mxu1 %vm9951_vm1, %v9950_v2 }
 0x1d0   : > { %v10885_v60 = vadd.f32 %v1415_v9, %v1158_v42  ;;  %v8793_v55 = vpop.f32.mrf.mxu1  ;;  %v2403_v42 = vld [vmem:[%s10032_s16 + $0x81] sm:$0xff]  ;;  %v2404_v9 = vld [vmem:[%s10032_s16 + $0x89] sm:$0xff] }
 0x1d1   : > { %v1111_v29 = vpop.f32.mrf.mxu0  ;;  %v2430_v55 = vpack.c.bf16 %v2404_v9, %v2403_v42 }
 0x1d2   : > { %v1159_v48 = vadd.f32 %v1111_v29, %v10601_v51  ;;  %v1418_v20 = vpop.f32.mrf.mxu1  ;;  %v2096_v51 = vld [vmem:[%s10032_s16 + $0x80] sm:$0xff] }
 0x1d3   : > { %v8724_v5 = vpop.f32.mrf.mxu0  ;;  %v2123_v35 = vpack.c.bf16 %v2097_v44, %v2096_v51 }
 0x1d4   : > { %v10888_v4 = vadd.f32 %v1418_v20, %v1159_v48  ;;  %v8794_v33 = vpop.f32.mrf.mxu1 }
 0x1d5   : > { %v1116_v7 = vpop.f32.mrf.mxu0  ;;  %8966 = vmatmul.mubr.msk.bf16.gmra.mxu0 %vm410_vm2, %v2122_v8  ;;  %v2098_v33 = vld [vmem:[%s10032_s16 + $0x90] sm:$0xff] }
 0x1d6   : > { %v1160_v14 = vadd.f32 %v1116_v7, %v10609_v30  ;;  %v1423_v57 = vpop.f32.mrf.mxu1  ;;  %9036 = vmatmul.mubr.msk.bf16.gmra.mxu1 %vm410_vm2, %v2429_v43  ;;  %8969 = vmatprep.mubr.msk.bf16.mxu0 %vm9951_vm1, %v9950_v2  ;;  %v2099_v7 = vld [vmem:[%s10032_s16 + $0x98] sm:$0xff] }
 0x1d7   : > { %v8727_v49 = vpop.f32.mrf.mxu0  ;;  %9039 = vmatprep.mubr.msk.bf16.mxu1 %vm9951_vm1, %v9950_v2  ;;  %v2124_v44 = vpack.c.bf16 %v2099_v7, %v2098_v33 }
 0x1d8   : > { %v10901_v53 = vadd.f32 %v1423_v57, %v1160_v14  ;;  %v8797_v59 = vpop.f32.mrf.mxu1 }
 0x1d9   : > { %v1119_v30 = vpop.f32.mrf.mxu0 }
 0x1da   : > { %v1161_v16 = vadd.f32 %v1119_v30, %v10613_v24  ;;  %v1426_v19 = vpop.f32.mrf.mxu1 }
 0x1db   : > { %v8728_v29 = vpop.f32.mrf.mxu0 }
 0x1dc   : > { %v10904_v8 = vadd.f32 %v1426_v19, %v1161_v16  ;;  %v8798_v48 = vpop.f32.mrf.mxu1  ;;  %v2101_v16 = vld [vmem:[%s10032_s16 + $0xa8] sm:$0xff] }
 0x1dd   : > { %v1124_v20 = vpop.f32.mrf.mxu0  ;;  %8970 = vmatmul.mubr.msk.bf16.gmra.mxu0 %vm410_vm2, %v2123_v35  ;;  %v2100_v35 = vld [vmem:[%s10032_s16 + $0xa0] sm:$0xff] }
 0x1de   : > { %v1162_v43 = vadd.f32 %v1124_v20, %v10621_v37  ;;  %v1431_v5 = vpop.f32.mrf.mxu1  ;;  %9040 = vmatmul.mubr.msk.bf16.gmra.mxu1 %vm410_vm2, %v2430_v55  ;;  %8973 = vmatprep.mubr.msk.bf16.mxu0 %vm9951_vm1, %v9950_v2 }
 0x1df   : > { %v8731_v24 = vpop.f32.mrf.mxu0  ;;  %9043 = vmatprep.mubr.msk.bf16.mxu1 %vm9951_vm1, %v9950_v2 }
 0x1e0   : > { %v10915_v14 = vadd.f32 %v1431_v5, %v1162_v43  ;;  %v8801_v57 = vpop.f32.mrf.mxu1 }
 0x1e1   : > { %v1127_v51 = vpop.f32.mrf.mxu0 }
 0x1e2   : > { %v1434_v37 = vpop.f32.mrf.mxu1  ;;  %v2102_v51 = vld [vmem:[%s10032_s16 + $0xb0] sm:$0xff] }
 0x1e3   : > { %v8732_v49 = vpop.f32.mrf.mxu0 }
 0x1e4   : > { %v8802_v42 = vpop.f32.mrf.mxu1 }
 0x1e5   : > { %v1610_v9 = vpop.f32.mrf.mxu0  ;;  %8974 = vmatmul.mubr.msk.bf16.gmra.mxu0 %vm410_vm2, %v2124_v44  ;;  %v2103_v44 = vld [vmem:[%s10032_s16 + $0xb8] sm:$0xff] }
 0x1e6   : > { %v1744_v59 = vadd.f32 %v1610_v9, %v10636_v63  ;;  %v1917_v30 = vpop.f32.mrf.mxu1  ;;  %9044 = vmatmul.mubr.msk.bf16.gmra.mxu1 %vm410_vm2, %v10638_v34  ;;  %8977 = vmatprep.mubr.msk.bf16.mxu0 %vm9951_vm1, %v9950_v2  ;;  %v2125_v63 = vpack.c.bf16 %v2101_v16, %v2100_v35 }
 0x1e7   : > { %v8807_v19 = vpop.f32.mrf.mxu0  ;;  %9047 = vmatprep.mubr.msk.bf16.mxu1 %vm9951_vm1, %v9950_v2 }
 0x1e8   : > { %v10927_v55 = vadd.f32 %v1917_v30, %v1744_v59  ;;  %v8877_v29 = vpop.f32.mrf.mxu1 }
 0x1e9   : > { %v1613_v48 = vpop.f32.mrf.mxu0 }
 0x1ea   : > { %v1745_v20 = vadd.f32 %v1613_v48, %v10641_v38  ;;  %v1920_v43 = vpop.f32.mrf.mxu1  ;;  %v2104_v48 = vld [vmem:[%s10032_s16 + $0xc0] sm:$0xff] }
 0x1eb   : > { %v8808_v34 = vpop.f32.mrf.mxu0 }
 0x1ec   : > { %v10930_v5 = vadd.f32 %v1920_v43, %v1745_v20  ;;  %v8878_v33 = vpop.f32.mrf.mxu1 }
 0x1ed   : > { %v1618_v7 = vpop.f32.mrf.mxu0  ;;  %8978 = vmatmul.mubr.msk.bf16.gmra.mxu0 %vm410_vm2, %v2125_v63  ;;  %v2105_v63 = vld [vmem:[%s10032_s16 + $0xc8] sm:$0xff] }
 0x1ee   : > { %v1746_v24 = vadd.f32 %v1618_v7, %v10654_v12  ;;  %v1925_v57 = vpop.f32.mrf.mxu1  ;;  %9048 = vmatmul.mubr.msk.bf16.gmra.mxu1 %vm410_vm2, %v10656_v58  ;;  %8981 = vmatprep.mubr.msk.bf16.mxu0 %vm9951_vm1, %v9950_v2  ;;  %v2126_v12 = vpack.c.bf16 %v2103_v44, %v2102_v51 }
 0x1ef   : > { %v8811_v38 = vpop.f32.mrf.mxu0  ;;  %9051 = vmatprep.mubr.msk.bf16.mxu1 %vm9951_vm1, %v9950_v2 }
 0x1f0   : > { %v10942_v37 = vadd.f32 %v1925_v57, %v1746_v24  ;;  %v8881_v49 = vpop.f32.mrf.mxu1 }
 0x1f1   : > { %v1621_v42 = vpop.f32.mrf.mxu0  ;;  %v2106_v49 = vld [vmem:[%s10032_s16 + $0xd0] sm:$0xff] }
 0x1f2   : > { %v1747_v9 = vadd.f32 %v1621_v42, %v10659_v52  ;;  %v1928_v59 = vpop.f32.mrf.mxu1  ;;  %v2107_v42 = vld [vmem:[%s10032_s16 + $0xd8] sm:$0xff] }
 0x1f3   : > { %v8812_v58 = vpop.f32.mrf.mxu0 }
 0x1f4   : > { %v10945_v30 = vadd.f32 %v1928_v59, %v1747_v9  ;;  %v8882_v35 = vpop.f32.mrf.mxu1 }
 0x1f5   : > { %v1626_v16 = vpop.f32.mrf.mxu0  ;;  %8982 = vmatmul.mubr.msk.bf16.gmra.mxu0 %vm410_vm2, %v2126_v12 }
 0x1f6   : > { %v1748_v19 = vadd.f32 %v1626_v16, %v10672_v41  ;;  %v1933_v29 = vpop.f32.mrf.mxu1  ;;  %9052 = vmatmul.mubr.msk.bf16.gmra.mxu1 %vm410_vm2, %v10674_v10  ;;  %8985 = vmatprep.mubr.msk.bf16.mxu0 %vm9951_vm1, %v9950_v2  ;;  %v2127_v41 = vpack.c.bf16 %v2105_v63, %v2104_v48 }
 0x1f7   : > { %v8815_v52 = vpop.f32.mrf.mxu0  ;;  %9055 = vmatprep.mubr.msk.bf16.mxu1 %vm9951_vm1, %v9950_v2 }
 0x1f8   : > { %v10957_v20 = vadd.f32 %v1933_v29, %v1748_v19  ;;  %v8885_v43 = vpop.f32.mrf.mxu1  ;;  %v2108_v52 = vld [vmem:[%s10032_s16 + $0xe0] sm:$0xff] }
 0x1f9   : > { %v1629_v34 = vpop.f32.mrf.mxu0  ;;  %v2109_v43 = vld [vmem:[%s10032_s16 + $0xe8] sm:$0xff] }
 0x1fa   : > { %v1749_v33 = vadd.f32 %v1629_v34, %v10677_v23  ;;  %v1936_v7 = vpop.f32.mrf.mxu1 }
 0x1fb   : > { %v8816_v10 = vpop.f32.mrf.mxu0 }
 0x1fc   : > { %v10960_v24 = vadd.f32 %v1936_v7, %v1749_v33  ;;  %v8886_v57 = vpop.f32.mrf.mxu1 }
 0x1fd   : > { %v1634_v51 = vpop.f32.mrf.mxu0  ;;  %8986 = vmatmul.mubr.msk.bf16.gmra.mxu0 %vm410_vm2, %v2127_v41 }
 0x1fe   : > { %v1750_v44 = vadd.f32 %v1634_v51, %v10690_v0  ;;  %v1941_v38 = vpop.f32.mrf.mxu1  ;;  %9056 = vmatmul.mubr.msk.bf16.gmra.mxu1 %vm410_vm2, %v10692_v31  ;;  %8989 = vmatprep.mubr.msk.bf16.mxu0 %vm9951_vm1, %v9950_v2  ;;  %v2128_v0 = vpack.c.bf16 %v2107_v42, %v2106_v49  ;;  %v2110_v42 = vld [vmem:[%s10032_s16 + $0xf0] sm:$0xff] }
 0x1ff   : > { %v8819_v23 = vpop.f32.mrf.mxu0  ;;  %9059 = vmatprep.mubr.msk.bf16.mxu1 %vm9951_vm1, %v9950_v2 }
 0x200   : > { %v10972_v12 = vadd.f32 %v1941_v38, %v1750_v44  ;;  %v8889_v9 = vpop.f32.mrf.mxu1  ;;  %v2111_v23 = vld [vmem:[%s10032_s16 + $0xf8] sm:$0xff] }
 0x201   : > { %v1637_v59 = vpop.f32.mrf.mxu0 }
 0x202   : > { %v1751_v58 = vadd.f32 %v1637_v59, %v10695_v61  ;;  %v1944_v35 = vpop.f32.mrf.mxu1 }
 0x203   : > { %v8820_v31 = vpop.f32.mrf.mxu0 }
 0x204   : > { %v10975_v16 = vadd.f32 %v1944_v35, %v1751_v58  ;;  %v8890_v19 = vpop.f32.mrf.mxu1 }
 0x205   : > { %v1642_v29 = vpop.f32.mrf.mxu0  ;;  %8990 = vmatmul.mubr.msk.bf16.gmra.mxu0 %vm410_vm2, %v2128_v0 }
 0x206   : > { %v1752_v48 = vadd.f32 %v1642_v29, %v10708_v15  ;;  %v1949_v63 = vpop.f32.mrf.mxu1  ;;  %9060 = vmatmul.mubr.msk.bf16.gmra.mxu1 %vm410_vm2, %v10710_v54  ;;  %8993 = vmatprep.mubr.msk.bf16.mxu0 %vm9951_vm1, %v9950_v2  ;;  %v2129_v15 = vpack.c.bf16 %v2109_v43, %v2108_v52  ;;  %v2112_v52 = vld [vmem:[%s10032_s16 + $0x100] sm:$0xff]  ;;  %v2113_v43 = vld [vmem:[%s10032_s16 + $0x108] sm:$0xff] }
 0x207   : > { %v8823_v61 = vpop.f32.mrf.mxu0  ;;  %9063 = vmatprep.mubr.msk.bf16.mxu1 %vm9951_vm1, %v9950_v2 }
 0x208   : > { %v10987_v34 = vadd.f32 %v1949_v63, %v1752_v48  ;;  %v8893_v41 = vpop.f32.mrf.mxu1 }
 0x209   : > { %v1645_v33 = vpop.f32.mrf.mxu0 }
 0x20a   : > { %v1753_v7 = vadd.f32 %v1645_v33, %v10713_v62  ;;  %v1952_v10 = vpop.f32.mrf.mxu1 }
 0x20b   : > { %v8824_v54 = vpop.f32.mrf.mxu0 }
 0x20c   : > { %v10990_v57 = vadd.f32 %v1952_v10, %v1753_v7  ;;  %v8894_v51 = vpop.f32.mrf.mxu1 }
 0x20d   : > { %v1650_v44 = vpop.f32.mrf.mxu0  ;;  %8994 = vmatmul.mubr.msk.bf16.gmra.mxu0 %vm410_vm2, %v2129_v15 }
 0x20e   : > { %v1754_v38 = vadd.f32 %v1650_v44, %v10726_v39  ;;  %v1957_v49 = vpop.f32.mrf.mxu1  ;;  %9064 = vmatmul.mubr.msk.bf16.gmra.mxu1 %vm410_vm2, %v10728_v13  ;;  %8997 = vmatprep.mubr.msk.bf16.mxu0 %vm9951_vm1, %v9950_v2  ;;  %v2130_v39 = vpack.c.bf16 %v2111_v23, %v2110_v42  ;;  %v2115_v42 = vld [vmem:[%s10032_s16 + $0x118] sm:$0xff] }
 0x20f   : > { %v8827_v62 = vpop.f32.mrf.mxu0  ;;  %9067 = vmatprep.mubr.msk.bf16.mxu1 %vm9951_vm1, %v9950_v2  ;;  %v2422_v23 = vld [vmem:[%s10032_s16 + $0x119] sm:$0xff] }
 0x210   : > { %v11002_v9 = vadd.f32 %v1957_v49, %v1754_v38  ;;  %v8897_v59 = vpop.f32.mrf.mxu1  ;;  %v2114_v49 = vld [vmem:[%s10032_s16 + $0x110] sm:$0xff] }
 0x211   : > { %v1653_v0 = vpop.f32.mrf.mxu0 }
 0x212   : > { %v1755_v58 = vadd.f32 %v1653_v0, %v10731_v18  ;;  %v1960_v35 = vpop.f32.mrf.mxu1 }
 0x213   : > { %v8828_v13 = vpop.f32.mrf.mxu0 }
 0x214   : > { %v11005_v31 = vadd.f32 %v1960_v35, %v1755_v58  ;;  %v8898_v19 = vpop.f32.mrf.mxu1  ;;  %v2439_v58 = vpack.c.bf16 %v2422_v23, %v10778_v11  ;;  %v2423_v11 = vld [vmem:[%s10032_s16 + $0x121] sm:$0xff] }
 0x215   : > { %v1658_v29 = vpop.f32.mrf.mxu0  ;;  %8998 = vmatmul.mubr.msk.bf16.gmra.mxu0 %vm410_vm2, %v2130_v39 }
 0x216   : > { %v1756_v48 = vadd.f32 %v1658_v29, %v10744_v1  ;;  %v1965_v63 = vpop.f32.mrf.mxu1  ;;  %9068 = vmatmul.mubr.msk.bf16.gmra.mxu1 %vm410_vm2, %v10746_v40  ;;  %9001 = vmatprep.mubr.msk.bf16.mxu0 %vm9951_vm1, %v9950_v2  ;;  %v2131_v1 = vpack.c.bf16 %v2113_v43, %v2112_v52  ;;  %v2116_v52 = vld [vmem:[%s10032_s16 + $0x120] sm:$0xff] }
 0x217   : > { %v8831_v18 = vpop.f32.mrf.mxu0  ;;  %9071 = vmatprep.mubr.msk.bf16.mxu1 %vm9951_vm1, %v9950_v2 }
 0x218   : > { %v11017_v61 = vadd.f32 %v1965_v63, %v1756_v48  ;;  %v8901_v41 = vpop.f32.mrf.mxu1 }
 0x219   : > { %v1661_v33 = vpop.f32.mrf.mxu0 }
 0x21a   : > { %v1757_v15 = vadd.f32 %v1661_v33, %v10749_v28  ;;  %v1968_v40 = vpop.f32.mrf.mxu1  ;;  %v2133_v33 = vpack.c.bf16 %v2116_v52, %v2116_v52 }
 0x21b   : > { %v8832_v7 = vpop.f32.mrf.mxu0 }
 0x21c   : > { %v11020_v10 = vadd.f32 %v1968_v40, %v1757_v15  ;;  %v8902_v54 = vpop.f32.mrf.mxu1  ;;  %v2440_v15 = vpack.c.bf16 %v2423_v11, %v2423_v11 }
 0x21d   : > { %v1666_v51 = vpop.f32.mrf.mxu0  ;;  %9002 = vmatmul.mubr.msk.bf16.gmra.mxu0 %vm410_vm2, %v2131_v1 }
 0x21e   : > { %v1758_v44 = vadd.f32 %v1666_v51, %v10763_v27  ;;  %v1973_v38 = vpop.f32.mrf.mxu1  ;;  %9072 = vmatmul.mubr.msk.bf16.gmra.mxu1 %vm410_vm2, %v10765_v6  ;;  %9005 = vmatprep.mubr.msk.bf16.mxu0 %vm9951_vm1, %v9950_v2  ;;  %v2132_v27 = vpack.c.bf16 %v2115_v42, %v2114_v49  ;;  %v2698_v49 = vld [vmem:[%s10032_s16 + $0x22] sm:$0xff]  ;;  %v2699_v42 = vld [vmem:[%s10032_s16 + $0x2a] sm:$0xff] }
 0x21f   : > { %v8835_v28 = vpop.f32.mrf.mxu0  ;;  %9075 = vmatprep.mubr.msk.bf16.mxu1 %vm9951_vm1, %v9950_v2 }
 0x220   : > { %v11033_v62 = vadd.f32 %v1973_v38, %v1758_v44  ;;  %v8905_v59 = vpop.f32.mrf.mxu1 }
 0x221   : > { %v1669_v0 = vpop.f32.mrf.mxu0 }
 0x222   : > { %v1759_v39 = vadd.f32 %v1669_v0, %v10769_v50  ;;  %v1976_v6 = vpop.f32.mrf.mxu1  ;;  %v2731_v0 = vpack.c.bf16 %v2699_v42, %v2698_v49 }
 0x223   : > { %v8836_v35 = vpop.f32.mrf.mxu0 }
 0x224   : > { %v11037_v13 = vadd.f32 %v1976_v6, %v1759_v39  ;;  %v8906_v19 = vpop.f32.mrf.mxu1 }
 0x225   : > { %v1674_v29 = vpop.f32.mrf.mxu0  ;;  %9006 = vmatmul.mubr.msk.bf16.gmra.mxu0 %vm410_vm2, %v2132_v27 }
 0x226   : > { %v1760_v48 = vadd.f32 %v1674_v29, %v10783_v47  ;;  %v1981_v63 = vpop.f32.mrf.mxu1  ;;  %9076 = vmatmul.mubr.msk.bf16.gmra.mxu1 %vm410_vm2, %v2439_v58  ;;  %9009 = vmatprep.mubr.msk.bf16.mxu0 %vm9951_vm1, %v9950_v2 }
 0x227   : > { %v8839_v50 = vpop.f32.mrf.mxu0  ;;  %9079 = vmatprep.mubr.msk.bf16.mxu1 %vm9951_vm1, %v9950_v2 }
 0x228   : > { %v11048_v43 = vadd.f32 %v1981_v63, %v1760_v48  ;;  %v8909_v18 = vpop.f32.mrf.mxu1  ;;  %v2700_v48 = vld [vmem:[%s10032_s16 + $0x32] sm:$0xff]  ;;  %v2701_v63 = vld [vmem:[%s10032_s16 + $0x3a] sm:$0xff] }
 0x229   : > { %v1677_v41 = vpop.f32.mrf.mxu0  ;;  %v2732_v18 = vpack.c.bf16 %v2701_v63, %v2700_v48 }
 0x22a   : > { %v1761_v47 = vadd.f32 %v1677_v41, %v10788_v3  ;;  %v1984_v1 = vpop.f32.mrf.mxu1 }
 0x22b   : > { %v8840_v40 = vpop.f32.mrf.mxu0 }
 0x22c   : > { %v11051_v7 = vadd.f32 %v1984_v1, %v1761_v47  ;;  %v8910_v54 = vpop.f32.mrf.mxu1 }
 0x22d   : > { %v1682_v51 = vpop.f32.mrf.mxu0  ;;  %9010 = vmatmul.mubr.msk.bf16.gmra.mxu0 %vm410_vm2, %v2133_v33 }
 0x22e   : > { %v1762_v44 = vadd.f32 %v1682_v51, %v10801_v36  ;;  %v1989_v38 = vpop.f32.mrf.mxu1  ;;  %9080 = vmatmul.mubr.msk.bf16.gmra.mxu1 %vm410_vm2, %v2440_v15  ;;  %9085 = vmatprep.mubr.msk.bf16.mxu0 %vm9951_vm1, %v9950_v2  ;;  %v2702_v51 = vld [vmem:[%s10032_s16 + $0x42] sm:$0xff] }
 0x22f   : > { %v8843_v3 = vpop.f32.mrf.mxu0 }
 0x230   : > { %v11060_v28 = vadd.f32 %v1989_v38, %v1762_v44  ;;  %v8913_v23 = vpop.f32.mrf.mxu1  ;;  %v2703_v44 = vld [vmem:[%s10032_s16 + $0x4a] sm:$0xff] }
 0x231   : > { %v1685_v59 = vpop.f32.mrf.mxu0  ;;  %v2733_v3 = vpack.c.bf16 %v2703_v44, %v2702_v51 }
 0x232   : > { %v1763_v27 = vadd.f32 %v1685_v59, %v10808_v21  ;;  %v1992_v39 = vpop.f32.mrf.mxu1 }
 0x233   : > { %v8844_v36 = vpop.f32.mrf.mxu0 }
 0x234   : > { %v11063_v6 = vadd.f32 %v1992_v39, %v1763_v27  ;;  %v8914_v58 = vpop.f32.mrf.mxu1 }
 0x235   : > { %v1690_v35 = vpop.f32.mrf.mxu0  ;;  %9086 = vmatmul.mubr.msk.bf16.vlgmr.msra.gmra.mxu0 %vm410_vm2, %v2731_v0 }
 0x236   : > { %v1764_v19 = vadd.f32 %v1690_v35, %v10821_v25  ;;  %v1997_v29 = vpop.f32.mrf.mxu1  ;;  %9089 = vmatprep.mubr.msk.bf16.mxu0 %vm9951_vm1, %v9950_v2 }
 0x237   : > { %v8847_v52 = vpop.f32.mrf.mxu0 }
 0x238   : > { %v11071_v21 = vadd.f32 %v1997_v29, %v1764_v19  ;;  %v8917_v50 = vpop.f32.mrf.mxu1  ;;  %v2705_v19 = vld [vmem:[%s10032_s16 + $0x5a] sm:$0xff] }
 0x239   : > { %v1693_v11 = vpop.f32.mrf.mxu0 }
 0x23a   : > { %v1765_v41 = vadd.f32 %v1693_v11, %v10824_v56  ;;  %v2000_v33 = vpop.f32.mrf.mxu1 }
 0x23b   : > { %v8848_v47 = vpop.f32.mrf.mxu0 }
 0x23c   : > { %v11074_v1 = vadd.f32 %v2000_v33, %v1765_v41  ;;  %v8918_v25 = vpop.f32.mrf.mxu1 }
 0x23d   : > { %v1698_v15 = vpop.f32.mrf.mxu0  ;;  %9090 = vmatmul.mubr.msk.bf16.gmra.mxu0 %vm410_vm2, %v2732_v18 }
 0x23e   : > { %v1766_v40 = vadd.f32 %v1698_v15, %v10837_v22  ;;  %v2005_v54 = vpop.f32.mrf.mxu1  ;;  %9093 = vmatprep.mubr.msk.bf16.mxu0 %vm9951_vm1, %v9950_v2  ;;  %v9778_v22 = vld [vmem:[%s12986_s3 + $0x78] sm:$0xff]  }
 0x23f   : > { %v8851_v38 = vpop.f32.mrf.mxu0  ;;  %9153 = vmatprep.subr.bf16.mxu1 %v9778_v22 }
 0x240   : > { %v11082_v49 = vadd.f32 %v2005_v54, %v1766_v40  ;;  %v8921_v56 = vpop.f32.mrf.mxu1  ;;  %9154 = vmatpush3.bf16.msra.mxu1 %v9778_v22  ;;  %v2706_v40 = vld [vmem:[%s10032_s16 + $0x62] sm:$0xff]  ;;  %v2707_v54 = vld [vmem:[%s10032_s16 + $0x6a] sm:$0xff] }
 0x241   : > { %v1701_v42 = vpop.f32.mrf.mxu0  ;;  %v2735_v56 = vpack.c.bf16 %v2707_v54, %v2706_v40  ;;  %v9779_v22 = vld [vmem:[%s12986_s3 + $0x70] sm:$0xff]  }
 0x242   : > { %v1767_v23 = vadd.f32 %v1701_v42, %v10840_v46  ;;  %v2008_v59 = vpop.f32.mrf.mxu1  ;;  %v2704_v46 = vld [vmem:[%s10032_s16 + $0x52] sm:$0xff]  ;;  %9155 = vmatprep.subr.bf16.mxu1 %v9779_v22 }
 0x243   : > { %v8852_v0 = vpop.f32.mrf.mxu0  ;;  %v2734_v50 = vpack.c.bf16 %v2705_v19, %v2704_v46 }
 0x244   : > { %v11088_v27 = vadd.f32 %v2008_v59, %v1767_v23  ;;  %v8922_v39 = vpop.f32.mrf.mxu1  ;;  %9156 = vmatpush3.bf16.msra.mxu1 %v9779_v22 }
 0x245   : > { %v1706_v36 = vpop.f32.mrf.mxu0  ;;  %9094 = vmatmul.mubr.msk.bf16.gmra.mxu0 %vm410_vm2, %v2733_v3 }
 0x246   : > { %v1768_v58 = vadd.f32 %v1706_v36, %v10853_v17  ;;  %v2013_v35 = vpop.f32.mrf.mxu1  ;;  %9097 = vmatprep.mubr.msk.bf16.mxu0 %vm9951_vm1, %v9950_v2 }
 0x247   : > { %v8855_v29 = vpop.f32.mrf.mxu0 }
 0x248   : > { %v11096_v48 = vadd.f32 %v2013_v35, %v1768_v58  ;;  %v8925_v63 = vpop.f32.mrf.mxu1  ;;  %v2708_v58 = vld [vmem:[%s10032_s16 + $0x72] sm:$0xff] }
 0x249   : > { %v1709_v52 = vpop.f32.mrf.mxu0 }
 0x24a   : > { %v1769_v11 = vadd.f32 %v1709_v52, %v10856_v32  ;;  %v2016_v18 = vpop.f32.mrf.mxu1 }
 0x24b   : > { %v8856_v41 = vpop.f32.mrf.mxu0 }
 0x24c   : > { %v11099_v33 = vadd.f32 %v2016_v18, %v1769_v11  ;;  %v8926_v17 = vpop.f32.mrf.mxu1 }
 0x24d   : > { %v1714_v47 = vpop.f32.mrf.mxu0  ;;  %9098 = vmatmul.mubr.msk.bf16.gmra.mxu0 %vm410_vm2, %v2734_v50 }
 0x24e   : > { %v1770_v25 = vadd.f32 %v1714_v47, %v10869_v26  ;;  %v2021_v15 = vpop.f32.mrf.mxu1  ;;  %9101 = vmatprep.mubr.msk.bf16.mxu0 %vm9951_vm1, %v9950_v2 }
 0x24f   : > { %v8859_v51 = vpop.f32.mrf.mxu0 }
 0x250   : > { %v11107_v44 = vadd.f32 %v2021_v15, %v1770_v25  ;;  %v8929_v32 = vpop.f32.mrf.mxu1  ;;  %v2710_v25 = vld [vmem:[%s10032_s16 + $0x82] sm:$0xff]  ;;  %v2711_v15 = vld [vmem:[%s10032_s16 + $0x8a] sm:$0xff] }
 0x251   : > { %v1717_v38 = vpop.f32.mrf.mxu0  ;;  %v2737_v32 = vpack.c.bf16 %v2711_v15, %v2710_v25 }
 0x252   : > { %v1771_v42 = vadd.f32 %v1717_v38, %v10872_v45  ;;  %v2024_v3 = vpop.f32.mrf.mxu1  ;;  %v2709_v45 = vld [vmem:[%s10032_s16 + $0x7a] sm:$0xff] }
 0x253   : > { %v8860_v23 = vpop.f32.mrf.mxu0  ;;  %v2736_v63 = vpack.c.bf16 %v2709_v45, %v2708_v58 }
 0x254   : > { %v11110_v59 = vadd.f32 %v2024_v3, %v1771_v42  ;;  %v8930_v26 = vpop.f32.mrf.mxu1  ;;  %v9780_v23 = vld [vmem:[%s12986_s3 + $0x68] sm:$0xff]  }
 0x255   : > { %v1722_v0 = vpop.f32.mrf.mxu0  ;;  %9102 = vmatmul.mubr.msk.bf16.gmra.mxu0 %vm410_vm2, %v2735_v56  ;;  %9157 = vmatprep.subr.bf16.mxu1 %v9780_v23 }
 0x256   : > { %v1772_v39 = vadd.f32 %v1722_v0, %v10885_v60  ;;  %v2029_v36 = vpop.f32.mrf.mxu1  ;;  %9105 = vmatprep.mubr.msk.bf16.mxu0 %vm9951_vm1, %v9950_v2  ;;  %9158 = vmatpush3.bf16.msra.mxu1 %v9780_v23 }
 0x257   : > { %v8863_v35 = vpop.f32.mrf.mxu0 }
 0x258   : > { %v11121_v46 = vadd.f32 %v2029_v36, %v1772_v39  ;;  %v8933_v19 = vpop.f32.mrf.mxu1  ;;  %v2712_v39 = vld [vmem:[%s10032_s16 + $0x92] sm:$0xff] }
 0x259   : > { %v1725_v29 = vpop.f32.mrf.mxu0 }
 0x25a   : > { %v1773_v52 = vadd.f32 %v1725_v29, %v10888_v4  ;;  %v2032_v50 = vpop.f32.mrf.mxu1 }
 0x25b   : > { %v8864_v60 = vpop.f32.mrf.mxu0 }
 0x25c   : > { %v11124_v11 = vadd.f32 %v2032_v50, %v1773_v52  ;;  %v8934_v18 = vpop.f32.mrf.mxu1 }
 0x25d   : > { %v1730_v41 = vpop.f32.mrf.mxu0  ;;  %9106 = vmatmul.mubr.msk.bf16.gmra.mxu0 %vm410_vm2, %v2736_v63  ;;  %v2714_v18 = vld [vmem:[%s10032_s16 + $0xa2] sm:$0xff] }
 0x25e   : > { %v1774_v17 = vadd.f32 %v1730_v41, %v10901_v53  ;;  %v2037_v47 = vpop.f32.mrf.mxu1  ;;  %9109 = vmatprep.mubr.msk.bf16.mxu0 %vm9951_vm1, %v9950_v2  ;;  %v2715_v41 = vld [vmem:[%s10032_s16 + $0xaa] sm:$0xff] }
 0x25f   : > { %v8867_v40 = vpop.f32.mrf.mxu0 }
 0x260   : > { %v11132_v54 = vadd.f32 %v2037_v47, %v1774_v17  ;;  %v8937_v4 = vpop.f32.mrf.mxu1  ;;  %v2739_v40 = vpack.c.bf16 %v2715_v41, %v2714_v18  ;;  %v2718_v41 = vld [vmem:[%s10032_s16 + $0xc2] sm:$0xff] }
 0x261   : > { %v1733_v51 = vpop.f32.mrf.mxu0  ;;  %v9782_v4 = vld [vmem:[%s12986_s3 + $0xf8] sm:$0xff]  }
 0x262   : > { %v1775_v38 = vadd.f32 %v1733_v51, %v10904_v8  ;;  %v2040_v56 = vpop.f32.mrf.mxu1  ;;  %v2713_v8 = vld [vmem:[%s10032_s16 + $0x9a] sm:$0xff]  ;;  %9285 = vmatprep.subr.bf16.mxu0 %v9782_v4 }
 0x263   : > { %v8868_v42 = vpop.f32.mrf.mxu0  ;;  %v2738_v19 = vpack.c.bf16 %v2713_v8, %v2712_v39  ;;  %9286 = vmatpush3.bf16.msra.mxu0 %v9782_v4 }
 0x264   : > { %v11135_v3 = vadd.f32 %v2040_v56, %v1775_v38  ;;  %v8938_v53 = vpop.f32.mrf.mxu1 }
 0x265   : > { %v1738_v26 = vpop.f32.mrf.mxu0  ;;  %9110 = vmatmul.mubr.msk.bf16.gmra.mxu0 %vm410_vm2, %v2737_v32  ;;  %v9783_v53 = vld [vmem:[%s12986_s3 + $0xf0] sm:$0xff]  }
 0x266   : > { %v1776_v22 = vadd.f32 %v1738_v26, %v10915_v14  ;;  %v2045_v0 = vpop.f32.mrf.mxu1  ;;  %9113 = vmatprep.mubr.msk.bf16.mxu0 %vm9951_vm1, %v9950_v2  ;;  %9287 = vmatprep.subr.bf16.mxu0 %v9783_v53 }
 0x267   : > { %v8871_v36 = vpop.f32.mrf.mxu0  ;;  %9288 = vmatpush3.bf16.msra.mxu0 %v9783_v53 }
 0x268   : > { %v11146_v58 = vadd.f32 %v2045_v0, %v1776_v22  ;;  %v8941_v45 = vpop.f32.mrf.mxu1  ;;  %v2717_v22 = vld [vmem:[%s10032_s16 + $0xba] sm:$0xff] }
 0x269   : > { %v1741_v35 = vpop.f32.mrf.mxu0 }
 0x26a   : > { %v2048_v29 = vpop.f32.mrf.mxu1  ;;  %v9784_v35 = vld [vmem:[%s12986_s3 + $0xe8] sm:$0xff]  }
 0x26b   : > { %v8872_v63 = vpop.f32.mrf.mxu0  ;;  %9289 = vmatprep.subr.bf16.mxu0 %v9784_v35 }
 0x26c   : > { %v8942_v52 = vpop.f32.mrf.mxu1  ;;  %9290 = vmatpush3.bf16.msra.mxu0 %v9784_v35 }
 0x26d   : > { %v2224_v14 = vpop.f32.mrf.mxu0  ;;  %9114 = vmatmul.mubr.msk.bf16.gmra.mxu0 %vm410_vm2, %v2738_v19 }
 0x26e   : > { %v2358_v50 = vadd.f32 %v2224_v14, %v10927_v55  ;;  %v2531_v60 = vpop.f32.mrf.mxu1  ;;  %9117 = vmatprep.mubr.msk.bf16.mxu0 %vm9951_vm1, %v9950_v2  ;;  %v9781_v14 = vld [vmem:[%s12986_s3 + $0x60] sm:$0xff]  }
 0x26f   : > { %v8947_v17 = vpop.f32.mrf.mxu0  ;;  %9159 = vmatprep.subr.bf16.mxu1 %v9781_v14 }
 0x270   : > { %v11154_v47 = vadd.f32 %v2531_v60, %v2358_v50  ;;  %v9017_v25 = vpop.f32.mrf.mxu1  ;;  %v9786_v60 = vld [vmem:[%s12986_s3 + $0xe0] sm:$0xff]   ;;  %v2719_v17 = vld [vmem:[%s10032_s16 + $0xca] sm:$0xff]  ;;  %9160 = vmatpush3.bf16.msra.mxu1 %v9781_v14 }
 0x271   : > { %v2227_v15 = vpop.f32.mrf.mxu0  ;;  %9291 = vmatprep.subr.bf16.mxu0 %v9786_v60 }
 0x272   : > { %v2359_v55 = vadd.f32 %v2227_v15, %v10930_v5  ;;  %v2534_v51 = vpop.f32.mrf.mxu1  ;;  %v2716_v5 = vld [vmem:[%s10032_s16 + $0xb2] sm:$0xff]  ;;  %9292 = vmatpush3.bf16.msra.mxu0 %v9786_v60 }
 0x273   : > { %v8948_v32 = vpop.f32.mrf.mxu0  ;;  %v2740_v45 = vpack.c.bf16 %v2717_v22, %v2716_v5  ;;  %v9790_v5 = vld [vmem:[%s12986_s3 + $0xd0] sm:$0xff]  }
 0x274   : > { %v11160_v38 = vadd.f32 %v2534_v51, %v2359_v55  ;;  %v9018_v56 = vpop.f32.mrf.mxu1  ;;  %v2741_v55 = vpack.c.bf16 %v2719_v17, %v2718_v41  ;;  %v9789_v41 = vld [vmem:[%s12986_s3 + $0x48] sm:$0xff]  }
 0x275   : > { %v2232_v42 = vpop.f32.mrf.mxu0  ;;  %9118 = vmatmul.mubr.msk.bf16.gmra.mxu0 %vm410_vm2, %v2739_v40 }
 0x276   : > { %v2360_v23 = vadd.f32 %v2232_v42, %v10942_v37  ;;  %v2539_v26 = vpop.f32.mrf.mxu1  ;;  %9121 = vmatprep.mubr.msk.bf16.mxu0 %vm9951_vm1, %v9950_v2 }
 0x277   : > { %v8951_v0 = vpop.f32.mrf.mxu0 }
 0x278   : > { %v11171_v39 = vadd.f32 %v2539_v26, %v2360_v23  ;;  %v9021_v8 = vpop.f32.mrf.mxu1  ;;  %v9785_v26 = vld [vmem:[%s12986_s3 + $0x58] sm:$0xff]  }
 0x279   : > { %v2235_v36 = vpop.f32.mrf.mxu0  ;;  %v2720_v0 = vld [vmem:[%s10032_s16 + $0xd2] sm:$0xff]  ;;  %v2721_v8 = vld [vmem:[%s10032_s16 + $0xda] sm:$0xff]  ;;  %9161 = vmatprep.subr.bf16.mxu1 %v9785_v26 }
 0x27a   : > { %v2361_v37 = vadd.f32 %v2235_v36, %v10945_v30  ;;  %v2542_v19 = vpop.f32.mrf.mxu1  ;;  %9162 = vmatpush3.bf16.msra.mxu1 %v9785_v26 }
 0x27b   : > { %v8952_v29 = vpop.f32.mrf.mxu0 }
 0x27c   : > { %v11177_v63 = vadd.f32 %v2542_v19, %v2361_v37  ;;  %v9022_v52 = vpop.f32.mrf.mxu1  ;;  %v2742_v19 = vpack.c.bf16 %v2721_v8, %v2720_v0  ;;  %v9792_v29 = vld [vmem:[%s12986_s3 + $0xc8] sm:$0xff]  }
 0x27d   : > { %v2240_v50 = vpop.f32.mrf.mxu0  ;;  %9122 = vmatmul.mubr.msk.bf16.gmra.mxu0 %vm410_vm2, %v2740_v45 }
 0x27e   : > { %v2362_v30 = vadd.f32 %v2240_v50, %v10957_v20  ;;  %v2547_v18 = vpop.f32.mrf.mxu1  ;;  %9125 = vmatprep.mubr.msk.bf16.mxu0 %vm9951_vm1, %v9950_v2  ;;  %v9788_v20 = vld [vmem:[%s12986_s3 + $0xd8] sm:$0xff]  }
 0x27f   : > { %v8955_v25 = vpop.f32.mrf.mxu0  ;;  %9293 = vmatprep.subr.bf16.mxu0 %v9788_v20 }
 0x280   : > { %v11191_v15 = vadd.f32 %v2547_v18, %v2362_v30  ;;  %v9025_v40 = vpop.f32.mrf.mxu1  ;;  %9294 = vmatpush3.bf16.msra.mxu0 %v9788_v20 }
 0x281   : > { %v2243_v4 = vpop.f32.mrf.mxu0  ;;  %9295 = vmatprep.subr.bf16.mxu0 %v9790_v5  ;;  %v2722_v40 = vld [vmem:[%s10032_s16 + $0xe2] sm:$0xff] }
 0x282   : > { %v2363_v51 = vadd.f32 %v2243_v4, %v10960_v24  ;;  %v2550_v32 = vpop.f32.mrf.mxu1  ;;  %v2723_v4 = vld [vmem:[%s10032_s16 + $0xea] sm:$0xff] }
 0x283   : > { %v8956_v56 = vpop.f32.mrf.mxu0 }
 0x284   : > { %v11197_v42 = vadd.f32 %v2550_v32, %v2363_v51  ;;  %v9026_v53 = vpop.f32.mrf.mxu1  ;;  %9296 = vmatpush3.bf16.msra.mxu0 %v9790_v5  ;;  %v2743_v56 = vpack.c.bf16 %v2723_v4, %v2722_v40 }
 0x285   : > { %v2248_v23 = vpop.f32.mrf.mxu0  ;;  %9126 = vmatmul.mubr.msk.bf16.gmra.mxu0 %vm410_vm2, %v2741_v55  ;;  %9297 = vmatprep.subr.bf16.mxu0 %v9792_v29 }
 0x286   : > { %v2364_v24 = vadd.f32 %v2248_v23, %v10972_v12  ;;  %v2555_v22 = vpop.f32.mrf.mxu1  ;;  %9129 = vmatprep.mubr.msk.bf16.mxu0 %vm9951_vm1, %v9950_v2  ;;  %v9787_v12 = vld [vmem:[%s12986_s3 + $0x50] sm:$0xff]  }
 0x287   : > { %v8959_v36 = vpop.f32.mrf.mxu0  ;;  %9163 = vmatprep.subr.bf16.mxu1 %v9787_v12 }
 0x288   : > { %v11211_v45 = vadd.f32 %v2555_v22, %v2364_v24  ;;  %v9029_v35 = vpop.f32.mrf.mxu1  ;;  %9164 = vmatpush3.bf16.msra.mxu1 %v9787_v12  ;;  %9298 = vmatpush3.bf16.msra.mxu0 %v9792_v29  ;;  %v2724_v36 = vld [vmem:[%s10032_s16 + $0xf2] sm:$0xff] }
 0x289   : > { %v2251_v37 = vpop.f32.mrf.mxu0  ;;  %9165 = vmatprep.subr.bf16.mxu1 %v9789_v41  ;;  %v2725_v35 = vld [vmem:[%s10032_s16 + $0xfa] sm:$0xff] }
 0x28a   : > { %v2365_v52 = vadd.f32 %v2251_v37, %v10975_v16  ;;  %v2558_v14 = vpop.f32.mrf.mxu1  ;;  %v9793_v16 = vld [vmem:[%s12986_s3 + $0xc0] sm:$0xff]   ;;  %v2744_v29 = vpack.c.bf16 %v2725_v35, %v2724_v36 }
 0x28b   : > { %v8960_v50 = vpop.f32.mrf.mxu0  ;;  %9299 = vmatprep.subr.bf16.mxu0 %v9793_v16 }
 0x28c   : > { %v11220_v60 = vadd.f32 %v2558_v14, %v2365_v52  ;;  %v9030_v30 = vpop.f32.mrf.mxu1  ;;  %9166 = vmatpush3.bf16.msra.mxu1 %v9789_v41  ;;  %9300 = vmatpush3.bf16.msra.mxu0 %v9793_v16 }
 0x28d   : > { %v2256_v18 = vpop.f32.mrf.mxu0  ;;  %9130 = vmatmul.mubr.msk.bf16.gmra.mxu0 %vm410_vm2, %v2742_v19 }
 0x28e   : > { %v2366_v17 = vadd.f32 %v2256_v18, %v10987_v34  ;;  %v2563_v25 = vpop.f32.mrf.mxu1  ;;  %9133 = vmatprep.mubr.msk.bf16.mxu0 %vm9951_vm1, %v9950_v2  ;;  %v9791_v34 = vld [vmem:[%s12986_s3 + $0x40] sm:$0xff]  }
 0x28f   : > { %v8963_v55 = vpop.f32.mrf.mxu0  ;;  %9167 = vmatprep.subr.bf16.mxu1 %v9791_v34 }
 0x290   : > { %v11234_v20 = vadd.f32 %v2563_v25, %v2366_v17  ;;  %v9033_v51 = vpop.f32.mrf.mxu1  ;;  %9168 = vmatpush3.bf16.msra.mxu1 %v9791_v34  ;;  %v2726_v17 = vld [vmem:[%s10032_s16 + $0x102] sm:$0xff]  ;;  %v2727_v25 = vld [vmem:[%s10032_s16 + $0x10a] sm:$0xff] }
 0x291   : > { %v2259_v32 = vpop.f32.mrf.mxu0  ;;  %v2745_v51 = vpack.c.bf16 %v2727_v25, %v2726_v17 }
 0x292   : > { %v2367_v53 = vadd.f32 %v2259_v32, %v10990_v57  ;;  %v2566_v23 = vpop.f32.mrf.mxu1 }
 0x293   : > { %v8964_v26 = vpop.f32.mrf.mxu0 }
 0x294   : > { %v11240_v5 = vadd.f32 %v2566_v23, %v2367_v53  ;;  %v9034_v24 = vpop.f32.mrf.mxu1 }
 0x295   : > { %v2264_v22 = vpop.f32.mrf.mxu0  ;;  %9134 = vmatmul.mubr.msk.bf16.gmra.mxu0 %vm410_vm2, %v2743_v56 }
 0x296   : > { %v2368_v0 = vadd.f32 %v2264_v22, %v11002_v9  ;;  %v2571_v8 = vpop.f32.mrf.mxu1  ;;  %9137 = vmatprep.mubr.msk.bf16.mxu0 %vm9951_vm1, %v9950_v2  ;;  %v2728_v22 = vld [vmem:[%s10032_s16 + $0x112] sm:$0xff] }
 0x297   : > { %v8967_v57 = vpop.f32.mrf.mxu0 }
 0x298   : > { %v11248_v37 = vadd.f32 %v2571_v8, %v2368_v0  ;;  %v9037_v19 = vpop.f32.mrf.mxu1  ;;  %v2729_v0 = vld [vmem:[%s10032_s16 + $0x11a] sm:$0xff] }
 0x299   : > { %v2267_v12 = vpop.f32.mrf.mxu0  ;;  %v2746_v57 = vpack.c.bf16 %v2729_v0, %v2728_v22 }
 0x29a   : > { %v2369_v52 = vadd.f32 %v2267_v12, %v11005_v31  ;;  %v2574_v14 = vpop.f32.mrf.mxu1 }
 0x29b   : > { %v8968_v50 = vpop.f32.mrf.mxu0 }
 0x29c   : > { %v11251_v30 = vadd.f32 %v2574_v14, %v2369_v52  ;;  %v9038_v9 = vpop.f32.mrf.mxu1 }
 0x29d   : > { %v2272_v18 = vpop.f32.mrf.mxu0  ;;  %9138 = vmatmul.mubr.msk.bf16.gmra.mxu0 %vm410_vm2, %v2744_v29 }
 0x29e   : > { %v2370_v41 = vadd.f32 %v2272_v18, %v11017_v61  ;;  %v2579_v16 = vpop.f32.mrf.mxu1  ;;  %9141 = vmatprep.mubr.msk.bf16.mxu0 %vm9951_vm1, %v9950_v2  ;;  %v2730_v18 = vld [vmem:[%s10032_s16 + $0x122] sm:$0xff] }
 0x29f   : > { %v8971_v40 = vpop.f32.mrf.mxu0  ;;  %v2747_v25 = vpack.c.bf16 %v2730_v18, %v2730_v18 }
 0x2a0   : > { %v11259_v31 = vadd.f32 %v2579_v16, %v2370_v41  ;;  %v9041_v4 = vpop.f32.mrf.mxu1 }
 0x2a1   : > { %v2275_v55 = vpop.f32.mrf.mxu0 }
 0x2a2   : > { %v2371_v32 = vadd.f32 %v2275_v55, %v11020_v10  ;;  %v2582_v56 = vpop.f32.mrf.mxu1 }
 0x2a3   : > { %v8972_v34 = vpop.f32.mrf.mxu0 }
 0x2a4   : > { %v11262_v53 = vadd.f32 %v2582_v56, %v2371_v32  ;;  %v9042_v61 = vpop.f32.mrf.mxu1 }
 0x2a5   : > { %v2280_v23 = vpop.f32.mrf.mxu0  ;;  %9142 = vmatmul.mubr.msk.bf16.gmra.mxu0 %vm410_vm2, %v2745_v51 }
 0x2a6   : > { %v2372_v26 = vadd.f32 %v2280_v23, %v11033_v62  ;;  %v2587_v24 = vpop.f32.mrf.mxu1  ;;  %9145 = vmatprep.mubr.msk.bf16.mxu0 %vm9951_vm1, %v9950_v2 }
 0x2a7   : > { %v8975_v8 = vpop.f32.mrf.mxu0 }
 0x2a8   : > { %v11270_v36 = vadd.f32 %v2587_v24, %v2372_v26  ;;  %v9045_v10 = vpop.f32.mrf.mxu1 }
 0x2a9   : > { %v2283_v35 = vpop.f32.mrf.mxu0 }
 0x2aa   : > { %v2373_v19 = vadd.f32 %v2283_v35, %v11037_v13  ;;  %v2590_v12 = vpop.f32.mrf.mxu1 }
 0x2ab   : > { %v8976_v29 = vpop.f32.mrf.mxu0 }
 0x2ac   : > { %v11273_v52 = vadd.f32 %v2590_v12, %v2373_v19  ;;  %v9046_v62 = vpop.f32.mrf.mxu1 }
 0x2ad   : > { %v2288_v14 = vpop.f32.mrf.mxu0  ;;  %9146 = vmatmul.mubr.msk.bf16.gmra.mxu0 %vm410_vm2, %v2746_v57 }
 0x2ae   : > { %v2374_v50 = vadd.f32 %v2288_v14, %v11048_v43  ;;  %v2595_v9 = vpop.f32.mrf.mxu1  ;;  %9149 = vmatprep.mubr.msk.bf16.mxu0 %vm9951_vm1, %v9950_v2 }
 0x2af   : > { %v8979_v41 = vpop.f32.mrf.mxu0 }
 0x2b0   : > { %v11280_v16 = vadd.f32 %v2595_v9, %v2374_v50  ;;  %v9049_v17 = vpop.f32.mrf.mxu1 }
 0x2b1   : > { %v2291_v13 = vpop.f32.mrf.mxu0 }
 0x2b2   : > { %v2375_v40 = vadd.f32 %v2291_v13, %v11051_v7  ;;  %v2598_v4 = vpop.f32.mrf.mxu1 }
 0x2b3   : > { %v8980_v55 = vpop.f32.mrf.mxu0 }
 0x2b4   : > { %v11283_v51 = vadd.f32 %v2598_v4, %v2375_v40  ;;  %v9050_v32 = vpop.f32.mrf.mxu1 }
 0x2b5   : > { %v2296_v56 = vpop.f32.mrf.mxu0  ;;  %9150 = vmatmul.mubr.msk.bf16.gmra.mxu0 %vm410_vm2, %v2747_v25 }
 0x2b6   : > { %v2376_v43 = vadd.f32 %v2296_v56, %v11060_v28  ;;  %v2603_v2 = vpop.f32.mrf.mxu1 }
 0x2b7   : > { %v8983_v34 = vpop.f32.mrf.mxu0 }
 0x2b8   : > { %v11287_v61 = vadd.f32 %v2603_v2, %v2376_v43  ;;  %v9053_v23 = vpop.f32.mrf.mxu1 }
 0x2b9   : > { %v2299_v26 = vpop.f32.mrf.mxu0 }
 0x2ba   : > { %v2377_v24 = vadd.f32 %v2299_v26, %v11063_v6  ;;  %v2606_v22 = vpop.f32.mrf.mxu1 }
 0x2bb   : > { %v8984_v7 = vpop.f32.mrf.mxu0 }
 0x2bc   : > { %v11290_v0 = vadd.f32 %v2606_v22, %v2377_v24  ;;  %v9054_v8 = vpop.f32.mrf.mxu1  ;;  %v11310_v24 = vld [vmem:[%s12986_s3 + $0x38] sm:$0xff]  }
 0x2bd   : > { %v2304_v10 = vpop.f32.mrf.mxu0  ;;  %9197 = vmatprep.subr.bf16.mxu1 %v11310_v24 }
 0x2be   : > { %v2378_v35 = vadd.f32 %v2304_v10, %v11071_v21  ;;  %v2611_v57 = vpop.f32.mrf.mxu1 }
 0x2bf   : > { %v8987_v19 = vpop.f32.mrf.mxu0 }
 0x2c0   : > { %v11293_v12 = vadd.f32 %v2611_v57, %v2378_v35  ;;  %v9057_v28 = vpop.f32.mrf.mxu1 }
 0x2c1   : > { %v2307_v29 = vpop.f32.mrf.mxu0 }
 0x2c2   : > { %v2379_v62 = vadd.f32 %v2307_v29, %v11074_v1  ;;  %v2614_v14 = vpop.f32.mrf.mxu1 }
 0x2c3   : > { %v8988_v50 = vpop.f32.mrf.mxu0 }
 0x2c4   : > { %v11296_v9 = vadd.f32 %v2614_v14, %v2379_v62  ;;  %v9058_v6 = vpop.f32.mrf.mxu1 }
 0x2c5   : > { %v2312_v18 = vpop.f32.mrf.mxu0 }
 0x2c6   : > { %v2380_v41 = vadd.f32 %v2312_v18, %v11082_v49  ;;  %v2619_v17 = vpop.f32.mrf.mxu1 }
 0x2c7   : > { %v8991_v13 = vpop.f32.mrf.mxu0 }
 0x2c8   : > { %v11299_v25 = vadd.f32 %v2619_v17, %v2380_v41  ;;  %v9061_v21 = vpop.f32.mrf.mxu1 }
 0x2c9   : > { %v2315_v40 = vpop.f32.mrf.mxu0 }
 0x2ca   : > { %v2381_v4 = vadd.f32 %v2315_v40, %v11088_v27  ;;  %v2622_v55 = vpop.f32.mrf.mxu1 }
 0x2cb   : > { %v8992_v32 = vpop.f32.mrf.mxu0 }
 0x2cc   : > { %v11302_v56 = vadd.f32 %v2622_v55, %v2381_v4  ;;  %v9062_v1 = vpop.f32.mrf.mxu1 }
 0x2cd   : > { %v2320_v43 = vpop.f32.mrf.mxu0 }
 0x2ce   : > { %v2382_v2 = vadd.f32 %v2320_v43, %v11096_v48  ;;  %v2627_v34 = vpop.f32.mrf.mxu1 }
 0x2cf   : > { %v8995_v23 = vpop.f32.mrf.mxu0 }
 0x2d0   : > { %v11305_v26 = vadd.f32 %v2627_v34, %v2382_v2  ;;  %v9065_v49 = vpop.f32.mrf.mxu1 }
 0x2d1   : > { %v2323_v22 = vpop.f32.mrf.mxu0 }
 0x2d2   : > { %v2383_v27 = vadd.f32 %v2323_v22, %v11099_v33  ;;  %v2630_v7 = vpop.f32.mrf.mxu1  ;;  %v11322_v33 = vld [vmem:[%s12986_s3 + $0x178] sm:$0xff]  }
 0x2d3   : > { %v8996_v8 = vpop.f32.mrf.mxu0  ;;  %9373 = vmatprep.subr.bf16.mxu0 %v11322_v33 }
 0x2d4   : > { %v11314_v10 = vadd.f32 %v2630_v7, %v2383_v27  ;;  %v9066_v48 = vpop.f32.mrf.mxu1 }
 0x2d5   : > { %v2328_v35 = vpop.f32.mrf.mxu0 }
 0x2d6   : > { %v2384_v57 = vadd.f32 %v2328_v35, %v11107_v44  ;;  %v2635_v19 = vpop.f32.mrf.mxu1 }
 0x2d7   : > { %v8999_v28 = vpop.f32.mrf.mxu0 }
 0x2d8   : > { %v11317_v29 = vadd.f32 %v2635_v19, %v2384_v57  ;;  %v9069_v62 = vpop.f32.mrf.mxu1 }
 0x2d9   : > { %v2331_v14 = vpop.f32.mrf.mxu0 }
 0x2da   : > { %v2385_v50 = vadd.f32 %v2331_v14, %v11110_v59  ;;  %v2638_v6 = vpop.f32.mrf.mxu1 }
 0x2db   : > { %v9000_v18 = vpop.f32.mrf.mxu0 }
 0x2dc   : > { %v11326_v41 = vadd.f32 %v2638_v6, %v2385_v50  ;;  %v9070_v44 = vpop.f32.mrf.mxu1 }
 0x2dd   : > { %v2336_v17 = vpop.f32.mrf.mxu0 }
 0x2de   : > { %v2386_v13 = vadd.f32 %v2336_v17, %v11121_v46  ;;  %v2643_v21 = vpop.f32.mrf.mxu1 }
 0x2df   : > { %v9003_v40 = vpop.f32.mrf.mxu0 }
 0x2e0   : > { %v11329_v4 = vadd.f32 %v2643_v21, %v2386_v13  ;;  %v9073_v55 = vpop.f32.mrf.mxu1 }
 0x2e1   : > { %v2339_v32 = vpop.f32.mrf.mxu0 }
 0x2e2   : > { %v2387_v1 = vadd.f32 %v2339_v32, %v11124_v11  ;;  %v2646_v43 = vpop.f32.mrf.mxu1 }
 0x2e3   : > { %v9004_v59 = vpop.f32.mrf.mxu0 }
 0x2e4   : > { %v11332_v2 = vadd.f32 %v2646_v43, %v2387_v1  ;;  %v9074_v34 = vpop.f32.mrf.mxu1 }
 0x2e5   : > { %v2344_v23 = vpop.f32.mrf.mxu0 }
 0x2e6   : > { %v2388_v49 = vadd.f32 %v2344_v23, %v11132_v54  ;;  %v2651_v22 = vpop.f32.mrf.mxu1 }
 0x2e7   : > { %v9007_v27 = vpop.f32.mrf.mxu0 }
 0x2e8   : > { %v11335_v7 = vadd.f32 %v2651_v22, %v2388_v49  ;;  %v9077_v46 = vpop.f32.mrf.mxu1 }
 0x2e9   : > { %v2347_v8 = vpop.f32.mrf.mxu0 }
 0x2ea   : > { %v2389_v48 = vadd.f32 %v2347_v8, %v11135_v3  ;;  %v2654_v35 = vpop.f32.mrf.mxu1  ;;  %v11346_v3 = vld [vmem:[%s12985_s2] ss:$0 sm:$0xff] }
 0x2eb   : > { %v9008_v57 = vpop.f32.mrf.mxu0 }
 0x2ec   : > { %v11338_v19 = vadd.f32 %v2654_v35, %v2389_v48  ;;  %v9078_v11 = vpop.f32.mrf.mxu1 }
 0x2ed   : > { %v2352_v28 = vpop.f32.mrf.mxu0 }
 0x2ee   : > { %v2390_v62 = vadd.f32 %v2352_v28, %v11146_v58  ;;  %v2659_v14 = vpop.f32.mrf.mxu1 }
 0x2ef   : > { %v9011_v50 = vpop.f32.mrf.mxu0 }
 0x2f0   : > { %v11341_v6 = vadd.f32 %v2659_v14, %v2390_v62  ;;  %v9081_v54 = vpop.f32.mrf.mxu1 }
 0x2f1   : > { %v2355_v18 = vpop.f32.mrf.mxu0 }
 0x2f2   : > { %v2662_v44 = vpop.f32.mrf.mxu1 }
 0x2f3   : > { %v9012_v17 = vpop.f32.mrf.mxu0 }
 0x2f4   : > { %v9082_v13 = vpop.f32.mrf.mxu1 }
 0x2f5   : > { %v2838_v21 = vpop.f32.mrf.mxu0 }
 0x2f6   : > { %v2972_v40 = vadd.f32 %v2838_v21, %v11154_v47 }
 0x2f7   : > { %v9087_v55 = vpop.f32.mrf.mxu0 }
 0x2f8   : > { %v3012_v58 = vadd.f32 %v11346_v3, %v2972_v40 }
 0x2f9   : > { %v2841_v32 = vpop.f32.mrf.mxu0 }
 0x2fa   : > { %v3045_v1 = vmax.f32 %v3012_v58, 0.0  ;;  %v2973_v43 = vadd.f32 %v2841_v32, %v11160_v38 }
 0x2fb   : > { %v9088_v59 = vpop.f32.mrf.mxu0 }
 0x2fc   : > { %3078 = vst [vmem:[#allocation2] sm:$0xff] %v3045_v1  ;;  %v3013_v34 = vadd.f32 %v11346_v3, %v2973_v43 }
 0x2fd   : > { %v2846_v23 = vpop.f32.mrf.mxu0 }
 0x2fe   : > { %v3046_v49 = vmax.f32 %v3013_v34, 0.0  ;;  %v2974_v22 = vadd.f32 %v2846_v23, %v11171_v39 }
 0x2ff   : > { %v9091_v27 = vpop.f32.mrf.mxu0 }
 0x300   : > { %3079 = vst [vmem:[#allocation2 + $0x8] sm:$0xff] %v3046_v49  ;;  %v3014_v46 = vadd.f32 %v11346_v3, %v2974_v22  ;;  %v11354_v47 = vpack.c.bf16 %v3046_v49, %v3045_v1 }
 0x301   : > { %v2849_v8 = vpop.f32.mrf.mxu0 }
 0x302   : > { %v3047_v48 = vmax.f32 %v3014_v46, 0.0  ;;  %v2975_v35 = vadd.f32 %v2849_v8, %v11177_v63  ;;  %v9795_v8 = vld [vmem:[%s12986_s3 + $0x30] sm:$0xff]  }
 0x303   : > { %v9092_v57 = vpop.f32.mrf.mxu0 }
 0x304   : > { %3080 = vst [vmem:[#allocation2 + $0x10] sm:$0xff] %v3047_v48  ;;  %v3015_v38 = vadd.f32 %v11346_v3, %v2975_v35 }
 0x305   : > { %v2854_v11 = vpop.f32.mrf.mxu0 }
 0x306   : > { %v3048_v28 = vmax.f32 %v3015_v38, 0.0  ;;  %v2976_v62 = vadd.f32 %v2854_v11, %v11191_v15 }
 0x307   : > { %v9095_v14 = vpop.f32.mrf.mxu0  ;;  %v3169_v17 = vld [vmem:[#allocation2 + $0x1] sm:$0xff] }
 0x308   : > { %3081 = vst [vmem:[#allocation2 + $0x18] sm:$0xff] %v3048_v28  ;;  %v3016_v39 = vadd.f32 %v11346_v3, %v2976_v62  ;;  %v11360_v50 = vpack.c.bf16 %v3048_v28, %v3047_v48  ;;  %v9796_v28 = vld [vmem:[%s12986_s3 + $0x28] sm:$0xff]  }
 0x309   : > { %v2857_v54 = vpop.f32.mrf.mxu0 }
 0x30a   : > { %v3049_v18 = vmax.f32 %v3016_v39, 0.0  ;;  %v2977_v44 = vadd.f32 %v2857_v54, %v11197_v42  ;;  %9301 = vmatprep.mubr.bf16.mxu0 %v11360_v50  ;;  %v9800_v42 = vld [vmem:[%s12986_s3 + $0x170] sm:$0xff]  }
 0x30b   : > { %v9096_v63 = vpop.f32.mrf.mxu0  ;;  %v3170_v13 = vld [vmem:[#allocation2 + $0x9] sm:$0xff] }
 0x30c   : > { %3082 = vst [vmem:[#allocation2 + $0x20] sm:$0xff] %v3049_v18  ;;  %v3017_v21 = vadd.f32 %v11346_v3, %v2977_v44  ;;  %v3197_v40 = vpack.c.bf16 %v3170_v13, %v3169_v17  ;;  %v9797_v17 = vld [vmem:[%s12986_s3 + $0x20] sm:$0xff]  }
 0x30d   : > { %v2862_v15 = vpop.f32.mrf.mxu0 }
 0x30e   : > { %v3050_v55 = vmax.f32 %v3017_v21, 0.0  ;;  %v2978_v58 = vadd.f32 %v2862_v15, %v11211_v45  ;;  %9169 = vmatprep.mubr.bf16.mxu1 %v3197_v40 }
 0x30f   : > { %v9099_v32 = vpop.f32.mrf.mxu0  ;;  %v3171_v22 = vld [vmem:[#allocation2 + $0x11] sm:$0xff] }
 0x310   : > { %3083 = vst [vmem:[#allocation2 + $0x28] sm:$0xff] %v3050_v55  ;;  %v3018_v1 = vadd.f32 %v11346_v3, %v2978_v58  ;;  %v11367_v43 = vpack.c.bf16 %v3050_v55, %v3049_v18  ;;  %v9799_v32 = vld [vmem:[%s12986_s3 + $0x18] sm:$0xff]  }
 0x311   : > { %v2865_v59 = vpop.f32.mrf.mxu0 }
 0x312   : > { %v3051_v34 = vmax.f32 %v3018_v1, 0.0  ;;  %v2979_v23 = vadd.f32 %v2865_v59, %v11220_v60  ;;  %9302 = vmatmul.mubr.bf16.vlgmr.msra.gmra.mxu0 %v11367_v43  ;;  %v9801_v60 = vld [vmem:[%s12986_s3 + $0x168] sm:$0xff]  }
 0x313   : > { %v9100_v49 = vpop.f32.mrf.mxu0  ;;  %v3172_v45 = vld [vmem:[#allocation2 + $0x19] sm:$0xff]  ;;  %9374 = vmatpush3.bf16.msra.mxu0 %v11322_v33 }
 0x314   : > { %3084 = vst [vmem:[#allocation2 + $0x30] sm:$0xff] %v3051_v34  ;;  %v3019_v27 = vadd.f32 %v11346_v3, %v2979_v23  ;;  %v3198_v46 = vpack.c.bf16 %v3172_v45, %v3171_v22  ;;  %9375 = vmatprep.subr.bf16.mxu0 %v9800_v42 }
 0x315   : > { %v2870_v48 = vpop.f32.mrf.mxu0 }
 0x316   : > { %v3052_v35 = vmax.f32 %v3019_v27, 0.0  ;;  %v2980_v57 = vadd.f32 %v2870_v48, %v11234_v20  ;;  %9170 = vmatmul.mubr.bf16.vlgmr.msra.gmra.mxu1 %v3198_v46  ;;  %v9803_v20 = vld [vmem:[%s12986_s3 + $0x160] sm:$0xff]   ;;  %v9802_v27 = vld [vmem:[%s12986_s3 + $0x10] sm:$0xff]  }
 0x317   : > { %v9103_v38 = vpop.f32.mrf.mxu0  ;;  %9198 = vmatpush3.bf16.msra.mxu1 %v11310_v24  ;;  %9376 = vmatpush3.bf16.msra.mxu0 %v9800_v42  ;;  %v3173_v54 = vld [vmem:[#allocation2 + $0x21] sm:$0xff] }
 0x318   : > { %3085 = vst [vmem:[#allocation2 + $0x38] sm:$0xff] %v3052_v35  ;;  %v3020_v33 = vadd.f32 %v11346_v3, %v2980_v57  ;;  %v11385_v11 = vpack.c.bf16 %v3052_v35, %v3051_v34  ;;  %9199 = vmatprep.subr.bf16.mxu1 %v9795_v8  ;;  %9377 = vmatprep.subr.bf16.mxu0 %v9801_v60  ;;  %v9805_v38 = vld [vmem:[%s12986_s3 + $0x8] sm:$0xff]  }
 0x319   : > { %v2873_v62 = vpop.f32.mrf.mxu0 }
 0x31a   : > { %v3053_v14 = vmax.f32 %v3020_v33, 0.0  ;;  %v2981_v24 = vadd.f32 %v2873_v62, %v11240_v5  ;;  %9305 = vmatprep.mubr.bf16.mxu0 %v11385_v11  ;;  %v9804_v5 = vld [vmem:[%s12986_s3 + $0x158] sm:$0xff]  }
 0x31b   : > { %v9104_v39 = vpop.f32.mrf.mxu0  ;;  %v3174_v18 = vld [vmem:[#allocation2 + $0x29] sm:$0xff]  ;;  %9200 = vmatpush3.bf16.msra.mxu1 %v9795_v8  ;;  %9378 = vmatpush3.bf16.msra.mxu0 %v9801_v60 }
 0x31c   : > { %3086 = vst [vmem:[#allocation2 + $0x40] sm:$0xff] %v3053_v14  ;;  %v3021_v44 = vadd.f32 %v11346_v3, %v2981_v24  ;;  %v11396_v63 = vpack.c.bf16 %v3174_v18, %v3173_v54  ;;  %9201 = vmatprep.subr.bf16.mxu1 %v9796_v28  ;;  %9379 = vmatprep.subr.bf16.mxu0 %v9803_v20  ;;  %v9807_v18 = vld [vmem:[%s12986_s3] sm:$0xff]  }
 0x31d   : > { %v2878_v13 = vpop.f32.mrf.mxu0 }
 0x31e   : > { %v3054_v21 = vmax.f32 %v3021_v44, 0.0  ;;  %v2982_v40 = vadd.f32 %v2878_v13, %v11248_v37  ;;  %9173 = vmatprep.mubr.bf16.mxu1 %v11396_v63  ;;  %v9806_v37 = vld [vmem:[%s12986_s3 + $0x150] sm:$0xff]  }
 0x31f   : > { %v9107_v15 = vpop.f32.mrf.mxu0  ;;  %9202 = vmatpush3.bf16.msra.mxu1 %v9796_v28  ;;  %9380 = vmatpush3.bf16.msra.mxu0 %v9803_v20  ;;  %v3175_v23 = vld [vmem:[#allocation2 + $0x31] sm:$0xff] }
 0x320   : > { %3087 = vst [vmem:[#allocation2 + $0x48] sm:$0xff] %v3054_v21  ;;  %v3022_v55 = vadd.f32 %v11346_v3, %v2982_v40  ;;  %v11407_v58 = vpack.c.bf16 %v3054_v21, %v3053_v14  ;;  %9203 = vmatprep.subr.bf16.mxu1 %v9797_v17  ;;  %9381 = vmatprep.subr.bf16.mxu0 %v9804_v5  ;;  %v11458_v15 = vld [vmem:[%s12986_s3 + $0xb8] sm:$0xff]  }
 0x321   : > { %v2881_v1 = vpop.f32.mrf.mxu0 }
 0x322   : > { %v3055_v42 = vmax.f32 %v3022_v55, 0.0  ;;  %v2983_v59 = vadd.f32 %v2881_v1, %v11251_v30  ;;  %9306 = vmatmul.mubr.bf16.gmra.mxu0 %v11407_v58  ;;  %v9808_v30 = vld [vmem:[%s12986_s3 + $0x148] sm:$0xff]  }
 0x323   : > { %v9108_v34 = vpop.f32.mrf.mxu0  ;;  %v3176_v49 = vld [vmem:[#allocation2 + $0x39] sm:$0xff]  ;;  %9204 = vmatpush3.bf16.msra.mxu1 %v9797_v17  ;;  %9382 = vmatpush3.bf16.msra.mxu0 %v9804_v5 }
 0x324   : > { %3088 = vst [vmem:[#allocation2 + $0x50] sm:$0xff] %v3055_v42  ;;  %v3023_v22 = vadd.f32 %v11346_v3, %v2983_v59  ;;  %v11418_v45 = vpack.c.bf16 %v3176_v49, %v3175_v23  ;;  %9205 = vmatprep.subr.bf16.mxu1 %v9799_v32  ;;  %9383 = vmatprep.subr.bf16.mxu0 %v9806_v37 }
 0x325   : > { %v2886_v46 = vpop.f32.mrf.mxu0 }
 0x326   : > { %v3056_v8 = vmax.f32 %v3023_v22, 0.0  ;;  %v2984_v60 = vadd.f32 %v2886_v46, %v11259_v31  ;;  %9174 = vmatmul.mubr.bf16.gmra.mxu1 %v11418_v45  ;;  %v9809_v31 = vld [vmem:[%s12986_s3 + $0x140] sm:$0xff]  }
 0x327   : > { %v9111_v48 = vpop.f32.mrf.mxu0  ;;  %9206 = vmatpush3.bf16.msra.mxu1 %v9799_v32  ;;  %9384 = vmatpush3.bf16.msra.mxu0 %v9806_v37  ;;  %v3177_v14 = vld [vmem:[#allocation2 + $0x41] sm:$0xff] }
 0x328   : > { %3089 = vst [vmem:[#allocation2 + $0x58] sm:$0xff] %v3056_v8  ;;  %v3024_v35 = vadd.f32 %v11346_v3, %v2984_v60  ;;  %v11429_v57 = vpack.c.bf16 %v3056_v8, %v3055_v42  ;;  %9207 = vmatprep.subr.bf16.mxu1 %v9802_v27  ;;  %9385 = vmatprep.subr.bf16.mxu0 %v9808_v30 }
 0x329   : > { %v2889_v33 = vpop.f32.mrf.mxu0 }
 0x32a   : > { %v3057_v28 = vmax.f32 %v3024_v35, 0.0  ;;  %v2985_v20 = vadd.f32 %v2889_v33, %v11262_v53  ;;  %9309 = vmatprep.mubr.bf16.mxu0 %v11429_v57  ;;  %v11448_v53 = vld [vmem:[%s12986_s3 + $0x1f8] sm:$0xff]  }
 0x32b   : > { %v9112_v62 = vpop.f32.mrf.mxu0  ;;  %v3178_v24 = vld [vmem:[#allocation2 + $0x49] sm:$0xff]  ;;  %9208 = vmatpush3.bf16.msra.mxu1 %v9802_v27  ;;  %9386 = vmatpush3.bf16.msra.mxu0 %v9808_v30 }
 0x32c   : > { %3090 = vst [vmem:[#allocation2 + $0x60] sm:$0xff] %v3057_v28  ;;  %v3025_v39 = vadd.f32 %v11346_v3, %v2985_v20  ;;  %v11440_v54 = vpack.c.bf16 %v3178_v24, %v3177_v14  ;;  %9209 = vmatprep.subr.bf16.mxu1 %v9805_v38  ;;  %9387 = vmatprep.subr.bf16.mxu0 %v9809_v31 }
 0x32d   : > { %v2894_v44 = vpop.f32.mrf.mxu0 }
 0x32e   : > { %v3058_v17 = vmax.f32 %v3025_v39, 0.0  ;;  %v2986_v5 = vadd.f32 %v2894_v44, %v11270_v36  ;;  %9177 = vmatprep.mubr.bf16.mxu1 %v11440_v54 }
 0x32f   : > { %v9115_v13 = vpop.f32.mrf.mxu0  ;;  %9210 = vmatpush3.bf16.msra.mxu1 %v9805_v38  ;;  %9388 = vmatpush3.bf16.msra.mxu0 %v9809_v31  ;;  %v3179_v1 = vld [vmem:[#allocation2 + $0x51] sm:$0xff] }
 0x330   : > { %3091 = vst [vmem:[#allocation2 + $0x68] sm:$0xff] %v3058_v17  ;;  %v3026_v21 = vadd.f32 %v11346_v3, %v2986_v5  ;;  %v11453_v40 = vpack.c.bf16 %v3058_v17, %v3057_v28  ;;  %9211 = vmatprep.subr.bf16.mxu1 %v9807_v18  ;;  %9461 = vmatprep.subr.bf16.mxu0 %v11448_v53 }
 0x331   : > { %v2897_v55 = vpop.f32.mrf.mxu0 }
 0x332   : > { %v3059_v36 = vmax.f32 %v3026_v21, 0.0  ;;  %v2987_v32 = vadd.f32 %v2897_v55, %v11273_v52  ;;  %9310 = vmatmul.mubr.bf16.gmra.mxu0 %v11453_v40 }
 0x333   : > { %v9116_v37 = vpop.f32.mrf.mxu0  ;;  %v3180_v42 = vld [vmem:[#allocation2 + $0x59] sm:$0xff]  ;;  %9212 = vmatpush3.bf16.msra.mxu1 %v9807_v18 }
 0x334   : > { %3092 = vst [vmem:[#allocation2 + $0x70] sm:$0xff] %v3059_v36  ;;  %v3027_v59 = vadd.f32 %v11346_v3, %v2987_v32  ;;  %v11464_v34 = vpack.c.bf16 %v3180_v42, %v3179_v1  ;;  %9241 = vmatprep.subr.bf16.mxu1 %v11458_v15 }
 0x335   : > { %v2902_v23 = vpop.f32.mrf.mxu0 }
 0x336   : > { %v3060_v49 = vmax.f32 %v3027_v59, 0.0  ;;  %v2988_v22 = vadd.f32 %v2902_v23, %v11280_v16  ;;  %9178 = vmatmul.mubr.bf16.gmra.mxu1 %v11464_v34 }
 0x337   : > { %v9119_v52 = vpop.f32.mrf.mxu0  ;;  %v3181_v35 = vld [vmem:[#allocation2 + $0x61] sm:$0xff] }
 0x338   : > { %3093 = vst [vmem:[#allocation2 + $0x78] sm:$0xff] %v3060_v49  ;;  %v3028_v27 = vadd.f32 %v11346_v3, %v2988_v22  ;;  %v11470_v30 = vpack.c.bf16 %v3060_v49, %v3059_v36 }
 0x339   : > { %v2905_v46 = vpop.f32.mrf.mxu0 }
 0x33a   : > { %v3061_v8 = vmax.f32 %v3028_v27, 0.0  ;;  %v2989_v60 = vadd.f32 %v2905_v46, %v11283_v51  ;;  %9313 = vmatprep.mubr.bf16.mxu0 %v11470_v30 }
 0x33b   : > { %v9120_v48 = vpop.f32.mrf.mxu0  ;;  %v3182_v38 = vld [vmem:[#allocation2 + $0x69] sm:$0xff] }
 0x33c   : > { %3094 = vst [vmem:[#allocation2 + $0x80] sm:$0xff] %v3061_v8  ;;  %v3029_v16 = vadd.f32 %v11346_v3, %v2989_v60  ;;  %v11475_v31 = vpack.c.bf16 %v3182_v38, %v3181_v35 }
 0x33d   : > { %v2910_v33 = vpop.f32.mrf.mxu0 }
 0x33e   : > { %v3062_v28 = vmax.f32 %v3029_v16, 0.0  ;;  %v2990_v20 = vadd.f32 %v2910_v33, %v11287_v61  ;;  %9181 = vmatprep.mubr.bf16.mxu1 %v11475_v31 }
 0x33f   : > { %v9123_v62 = vpop.f32.mrf.mxu0  ;;  %v3183_v17 = vld [vmem:[#allocation2 + $0x71] sm:$0xff] }
 0x340   : > { %3095 = vst [vmem:[#allocation2 + $0x88] sm:$0xff] %v3062_v28  ;;  %v3030_v51 = vadd.f32 %v11346_v3, %v2990_v20  ;;  %v11480_v14 = vpack.c.bf16 %v3062_v28, %v3061_v8 }
 0x341   : > { %v2913_v24 = vpop.f32.mrf.mxu0 }
 0x342   : > { %v3063_v39 = vmax.f32 %v3030_v51, 0.0  ;;  %v2991_v18 = vadd.f32 %v2913_v24, %v11290_v0  ;;  %9314 = vmatmul.mubr.bf16.gmra.mxu0 %v11480_v14 }
 0x343   : > { %v9124_v44 = vpop.f32.mrf.mxu0  ;;  %v3184_v5 = vld [vmem:[#allocation2 + $0x79] sm:$0xff] }
 0x344   : > { %3096 = vst [vmem:[#allocation2 + $0x90] sm:$0xff] %v3063_v39  ;;  %v3031_v61 = vadd.f32 %v11346_v3, %v2991_v18  ;;  %v11485_v13 = vpack.c.bf16 %v3184_v5, %v3183_v17 }
 0x345   : > { %v2918_v21 = vpop.f32.mrf.mxu0 }
 0x346   : > { %v3064_v55 = vmax.f32 %v3031_v61, 0.0  ;;  %v2992_v36 = vadd.f32 %v2918_v21, %v11293_v12  ;;  %9182 = vmatmul.mubr.bf16.gmra.mxu1 %v11485_v13 }
 0x347   : > { %v9127_v32 = vpop.f32.mrf.mxu0  ;;  %v3185_v49 = vld [vmem:[#allocation2 + $0x81] sm:$0xff] }
 0x348   : > { %3097 = vst [vmem:[#allocation2 + $0x98] sm:$0xff] %v3064_v55  ;;  %v3032_v0 = vadd.f32 %v11346_v3, %v2992_v36  ;;  %v11490_v37 = vpack.c.bf16 %v3064_v55, %v3063_v39 }
 0x349   : > { %v2921_v1 = vpop.f32.mrf.mxu0 }
 0x34a   : > { %v3065_v42 = vmax.f32 %v3032_v0, 0.0  ;;  %v2993_v59 = vadd.f32 %v2921_v1, %v11296_v9  ;;  %9317 = vmatprep.mubr.bf16.mxu0 %v11490_v37 }
 0x34b   : > { %v9128_v23 = vpop.f32.mrf.mxu0  ;;  %v3186_v22 = vld [vmem:[#allocation2 + $0x89] sm:$0xff] }
 0x34c   : > { %3098 = vst [vmem:[#allocation2 + $0xa0] sm:$0xff] %v3065_v42  ;;  %v3033_v12 = vadd.f32 %v11346_v3, %v2993_v59  ;;  %v11495_v52 = vpack.c.bf16 %v3186_v22, %v3185_v49 }
 0x34d   : > { %v2926_v27 = vpop.f32.mrf.mxu0 }
 0x34e   : > { %v3066_v46 = vmax.f32 %v3033_v12, 0.0  ;;  %v2994_v8 = vadd.f32 %v2926_v27, %v11299_v25  ;;  %9185 = vmatprep.mubr.bf16.mxu1 %v11495_v52 }
 0x34f   : > { %v9131_v60 = vpop.f32.mrf.mxu0  ;;  %v3187_v28 = vld [vmem:[#allocation2 + $0x91] sm:$0xff] }
 0x350   : > { %3099 = vst [vmem:[#allocation2 + $0xa8] sm:$0xff] %v3066_v46  ;;  %v3034_v9 = vadd.f32 %v11346_v3, %v2994_v8  ;;  %v11500_v48 = vpack.c.bf16 %v3066_v46, %v3065_v42 }
 0x351   : > { %v2929_v35 = vpop.f32.mrf.mxu0 }
 0x352   : > { %v3067_v38 = vmax.f32 %v3034_v9, 0.0  ;;  %v2995_v16 = vadd.f32 %v2929_v35, %v11302_v56  ;;  %9318 = vmatmul.mubr.bf16.gmra.mxu0 %v11500_v48 }
 0x353   : > { %v9132_v33 = vpop.f32.mrf.mxu0  ;;  %v3188_v20 = vld [vmem:[#allocation2 + $0x99] sm:$0xff] }
 0x354   : > { %3100 = vst [vmem:[#allocation2 + $0xb0] sm:$0xff] %v3067_v38  ;;  %v3035_v25 = vadd.f32 %v11346_v3, %v2995_v16  ;;  %v11505_v62 = vpack.c.bf16 %v3188_v20, %v3187_v28 }
 0x355   : > { %v2934_v51 = vpop.f32.mrf.mxu0 }
 0x356   : > { %v3068_v24 = vmax.f32 %v3035_v25, 0.0  ;;  %v2996_v39 = vadd.f32 %v2934_v51, %v11305_v26  ;;  %9186 = vmatmul.mubr.bf16.gmra.mxu1 %v11505_v62 }
 0x357   : > { %v9135_v18 = vpop.f32.mrf.mxu0  ;;  %v3189_v55 = vld [vmem:[#allocation2 + $0xa1] sm:$0xff] }
 0x358   : > { %3101 = vst [vmem:[#allocation2 + $0xb8] sm:$0xff] %v3068_v24  ;;  %v3036_v56 = vadd.f32 %v11346_v3, %v2996_v39  ;;  %v11510_v44 = vpack.c.bf16 %v3068_v24, %v3067_v38 }
 0x359   : > { %v2937_v17 = vpop.f32.mrf.mxu0 }
 0x35a   : > { %v3069_v5 = vmax.f32 %v3036_v56, 0.0  ;;  %v2997_v61 = vadd.f32 %v2937_v17, %v11314_v10  ;;  %9321 = vmatprep.mubr.bf16.mxu0 %v11510_v44 }
 0x35b   : > { %v9136_v21 = vpop.f32.mrf.mxu0  ;;  %v3190_v36 = vld [vmem:[#allocation2 + $0xa9] sm:$0xff] }
 0x35c   : > { %3102 = vst [vmem:[#allocation2 + $0xc0] sm:$0xff] %v3069_v5  ;;  %v3037_v26 = vadd.f32 %v11346_v3, %v2997_v61  ;;  %v11515_v32 = vpack.c.bf16 %v3190_v36, %v3189_v55  ;;  %v4455_v61 = vld [vmem:[#allocation2 + $0x1a] sm:$0xff]  ;;  %v4454_v36 = vld [vmem:[#allocation2 + $0x12] sm:$0xff] }
 0x35d   : > { %v2942_v0 = vpop.f32.mrf.mxu0 }
 0x35e   : > { %v3070_v1 = vmax.f32 %v3037_v26, 0.0  ;;  %v2998_v42 = vadd.f32 %v2942_v0, %v11317_v29  ;;  %9189 = vmatprep.mubr.bf16.mxu1 %v11515_v32  ;;  %v11540_v0 = vpack.c.bf16 %v4455_v61, %v4454_v36  ;;  %v4467_v61 = vld [vmem:[#allocation2 + $0x7a] sm:$0xff] }
 0x35f   : > { %v9139_v59 = vpop.f32.mrf.mxu0  ;;  %v3191_v46 = vld [vmem:[#allocation2 + $0xb1] sm:$0xff] }
 0x360   : > { %3103 = vst [vmem:[#allocation2 + $0xc8] sm:$0xff] %v3070_v1  ;;  %v3038_v10 = vadd.f32 %v11346_v3, %v2998_v42  ;;  %v11520_v23 = vpack.c.bf16 %v3070_v1, %v3069_v5  ;;  %v9815_v36 = vld [vmem:[%s12986_s3 + $0x98] sm:$0xff]  }
 0x361   : > { %v2945_v49 = vpop.f32.mrf.mxu0 }
 0x362   : > { %v3071_v22 = vmax.f32 %v3038_v10, 0.0  ;;  %v2999_v12 = vadd.f32 %v2945_v49, %v11326_v41  ;;  %9322 = vmatmul.mubr.bf16.gmra.mxu0 %v11520_v23 }
 0x363   : > { %v9140_v27 = vpop.f32.mrf.mxu0  ;;  %v3192_v8 = vld [vmem:[#allocation2 + $0xb9] sm:$0xff] }
 0x364   : > { %3104 = vst [vmem:[#allocation2 + $0xd0] sm:$0xff] %v3071_v22  ;;  %v3039_v29 = vadd.f32 %v11346_v3, %v2999_v12  ;;  %v11525_v60 = vpack.c.bf16 %v3192_v8, %v3191_v46  ;;  %v4457_v27 = vld [vmem:[#allocation2 + $0x2a] sm:$0xff] }
 0x365   : > { %v2950_v9 = vpop.f32.mrf.mxu0 }
 0x366   : > { %v3072_v35 = vmax.f32 %v3039_v29, 0.0  ;;  %v3000_v38 = vadd.f32 %v2950_v9, %v11329_v4  ;;  %9190 = vmatmul.mubr.bf16.gmra.mxu1 %v11525_v60  ;;  %v4459_v29 = vld [vmem:[#allocation2 + $0x3a] sm:$0xff] }
 0x367   : > { %v9143_v16 = vpop.f32.mrf.mxu0  ;;  %v3193_v24 = vld [vmem:[#allocation2 + $0xc1] sm:$0xff] }
 0x368   : > { %3105 = vst [vmem:[#allocation2 + $0xd8] sm:$0xff] %v3072_v35  ;;  %v3040_v41 = vadd.f32 %v11346_v3, %v3000_v38  ;;  %v11530_v33 = vpack.c.bf16 %v3072_v35, %v3071_v22  ;;  %v4458_v16 = vld [vmem:[#allocation2 + $0x32] sm:$0xff] }
 0x369   : > { %v2953_v28 = vpop.f32.mrf.mxu0 }
 0x36a   : > { %v3073_v20 = vmax.f32 %v3040_v41, 0.0  ;;  %v3001_v25 = vadd.f32 %v2953_v28, %v11332_v2  ;;  %9325 = vmatprep.mubr.bf16.mxu0 %v11530_v33  ;;  %v9816_v41 = vld [vmem:[%s12986_s3 + $0x1f0] sm:$0xff]   ;;  %v11556_v28 = vpack.c.bf16 %v4459_v29, %v4458_v16  ;;  %v4472_v29 = vld [vmem:[#allocation2 + $0xa2] sm:$0xff] }
 0x36b   : > { %v9144_v51 = vpop.f32.mrf.mxu0  ;;  %v3194_v39 = vld [vmem:[#allocation2 + $0xc9] sm:$0xff] }
 0x36c   : > { %3106 = vst [vmem:[#allocation2 + $0xe0] sm:$0xff] %v3073_v20  ;;  %v3041_v4 = vadd.f32 %v11346_v3, %v3001_v25  ;;  %v11535_v18 = vpack.c.bf16 %v3194_v39, %v3193_v24  ;;  %v4461_v25 = vld [vmem:[#allocation2 + $0x4a] sm:$0xff]  ;;  %v4463_v24 = vld [vmem:[#allocation2 + $0x5a] sm:$0xff] }
 0x36d   : > { %v2958_v56 = vpop.f32.mrf.mxu0  ;;  %v9817_v51 = vld [vmem:[%s12986_s3 + $0x1e8] sm:$0xff]  }
 0x36e   : > { %v3074_v17 = vmax.f32 %v3041_v4, 0.0  ;;  %v3002_v5 = vadd.f32 %v2958_v56, %v11335_v7  ;;  %9193 = vmatprep.mubr.bf16.mxu1 %v11535_v18  ;;  %v4462_v4 = vld [vmem:[#allocation2 + $0x52] sm:$0xff]  ;;  %v9812_v56 = vld [vmem:[%s12986_s3 + $0xa8] sm:$0xff]  }
 0x36f   : > { %v9147_v21 = vpop.f32.mrf.mxu0  ;;  %v3195_v10 = vld [vmem:[#allocation2 + $0xd1] sm:$0xff] }
 0x370   : > { %3107 = vst [vmem:[#allocation2 + $0xe8] sm:$0xff] %v3074_v17  ;;  %v3042_v2 = vadd.f32 %v11346_v3, %v3002_v5  ;;  %v3935_v55 = vpack.c.bf16 %v3074_v17, %v3073_v20  ;;  %v11575_v17 = vpack.c.bf16 %v4463_v24, %v4462_v4  ;;  %v9820_v5 = vld [vmem:[%s12986_s3 + $0x1d8] sm:$0xff]   ;;  %v4464_v21 = vld [vmem:[#allocation2 + $0x62] sm:$0xff] }
 0x371   : > { %v2961_v26 = vpop.f32.mrf.mxu0  ;;  %v4177_v4 = vld [vmem:[#allocation2 + $0x29] sm:$0xff] }
 0x372   : > { %v3075_v1 = vmax.f32 %v3042_v2, 0.0  ;;  %v3003_v42 = vadd.f32 %v2961_v26, %v11338_v19  ;;  %9326 = vmatmul.mubr.bf16.gmra.mxu0 %v3935_v55  ;;  %v4456_v19 = vld [vmem:[#allocation2 + $0x22] sm:$0xff]  ;;  %v4466_v55 = vld [vmem:[#allocation2 + $0x72] sm:$0xff] }
 0x373   : > { %v9148_v59 = vpop.f32.mrf.mxu0  ;;  %v3196_v49 = vld [vmem:[#allocation2 + $0xd9] sm:$0xff]  ;;  %9389 = vmatprep.mubr.bf16.mxu0 %v11540_v0  ;;  %v11551_v38 = vpack.c.bf16 %v4457_v27, %v4456_v19  ;;  %v11595_v26 = vpack.c.bf16 %v4467_v61, %v4466_v55  ;;  %v9836_v55 = vld [vmem:[%s12986_s3 + $0x1a8] sm:$0xff]  }
 0x374   : > { %3108 = vst [vmem:[#allocation2 + $0xf0] sm:$0xff] %v3075_v1  ;;  %v3043_v7 = vadd.f32 %v11346_v3, %v3003_v42  ;;  %v11545_v22 = vpack.c.bf16 %v3196_v49, %v3195_v10  ;;  %v4469_v1 = vld [vmem:[#allocation2 + $0x8a] sm:$0xff]  ;;  %v4471_v59 = vld [vmem:[#allocation2 + $0x9a] sm:$0xff]  ;;  %v4468_v10 = vld [vmem:[#allocation2 + $0x82] sm:$0xff] }
 0x375   : > { %v2966_v12 = vpop.f32.mrf.mxu0  ;;  %v9824_v42 = vld [vmem:[%s12986_s3 + $0x1c8] sm:$0xff]   ;;  %v11610_v49 = vpack.c.bf16 %v4469_v1, %v4468_v10 }
 0x376   : > { %v3076_v46 = vmax.f32 %v3043_v7, 0.0  ;;  %v3004_v8 = vadd.f32 %v2966_v12, %v11341_v6  ;;  %9194 = vmatmul.mubr.bf16.gmra.mxu1 %v11545_v22  ;;  %v4470_v7 = vld [vmem:[#allocation2 + $0x92] sm:$0xff]  ;;  %v9821_v12 = vld [vmem:[%s12986_s3 + $0x88] sm:$0xff]  }
 0x377   : > { %9213 = vmatprep.mubr.bf16.mxu1 %v11354_v47  ;;  %v9151_v9 = vpop.f32.mrf.mxu0  ;;  %v11615_v27 = vpack.c.bf16 %v4471_v59, %v4470_v7  ;;  %v9837_v59 = vld [vmem:[%s12986_s3 + $0x1a0] sm:$0xff]   ;;  %v9838_v7 = vld [vmem:[%s12986_s3 + $0x198] sm:$0xff]  }
 0x378   : > { %3109 = vst [vmem:[#allocation2 + $0xf8] sm:$0xff] %v3076_v46  ;;  %v3044_v35 = vadd.f32 %v11346_v3, %v3004_v8  ;;  %v9811_v3 = vld [vmem:[%s12986_s3 + $0xb0] sm:$0xff]   ;;  %v4475_v8 = vld [vmem:[#allocation2 + $0xba] sm:$0xff] }
 0x379   : > { %v2969_v6 = vpop.f32.mrf.mxu0  ;;  %v4473_v46 = vld [vmem:[#allocation2 + $0xaa] sm:$0xff]  ;;  %v4474_v9 = vld [vmem:[#allocation2 + $0xb2] sm:$0xff] }
 0x37a   : > { %v3077_v20 = vmax.f32 %v3044_v35, 0.0  ;;  %9390 = vmatmul.mubr.bf16.vlgmr.msra.gmra.mxu0 %v11551_v38  ;;  %v11627_v19 = vpack.c.bf16 %v4473_v46, %v4472_v29  ;;  %v9826_v35 = vld [vmem:[%s12986_s3 + $0x138] sm:$0xff]   ;;  %v11632_v16 = vpack.c.bf16 %v4475_v8, %v4474_v9  ;;  %v9839_v29 = vld [vmem:[%s12986_s3 + $0x190] sm:$0xff]  }
 0x37b   : > { %9393 = vmatprep.mubr.bf16.mxu0 %v11556_v28  ;;  %9462 = vmatpush3.bf16.msra.mxu0 %v11448_v53  ;;  %v9152_v47 = vpop.f32.mrf.mxu0  ;;  %v4460_v53 = vld [vmem:[#allocation2 + $0x42] sm:$0xff]  ;;  %v4186_v8 = vld [vmem:[#allocation2 + $0x71] sm:$0xff] }
 0x37c   : > { %3110 = vst [vmem:[#allocation2 + $0x100] sm:$0xff] %v3077_v20  ;;  %9463 = vmatprep.subr.bf16.mxu0 %v9816_v41  ;;  %v11570_v39 = vpack.c.bf16 %v4461_v25, %v4460_v53  ;;  %v4478_v20 = vld [vmem:[#allocation2 + $0xd2] sm:$0xff]  ;;  %v4480_v25 = vld [vmem:[#allocation2 + $0xe2] sm:$0xff] }
 0x37e   : > { %9214 = vmatmul.mubr.bf16.vlgmr.msra.gmra.mxu1 %v11360_v50  ;;  %v9819_v50 = vld [vmem:[%s12986_s3 + $0x1e0] sm:$0xff]  }
 0x37f   : > { %9217 = vmatprep.mubr.bf16.mxu1 %v11367_v43  ;;  %9242 = vmatpush3.bf16.msra.mxu1 %v11458_v15  ;;  %v9813_v43 = vld [vmem:[%s12986_s3 + $0xa0] sm:$0xff]   ;;  %v4465_v15 = vld [vmem:[#allocation2 + $0x6a] sm:$0xff] }
 0x380   : > { %9243 = vmatprep.subr.bf16.mxu1 %v9811_v3  ;;  %9464 = vmatpush3.bf16.msra.mxu0 %v9816_v41  ;;  %v11590_v2 = vpack.c.bf16 %v4465_v15, %v4464_v21  ;;  %v4476_v41 = vld [vmem:[#allocation2 + $0xc2] sm:$0xff]  ;;  %v4178_v15 = vld [vmem:[#allocation2 + $0x31] sm:$0xff] }
 0x381   : > { %9465 = vmatprep.subr.bf16.mxu0 %v9817_v51 }
 0x382   : > { %9394 = vmatmul.mubr.bf16.gmra.mxu0 %v11570_v39 }
 0x383   : > { %9244 = vmatpush3.bf16.msra.mxu1 %v9811_v3  ;;  %9397 = vmatprep.mubr.bf16.mxu0 %v11575_v17  ;;  %v4481_v3 = vld [vmem:[#allocation2 + $0xea] sm:$0xff] }
 0x384   : > { %9245 = vmatprep.subr.bf16.mxu1 %v9812_v56  ;;  %9466 = vmatpush3.bf16.msra.mxu0 %v9817_v51  ;;  %v3615_v51 = vld [vmem:[#allocation2 + $0xa] sm:$0xff] }
 0x385   : > { %9467 = vmatprep.subr.bf16.mxu0 %v9819_v50 }
 0x386   : > { %9218 = vmatmul.mubr.bf16.gmra.mxu1 %v11385_v11  ;;  %v9822_v11 = vld [vmem:[%s12986_s3 + $0x1d0] sm:$0xff]  }
 0x387   : > { %9221 = vmatprep.mubr.bf16.mxu1 %v11407_v58  ;;  %9246 = vmatpush3.bf16.msra.mxu1 %v9812_v56  ;;  %v9818_v58 = vld [vmem:[%s12986_s3 + $0x90] sm:$0xff]  }
 0x388   : > { %9247 = vmatprep.subr.bf16.mxu1 %v9813_v43  ;;  %9468 = vmatpush3.bf16.msra.mxu0 %v9819_v50  ;;  %v4176_v50 = vld [vmem:[#allocation2 + $0x21] sm:$0xff] }
 0x389   : > { %9469 = vmatprep.subr.bf16.mxu0 %v9820_v5 }
 0x38a   : > { %9398 = vmatmul.mubr.bf16.gmra.mxu0 %v11590_v2 }
 0x38b   : > { %9401 = vmatprep.mubr.bf16.mxu0 %v11595_v26  ;;  %9248 = vmatpush3.bf16.msra.mxu1 %v9813_v43  ;;  %v4203_v43 = vpack.c.bf16 %v4177_v4, %v4176_v50  ;;  %v4734_v4 = vld [vmem:[#allocation2 + $0x20] sm:$0xff] }
 0x38c   : > { %9249 = vmatprep.subr.bf16.mxu1 %v9815_v36  ;;  %9470 = vmatpush3.bf16.msra.mxu0 %v9820_v5  ;;  %v9835_v5 = vld [vmem:[%s12986_s3 + $0x1b0] sm:$0xff]  }
 0x38d   : > { %9471 = vmatprep.subr.bf16.mxu0 %v9822_v11 }
 0x38e   : > { %9222 = vmatmul.mubr.bf16.gmra.mxu1 %v11429_v57  ;;  %v9825_v57 = vld [vmem:[%s12986_s3 + $0x1c0] sm:$0xff]  }
 0x38f   : > { %9225 = vmatprep.mubr.bf16.mxu1 %v11453_v40  ;;  %9250 = vmatpush3.bf16.msra.mxu1 %v9815_v36  ;;  %v9823_v40 = vld [vmem:[%s12986_s3 + $0x80] sm:$0xff]   ;;  %v4181_v36 = vld [vmem:[#allocation2 + $0x49] sm:$0xff] }
 0x390   : > { %9251 = vmatprep.subr.bf16.mxu1 %v9818_v58  ;;  %9472 = vmatpush3.bf16.msra.mxu0 %v9822_v11  ;;  %v4180_v11 = vld [vmem:[#allocation2 + $0x41] sm:$0xff] }
 0x391   : > { %9473 = vmatprep.subr.bf16.mxu0 %v9824_v42  ;;  %v4205_v1 = vpack.c.bf16 %v4181_v36, %v4180_v11  ;;  %v4736_v36 = vld [vmem:[#allocation2 + $0x30] sm:$0xff]  ;;  %v4738_v11 = vld [vmem:[#allocation2 + $0x40] sm:$0xff] }
 0x392   : > { %9402 = vmatmul.mubr.bf16.gmra.mxu0 %v11610_v49 }
 0x393   : > { %9405 = vmatprep.mubr.bf16.mxu0 %v11615_v27  ;;  %9252 = vmatpush3.bf16.msra.mxu1 %v9818_v58 }
 0x394   : > { %9253 = vmatprep.subr.bf16.mxu1 %v9821_v12  ;;  %9474 = vmatpush3.bf16.msra.mxu0 %v9824_v42  ;;  %v4182_v42 = vld [vmem:[#allocation2 + $0x51] sm:$0xff] }
 0x395   : > { %9475 = vmatprep.subr.bf16.mxu0 %v9825_v57 }
 0x396   : > { %9226 = vmatmul.mubr.bf16.gmra.mxu1 %v11470_v30  ;;  %v4477_v30 = vld [vmem:[#allocation2 + $0xca] sm:$0xff] }
 0x397   : > { %9229 = vmatprep.mubr.bf16.mxu1 %v11480_v14  ;;  %9254 = vmatpush3.bf16.msra.mxu1 %v9821_v12  ;;  %v4479_v14 = vld [vmem:[#allocation2 + $0xda] sm:$0xff]  ;;  %v11638_v6 = vpack.c.bf16 %v4477_v30, %v4476_v41  ;;  %v4185_v12 = vld [vmem:[#allocation2 + $0x69] sm:$0xff] }
 0x398   : > { %9255 = vmatprep.subr.bf16.mxu1 %v9823_v40  ;;  %9476 = vmatpush3.bf16.msra.mxu0 %v9825_v57  ;;  %v11640_v47 = vpack.c.bf16 %v4479_v14, %v4478_v20  ;;  %v4184_v57 = vld [vmem:[#allocation2 + $0x61] sm:$0xff]  ;;  %v4191_v14 = vld [vmem:[#allocation2 + $0x99] sm:$0xff]  ;;  %v4190_v20 = vld [vmem:[#allocation2 + $0x91] sm:$0xff] }
 0x399   : > { %v4207_v46 = vpack.c.bf16 %v4185_v12, %v4184_v57  ;;  %v4188_v41 = vld [vmem:[#allocation2 + $0x81] sm:$0xff]  ;;  %v4741_v12 = vld [vmem:[#allocation2 + $0x58] sm:$0xff] }
 0x39a   : > { %9406 = vmatmul.mubr.bf16.gmra.mxu0 %v11627_v19 }
 0x39b   : > { %9409 = vmatprep.mubr.bf16.mxu0 %v11632_v16  ;;  %9256 = vmatpush3.bf16.msra.mxu1 %v9823_v40 }
 0x39c   : > { %9329 = vmatprep.subr.bf16.mxu1 %v9826_v35 }
 0x39e   : > { %9230 = vmatmul.mubr.bf16.gmra.mxu1 %v11490_v37  ;;  %v4495_v37 = vpack.c.bf16 %v4481_v3, %v4480_v25  ;;  %v4210_v3 = vpack.c.bf16 %v4191_v14, %v4190_v20 }
 0x39f   : > { %9233 = vmatprep.mubr.bf16.mxu1 %v11500_v48  ;;  %v3614_v48 = vld [vmem:[#allocation2 + $0x2] sm:$0xff] }
 0x3a0   : > { %v3642_v24 = vpack.c.bf16 %v3615_v51, %v3614_v48  ;;  %v4193_v51 = vld [vmem:[#allocation2 + $0xa9] sm:$0xff] }
 0x3a2   : > { %9410 = vmatmul.mubr.bf16.gmra.mxu0 %v11638_v6 }
 0x3a3   : > { %9413 = vmatprep.mubr.bf16.mxu0 %v11640_v47 }
 0x3a6   : > { %9234 = vmatmul.mubr.bf16.gmra.mxu1 %v11510_v44  ;;  %v9827_v44 = vld [vmem:[%s12986_s3 + $0x130] sm:$0xff]  }
 0x3a7   : > { %9237 = vmatprep.mubr.bf16.mxu1 %v11520_v23 }
 0x3aa   : > { %9414 = vmatmul.mubr.bf16.gmra.mxu0 %v4495_v37  ;;  %v9842_v37 = vld [vmem:[%s12986_s3 + $0x238] sm:$0xff]  }
 0x3ab   : > { %9477 = vmatprep.mubr.bf16.mxu0 %v11396_v63  ;;  %v9828_v63 = vld [vmem:[%s12986_s3 + $0x128] sm:$0xff]  }
 0x3ae   : > { %9238 = vmatmul.mubr.bf16.gmra.mxu1 %v11530_v33  ;;  %v5041_v33 = vld [vmem:[#allocation2 + $0xf9] sm:$0xff] }
 0x3af   : > { %9257 = vmatprep.mubr.bf16.mxu1 %v3642_v24  ;;  %v4195_v24 = vld [vmem:[#allocation2 + $0xb9] sm:$0xff] }
 0x3b2   : > { %9478 = vmatmul.mubr.bf16.vlgmr.msra.gmra.mxu0 %v11418_v45  ;;  %v9829_v45 = vld [vmem:[%s12986_s3 + $0x120] sm:$0xff]  }
 0x3b3   : > { %9481 = vmatprep.mubr.bf16.mxu0 %v11440_v54  ;;  %v9830_v54 = vld [vmem:[%s12986_s3 + $0x118] sm:$0xff]  }
 0x3b6   : > { %9258 = vmatmul.mubr.bf16.vlgmr.msra.gmra.mxu1 %v11540_v0 }
 0x3b7   : > { %9261 = vmatprep.mubr.bf16.mxu1 %v11551_v38  ;;  %9330 = vmatpush3.bf16.msra.mxu1 %v9826_v35  ;;  %v4175_v38 = vld [vmem:[#allocation2 + $0x19] sm:$0xff]  ;;  %v9840_v35 = vld [vmem:[%s12986_s3 + $0x188] sm:$0xff]  }
 0x3b8   : > { %9331 = vmatprep.subr.bf16.mxu1 %v9827_v44 }
 0x3ba   : > { %9482 = vmatmul.mubr.bf16.gmra.mxu0 %v11464_v34  ;;  %v9831_v34 = vld [vmem:[%s12986_s3 + $0x110] sm:$0xff]  }
 0x3bb   : > { %9332 = vmatpush3.bf16.msra.mxu1 %v9827_v44  ;;  %9485 = vmatprep.mubr.bf16.mxu0 %v11475_v31  ;;  %v9832_v31 = vld [vmem:[%s12986_s3 + $0x108] sm:$0xff]  }
 0x3bc   : > { %9333 = vmatprep.subr.bf16.mxu1 %v9828_v63  ;;  %v4192_v44 = vld [vmem:[#allocation2 + $0xa1] sm:$0xff] }
 0x3be   : > { %9262 = vmatmul.mubr.bf16.gmra.mxu1 %v11556_v28  ;;  %v4174_v28 = vld [vmem:[#allocation2 + $0x11] sm:$0xff] }
 0x3bf   : > { %9265 = vmatprep.mubr.bf16.mxu1 %v11570_v39  ;;  %9334 = vmatpush3.bf16.msra.mxu1 %v9828_v63  ;;  %v4202_v53 = vpack.c.bf16 %v4175_v38, %v4174_v28 }
 0x3c0   : > { %9335 = vmatprep.subr.bf16.mxu1 %v9829_v45 }
 0x3c2   : > { %9486 = vmatmul.mubr.bf16.gmra.mxu0 %v11485_v13  ;;  %v9833_v13 = vld [vmem:[%s12986_s3 + $0x100] sm:$0xff]  }
 0x3c3   : > { %9489 = vmatprep.mubr.bf16.mxu0 %v11495_v52  ;;  %9336 = vmatpush3.bf16.msra.mxu1 %v9829_v45  ;;  %v9834_v52 = vld [vmem:[%s12986_s3 + $0x1b8] sm:$0xff]   ;;  %v4211_v45 = vpack.c.bf16 %v4193_v51, %v4192_v44  ;;  %v4746_v44 = vld [vmem:[#allocation2 + $0x80] sm:$0xff] }
 0x3c4   : > { %9337 = vmatprep.subr.bf16.mxu1 %v9830_v54 }
 0x3c6   : > { %9266 = vmatmul.mubr.bf16.gmra.mxu1 %v11575_v17  ;;  %v4179_v17 = vld [vmem:[#allocation2 + $0x39] sm:$0xff] }
 0x3c7   : > { %9269 = vmatprep.mubr.bf16.mxu1 %v11590_v2  ;;  %9338 = vmatpush3.bf16.msra.mxu1 %v9830_v54  ;;  %v4204_v61 = vpack.c.bf16 %v4179_v17, %v4178_v15  ;;  %v4194_v54 = vld [vmem:[#allocation2 + $0xb1] sm:$0xff] }
 0x3c8   : > { %9339 = vmatprep.subr.bf16.mxu1 %v9831_v34 }
 0x3ca   : > { %9490 = vmatmul.mubr.bf16.gmra.mxu0 %v11505_v62  ;;  %v5039_v62 = vld [vmem:[#allocation2 + $0xe9] sm:$0xff] }
 0x3cb   : > { %9493 = vmatprep.mubr.bf16.mxu0 %v11515_v32  ;;  %9340 = vmatpush3.bf16.msra.mxu1 %v9831_v34  ;;  %v5038_v32 = vld [vmem:[#allocation2 + $0xe1] sm:$0xff]  ;;  %v4212_v34 = vpack.c.bf16 %v4195_v24, %v4194_v54 }
 0x3cc   : > { %9341 = vmatprep.subr.bf16.mxu1 %v9832_v31  ;;  %v11692_v23 = vpack.c.bf16 %v5039_v62, %v5038_v32  ;;  %v4196_v62 = vld [vmem:[#allocation2 + $0xc1] sm:$0xff] }
 0x3ce   : > { %9270 = vmatmul.mubr.bf16.gmra.mxu1 %v11595_v26  ;;  %v4183_v26 = vld [vmem:[#allocation2 + $0x59] sm:$0xff] }
 0x3cf   : > { %9273 = vmatprep.mubr.bf16.mxu1 %v11610_v49  ;;  %9342 = vmatpush3.bf16.msra.mxu1 %v9832_v31  ;;  %v4206_v10 = vpack.c.bf16 %v4183_v26, %v4182_v42 }
 0x3d0   : > { %9343 = vmatprep.subr.bf16.mxu1 %v9833_v13 }
 0x3d2   : > { %9494 = vmatmul.mubr.bf16.gmra.mxu0 %v11525_v60  ;;  %v5040_v60 = vld [vmem:[#allocation2 + $0xf1] sm:$0xff] }
 0x3d3   : > { %9497 = vmatprep.mubr.bf16.mxu0 %v11535_v18  ;;  %9344 = vmatpush3.bf16.msra.mxu1 %v9833_v13  ;;  %v5055_v18 = vpack.c.bf16 %v5041_v33, %v5040_v60  ;;  %v11751_v13 = vpop.f32.mrf.mxu0 }
 0x3d4   : > { %9417 = vmatprep.subr.bf16.mxu1 %v9834_v52 }
 0x3d5   : > { %v11755_v60 = vpop.f32.mrf.mxu0 }
 0x3d6   : > { %9274 = vmatmul.mubr.bf16.gmra.mxu1 %v11615_v27  ;;  %v11698_v0 = vpop.f32.mrf.mxu1  ;;  %v4187_v27 = vld [vmem:[#allocation2 + $0x79] sm:$0xff] }
 0x3d7   : > { %9277 = vmatprep.mubr.bf16.mxu1 %v11627_v19  ;;  %v4208_v19 = vpack.c.bf16 %v4187_v27, %v4186_v8  ;;  %v11760_v38 = vpop.f32.mrf.mxu0  ;;  %v4743_v27 = vld [vmem:[#allocation2 + $0x68] sm:$0xff] }
 0x3d8   : > { %v11700_v39 = vpop.f32.mrf.mxu1 }
 0x3d9   : > { %v11764_v17 = vpop.f32.mrf.mxu0 }
 0x3da   : > { %9498 = vmatmul.mubr.bf16.gmra.mxu0 %v11545_v22  ;;  %v11703_v56 = vpop.f32.mrf.mxu1  ;;  %12997 = vst [vmem:[#allocation8_spill] sm:$0xff] %v11764_v17  ;;  %v5297_v17 = vld [vmem:[#allocation2 + $0x3a] sm:$0xff] }
 0x3db   : > { %9501 = vmatprep.mubr.bf16.mxu0 %v11692_v23 }
 0x3dc   : > { %v11708_v21 = vpop.f32.mrf.mxu1 }
 0x3dd   : > { %12994 = vst [vmem:[#allocation5_spill] sm:$0xff] %v11708_v21  ;;  %v5299_v21 = vld [vmem:[#allocation2 + $0x4a] sm:$0xff] }
 0x3de   : > { %9278 = vmatmul.mubr.bf16.gmra.mxu1 %v11632_v16  ;;  %v4189_v16 = vld [vmem:[#allocation2 + $0x89] sm:$0xff] }
 0x3df   : > { %9281 = vmatprep.mubr.bf16.mxu1 %v11638_v6  ;;  %v4209_v6 = vpack.c.bf16 %v4189_v16, %v4188_v41 }
 0x3e2   : > { %9502 = vmatmul.mubr.bf16.gmra.mxu0 %v5055_v18  ;;  %v11769_v15 = vpop.f32.mrf.mxu0 }
 0x3e6   : > { %9282 = vmatmul.mubr.bf16.gmra.mxu1 %v11640_v47  ;;  %v11710_v2 = vpop.f32.mrf.mxu1  ;;  %v9841_v47 = vld [vmem:[%s12986_s3 + $0x180] sm:$0xff]  }
 0x3e7   : > { %9345 = vmatprep.mubr.bf16.mxu1 %v4202_v53  ;;  %v4735_v53 = vld [vmem:[#allocation2 + $0x28] sm:$0xff] }
 0x3e8   : > { %v11715_v58 = vpop.f32.mrf.mxu1  ;;  %v4762_v50 = vpack.c.bf16 %v4735_v53, %v4734_v4  ;;  %v4749_v4 = vld [vmem:[#allocation2 + $0x98] sm:$0xff] }
 0x3ea   : > { %v11720_v49 = vpop.f32.mrf.mxu1 }
 0x3ec   : > { %v11725_v40 = vpop.f32.mrf.mxu1 }
 0x3ed   : > { %12995 = vst [vmem:[#allocation6_spill] sm:$0xff] %v11725_v40 }
 0x3ee   : > { %9346 = vmatmul.mubr.bf16.vlgmr.msra.gmra.mxu1 %v4203_v43 }
 0x3ef   : > { %9349 = vmatprep.mubr.bf16.mxu1 %v4204_v61  ;;  %9418 = vmatpush3.bf16.msra.mxu1 %v9834_v52  ;;  %v4197_v52 = vld [vmem:[#allocation2 + $0xc9] sm:$0xff] }
 0x3f0   : > { %9419 = vmatprep.subr.bf16.mxu1 %v9835_v5  ;;  %v4213_v33 = vpack.c.bf16 %v4197_v52, %v4196_v62  ;;  %v4739_v61 = vld [vmem:[#allocation2 + $0x48] sm:$0xff] }
 0x3f1   : > { %v4764_v42 = vpack.c.bf16 %v4739_v61, %v4738_v11 }
 0x3f3   : > { %9420 = vmatpush3.bf16.msra.mxu1 %v9835_v5  ;;  %v4737_v5 = vld [vmem:[#allocation2 + $0x38] sm:$0xff] }
 0x3f4   : > { %9421 = vmatprep.subr.bf16.mxu1 %v9836_v55  ;;  %v4763_v26 = vpack.c.bf16 %v4737_v5, %v4736_v36  ;;  %v4751_v5 = vld [vmem:[#allocation2 + $0xa8] sm:$0xff]  ;;  %v4748_v36 = vld [vmem:[#allocation2 + $0x90] sm:$0xff] }
 0x3f5   : > { %v4769_v11 = vpack.c.bf16 %v4749_v4, %v4748_v36  ;;  %v4757_v4 = vld [vmem:[#allocation2 + $0xd8] sm:$0xff]  ;;  %v4759_v36 = vld [vmem:[#allocation2 + $0xe8] sm:$0xff] }
 0x3f6   : > { %9350 = vmatmul.mubr.bf16.gmra.mxu1 %v4205_v1  ;;  %v11730_v9 = vpop.f32.mrf.mxu1  ;;  %v9843_v1 = vld [vmem:[%s12986_s3 + $0x230] sm:$0xff]  }
 0x3f7   : > { %9353 = vmatprep.mubr.bf16.mxu1 %v4206_v10  ;;  %9422 = vmatpush3.bf16.msra.mxu1 %v9836_v55  ;;  %v11773_v55 = vpop.f32.mrf.mxu0 }
 0x3f8   : > { %9423 = vmatprep.subr.bf16.mxu1 %v9837_v59  ;;  %v11735_v30 = vpop.f32.mrf.mxu1 }
 0x3fa   : > { %v11740_v25 = vpop.f32.mrf.mxu1 }
 0x3fb   : > { %9424 = vmatpush3.bf16.msra.mxu1 %v9837_v59 }
 0x3fc   : > { %9425 = vmatprep.subr.bf16.mxu1 %v9838_v7  ;;  %v11745_v48 = vpop.f32.mrf.mxu1 }
 0x3fd   : > { %12996 = vst [vmem:[#allocation7_spill] sm:$0xff] %v11745_v48  ;;  %v5295_v48 = vld [vmem:[#allocation2 + $0x2a] sm:$0xff] }
 0x3fe   : > { %9354 = vmatmul.mubr.bf16.gmra.mxu1 %v4207_v46  ;;  %v4740_v46 = vld [vmem:[#allocation2 + $0x50] sm:$0xff] }
 0x3ff   : > { %9357 = vmatprep.mubr.bf16.mxu1 %v4208_v19  ;;  %9426 = vmatpush3.bf16.msra.mxu1 %v9838_v7  ;;  %v9844_v7 = vld [vmem:[%s12986_s3 + $0x228] sm:$0xff]   ;;  %v4742_v19 = vld [vmem:[#allocation2 + $0x60] sm:$0xff] }
 0x400   : > { %9427 = vmatprep.subr.bf16.mxu1 %v9839_v29  ;;  %v4766_v14 = vpack.c.bf16 %v4743_v27, %v4742_v19 }
 0x403   : > { %9428 = vmatpush3.bf16.msra.mxu1 %v9839_v29  ;;  %v4765_v29 = vpack.c.bf16 %v4741_v12, %v4740_v46 }
 0x404   : > { %9429 = vmatprep.subr.bf16.mxu1 %v9840_v35 }
 0x406   : > { %9358 = vmatmul.mubr.bf16.gmra.mxu1 %v4209_v6  ;;  %v11747_v63 = vpop.f32.mrf.mxu1  ;;  %v9846_v6 = vld [vmem:[%s12986_s3 + $0x218] sm:$0xff]  }
 0x407   : > { %9361 = vmatprep.mubr.bf16.mxu1 %v4210_v3  ;;  %9430 = vmatpush3.bf16.msra.mxu1 %v9840_v35  ;;  %v9845_v35 = vld [vmem:[%s12986_s3 + $0x220] sm:$0xff]   ;;  %v4747_v3 = vld [vmem:[#allocation2 + $0x88] sm:$0xff] }
 0x408   : > { %9431 = vmatprep.subr.bf16.mxu1 %v9841_v47  ;;  %v11749_v31 = vpop.f32.mrf.mxu1 }
 0x40a   : > { %v11753_v32 = vpop.f32.mrf.mxu1 }
 0x40b   : > { %9432 = vmatpush3.bf16.msra.mxu1 %v9841_v47  ;;  %v4745_v47 = vld [vmem:[#allocation2 + $0x78] sm:$0xff] }
 0x40c   : > { %9505 = vmatprep.subr.bf16.mxu1 %v9842_v37  ;;  %v11758_v18 = vpop.f32.mrf.mxu1 }
 0x40e   : > { %9362 = vmatmul.mubr.bf16.gmra.mxu1 %v4211_v45  ;;  %v9847_v45 = vld [vmem:[%s12986_s3 + $0x210] sm:$0xff]  }
 0x40f   : > { %9365 = vmatprep.mubr.bf16.mxu1 %v4212_v34  ;;  %v4768_v34 = vpack.c.bf16 %v4747_v3, %v4746_v44 }
 0x416   : > { %9366 = vmatmul.mubr.bf16.gmra.mxu1 %v4213_v33  ;;  %v11762_v28 = vpop.f32.mrf.mxu1  ;;  %v9848_v33 = vld [vmem:[%s12986_s3 + $0x208] sm:$0xff]  }
 0x417   : > { %9369 = vmatprep.mubr.bf16.mxu1 %v11545_v22 }
 0x418   : > { %v11766_v43 = vpop.f32.mrf.mxu1 }
 0x41a   : > { %v11771_v22 = vpop.f32.mrf.mxu1 }
 0x41c   : > { %v11778_v59 = vpop.f32.mrf.mxu1 }
 0x41e   : > { %9370 = vmatmul.mubr.bf16.gmra.mxu1 %v11692_v23  ;;  %v11780_v23 = vpop.f32.mrf.mxu0 }
 0x41f   : > { %9433 = vmatprep.mubr.bf16.mxu1 %v4762_v50 }
 0x420   : > { %v11787_v57 = vpop.f32.mrf.mxu0 }
 0x421   : > { %12998 = vst [vmem:[#allocation9_spill] sm:$0xff] %v11787_v57  ;;  %v4760_v57 = vld [vmem:[#allocation2 + $0xf0] sm:$0xff] }
 0x422   : > { %v11794_v16 = vpop.f32.mrf.mxu0 }
 0x424   : > { %v11801_v20 = vpop.f32.mrf.mxu0 }
 0x426   : > { %9434 = vmatmul.mubr.bf16.vlgmr.msra.gmra.mxu1 %v4763_v26  ;;  %v11782_v10 = vpop.f32.mrf.mxu1  ;;  %v11808_v54 = vpop.f32.mrf.mxu0 }
 0x427   : > { %9437 = vmatprep.mubr.bf16.mxu1 %v4764_v42  ;;  %9506 = vmatpush3.bf16.msra.mxu1 %v9842_v37  ;;  %v4744_v37 = vld [vmem:[#allocation2 + $0x70] sm:$0xff]  ;;  %v9849_v42 = vld [vmem:[%s12986_s3 + $0x200] sm:$0xff]  }
 0x428   : > { %9507 = vmatprep.subr.bf16.mxu1 %v9843_v1  ;;  %v11789_v8 = vpop.f32.mrf.mxu1  ;;  %v4767_v24 = vpack.c.bf16 %v4745_v47, %v4744_v37  ;;  %v11817_v53 = vpop.f32.mrf.mxu0  ;;  %v4754_v37 = vld [vmem:[#allocation2 + $0xc0] sm:$0xff] }
 0x429   : > { %12999 = vst [vmem:[#allocation10_spill] sm:$0xff] %v11817_v53 }
 0x42a   : > { %v11796_v41 = vpop.f32.mrf.mxu1  ;;  %v11821_v61 = vpop.f32.mrf.mxu0 }
 0x42b   : > { %9508 = vmatpush3.bf16.msra.mxu1 %v9843_v1  ;;  %13000 = vst [vmem:[#allocation11_spill] sm:$0xff] %v11821_v61  ;;  %v4750_v1 = vld [vmem:[#allocation2 + $0xa0] sm:$0xff] }
 0x42c   : > { %9509 = vmatprep.subr.bf16.mxu1 %v9844_v7  ;;  %v11803_v51 = vpop.f32.mrf.mxu1  ;;  %v11830_v27 = vpop.f32.mrf.mxu0 }
 0x42d   : > { %13001 = vst [vmem:[#allocation12_spill] sm:$0xff] %v11830_v27 }
 0x42e   : > { %9438 = vmatmul.mubr.bf16.gmra.mxu1 %v4765_v29  ;;  %v4753_v29 = vld [vmem:[#allocation2 + $0xb8] sm:$0xff] }
 0x42f   : > { %9441 = vmatprep.mubr.bf16.mxu1 %v4766_v14  ;;  %9510 = vmatpush3.bf16.msra.mxu1 %v9844_v7  ;;  %v4770_v7 = vpack.c.bf16 %v4751_v5, %v4750_v1  ;;  %v11836_v14 = vpop.f32.mrf.mxu0 }
 0x430   : > { %9511 = vmatprep.subr.bf16.mxu1 %v9845_v35  ;;  %13002 = vst [vmem:[#allocation13_spill] sm:$0xff] %v11836_v14 }
 0x433   : > { %9512 = vmatpush3.bf16.msra.mxu1 %v9845_v35  ;;  %v4755_v35 = vld [vmem:[#allocation2 + $0xc8] sm:$0xff] }
 0x434   : > { %9513 = vmatprep.subr.bf16.mxu1 %v9846_v6 }
 0x436   : > { %v11810_v52 = vpop.f32.mrf.mxu1  ;;  %9442 = vmatmul.mubr.bf16.gmra.mxu1 %v4767_v24  ;;  %v4772_v24 = vpack.c.bf16 %v4755_v35, %v4754_v37 }
 0x437   : > { %9445 = vmatprep.mubr.bf16.mxu1 %v4768_v34  ;;  %9514 = vmatpush3.bf16.msra.mxu1 %v9846_v6  ;;  %v4752_v6 = vld [vmem:[#allocation2 + $0xb0] sm:$0xff] }
 0x438   : > { %v11812_v62 = vpop.f32.mrf.mxu1  ;;  %9515 = vmatprep.subr.bf16.mxu1 %v9847_v45  ;;  %v4771_v3 = vpack.c.bf16 %v4753_v29, %v4752_v6 }
 0x43a   : > { %v11819_v50 = vpop.f32.mrf.mxu1 }
 0x43b   : > { %9516 = vmatpush3.bf16.msra.mxu1 %v9847_v45  ;;  %v11842_v45 = vpop.f32.mrf.mxu0 }
 0x43c   : > { %v11823_v26 = vpop.f32.mrf.mxu1  ;;  %9517 = vmatprep.subr.bf16.mxu1 %v9848_v33  ;;  %13004 = vst [vmem:[#allocation15_spill] sm:$0xff] %v11842_v45 }
 0x43e   : > { %v11828_v12 = vpop.f32.mrf.mxu1  ;;  %9446 = vmatmul.mubr.bf16.gmra.mxu1 %v4769_v11  ;;  %v4756_v11 = vld [vmem:[#allocation2 + $0xd0] sm:$0xff] }
 0x43f   : > { %9449 = vmatprep.mubr.bf16.mxu1 %v4770_v7  ;;  %9518 = vmatpush3.bf16.msra.mxu1 %v9848_v33  ;;  %v11846_v33 = vpop.f32.mrf.mxu0  ;;  %v4758_v7 = vld [vmem:[#allocation2 + $0xe0] sm:$0xff] }
 0x440   : > { %v11832_v46 = vpop.f32.mrf.mxu1  ;;  %9519 = vmatprep.subr.bf16.mxu1 %v9849_v42  ;;  %13005 = vst [vmem:[#allocation16_spill] sm:$0xff] %v11846_v33  ;;  %v4774_v35 = vpack.c.bf16 %v4759_v36, %v4758_v7  ;;  %v5303_v33 = vld [vmem:[#allocation2 + $0x6a] sm:$0xff] }
 0x441   : > { %v11852_v29 = vpop.f32.mrf.mxu0 }
 0x442   : > { %v11834_v19 = vpop.f32.mrf.mxu1  ;;  %13007 = vst [vmem:[#allocation18_spill] sm:$0xff] %v11852_v29 }
 0x443   : > { %9520 = vmatpush3.bf16.msra.mxu1 %v9849_v42  ;;  %v4773_v42 = vpack.c.bf16 %v4757_v4, %v4756_v11  ;;  %v11858_v37 = vpop.f32.mrf.mxu0  ;;  %v5294_v11 = vld [vmem:[#allocation2 + $0x22] sm:$0xff] }
 0x444   : > { %v11838_v47 = vpop.f32.mrf.mxu1  ;;  %13008 = vst [vmem:[#allocation19_spill] sm:$0xff] %v11858_v37  ;;  %v5322_v36 = vpack.c.bf16 %v5295_v48, %v5294_v11 }
 0x445   : > { %13003 = vst [vmem:[#allocation14_spill] sm:$0xff] %v11838_v47 }
 0x446   : > { %v11840_v44 = vpop.f32.mrf.mxu1  ;;  %9450 = vmatmul.mubr.bf16.gmra.mxu1 %v4771_v3 }
 0x447   : > { %9453 = vmatprep.mubr.bf16.mxu1 %v4772_v24  ;;  %v4761_v24 = vld [vmem:[#allocation2 + $0xf8] sm:$0xff] }
 0x448   : > { %v11844_v34 = vpop.f32.mrf.mxu1  ;;  %v4775_v4 = vpack.c.bf16 %v4761_v24, %v4760_v57 }
 0x44a   : > { %v11848_v5 = vpop.f32.mrf.mxu1 }
 0x44c   : > { %v11850_v1 = vpop.f32.mrf.mxu1 }
 0x44d   : > { %13006 = vst [vmem:[#allocation17_spill] sm:$0xff] %v11850_v1  ;;  %v11864_v1 = vpop.f32.mrf.mxu0 }
 0x44e   : > { %v11854_v6 = vpop.f32.mrf.mxu1  ;;  %9454 = vmatmul.mubr.bf16.gmra.mxu1 %v4773_v42  ;;  %13010 = vst [vmem:[#allocation21_spill] sm:$0xff] %v11864_v1  ;;  %v5298_v1 = vld [vmem:[#allocation2 + $0x42] sm:$0xff] }
 0x44f   : > { %9457 = vmatprep.mubr.bf16.mxu1 %v4774_v35  ;;  %v11868_v42 = vpop.f32.mrf.mxu0  ;;  %v5324_v48 = vpack.c.bf16 %v5299_v21, %v5298_v1 }
 0x450   : > { %v11856_v3 = vpop.f32.mrf.mxu1  ;;  %13011 = vst [vmem:[#allocation22_spill] sm:$0xff] %v11868_v42  ;;  %v5301_v42 = vld [vmem:[#allocation2 + $0x5a] sm:$0xff] }
 0x451   : > { %v11874_v37 = vpop.f32.mrf.mxu0 }
 0x452   : > { %v11860_v53 = vpop.f32.mrf.mxu1  ;;  %13012 = vst [vmem:[#allocation23_spill] sm:$0xff] %v11874_v37  ;;  %v5300_v37 = vld [vmem:[#allocation2 + $0x52] sm:$0xff] }
 0x453   : > { %v5325_v27 = vpack.c.bf16 %v5301_v42, %v5300_v37  ;;  %v5305_v37 = vld [vmem:[#allocation2 + $0x7a] sm:$0xff] }
 0x454   : > { %v11862_v40 = vpop.f32.mrf.mxu1 }
 0x455   : > { %13009 = vst [vmem:[#allocation20_spill] sm:$0xff] %v11862_v40  ;;  %v5296_v40 = vld [vmem:[#allocation2 + $0x32] sm:$0xff] }
 0x456   : > { %v11866_v7 = vpop.f32.mrf.mxu1  ;;  %9458 = vmatmul.mubr.bf16.gmra.mxu1 %v4775_v4  ;;  %v5323_v24 = vpack.c.bf16 %v5297_v17, %v5296_v40  ;;  %v11880_v4 = vpop.f32.mrf.mxu0  ;;  %v5302_v40 = vld [vmem:[#allocation2 + $0x62] sm:$0xff] }
 0x457   : > { %9521 = vmatprep.mubr.bf16.mxu1 %v5322_v36  ;;  %13014 = vst [vmem:[#allocation25_spill] sm:$0xff] %v11880_v4  ;;  %v5326_v1 = vpack.c.bf16 %v5303_v33, %v5302_v40 }
 0x458   : > { %v11870_v35 = vpop.f32.mrf.mxu1  ;;  %v11886_v45 = vpop.f32.mrf.mxu0 }
 0x459   : > { %13015 = vst [vmem:[#allocation26_spill] sm:$0xff] %v11886_v45 }
 0x45a   : > { %v11872_v47 = vpop.f32.mrf.mxu1  ;;  %v11888_v17 = vpop.f32.mrf.mxu0 }
 0x45b   : > { %13016 = vst [vmem:[#allocation27_spill] sm:$0xff] %v11888_v17 }
 0x45c   : > { %v11876_v57 = vpop.f32.mrf.mxu1  ;;  %v11896_v61 = vpop.f32.mrf.mxu0 }
 0x45d   : > { %13013 = vst [vmem:[#allocation24_spill] sm:$0xff] %v11876_v57  ;;  %13017 = vst [vmem:[#allocation28_spill] sm:$0xff] %v11896_v61  ;;  %v5307_v57 = vld [vmem:[#allocation2 + $0x8a] sm:$0xff] }
 0x45e   : > { %v11878_v11 = vpop.f32.mrf.mxu1  ;;  %9522 = vmatmul.mubr.bf16.vlgmr.msra.gmra.mxu1 %v5323_v24  ;;  %v11904_v40 = vpop.f32.mrf.mxu0 }
 0x45f   : > { %9525 = vmatprep.mubr.bf16.mxu1 %v5324_v48  ;;  %13018 = vst [vmem:[#allocation29_spill] sm:$0xff] %v11904_v40 }
 0x460   : > { %v11882_v36 = vpop.f32.mrf.mxu1  ;;  %v11912_v61 = vpop.f32.mrf.mxu0 }
 0x462   : > { %v11884_v29 = vpop.f32.mrf.mxu1 }
 0x464   : > { %v3570_v14 = vpop.f32.mrf.mxu1 }
 0x465   : > { %v11891_v21 = vadd.f32 %v3570_v14, %v11778_v59  ;;  %v5304_v59 = vld [vmem:[#allocation2 + $0x72] sm:$0xff] }
 0x466   : > { %v9235_v24 = vpop.f32.mrf.mxu1  ;;  %9526 = vmatmul.mubr.bf16.gmra.mxu1 %v5325_v27  ;;  %v5327_v33 = vpack.c.bf16 %v5305_v37, %v5304_v59  ;;  %v5306_v27 = vld [vmem:[#allocation2 + $0x82] sm:$0xff]  ;;  %v5309_v37 = vld [vmem:[#allocation2 + $0x9a] sm:$0xff]  ;;  %v5311_v59 = vld [vmem:[#allocation2 + $0xaa] sm:$0xff] }
 0x467   : > { %v11894_v48 = vadd.f32 %v9235_v24, %v11782_v10  ;;  %9529 = vmatprep.mubr.bf16.mxu1 %v5326_v1  ;;  %v5328_v1 = vpack.c.bf16 %v5307_v57, %v5306_v27  ;;  %v11922_v27 = vpop.f32.mrf.mxu0 }
 0x468   : > { %v3583_v4 = vpop.f32.mrf.mxu1 }
 0x469   : > { %v11899_v45 = vadd.f32 %v3583_v4, %v11789_v8 }
 0x46a   : > { %v9236_v42 = vpop.f32.mrf.mxu1 }
 0x46b   : > { %v11902_v17 = vadd.f32 %v9236_v42, %v11796_v41 }
 0x46c   : > { %v3586_v14 = vpop.f32.mrf.mxu1 }
 0x46d   : > { %v11907_v10 = vadd.f32 %v3586_v14, %v11803_v51  ;;  %v5308_v51 = vld [vmem:[#allocation2 + $0x92] sm:$0xff] }
 0x46e   : > { %v9239_v24 = vpop.f32.mrf.mxu1  ;;  %9530 = vmatmul.mubr.bf16.gmra.mxu1 %v5327_v33  ;;  %v5329_v14 = vpack.c.bf16 %v5309_v37, %v5308_v51  ;;  %v5310_v33 = vld [vmem:[#allocation2 + $0xa2] sm:$0xff]  ;;  %v3515_v37 = vadd.f32 %v11834_v19, %v11703_v56  ;;  %v11933_v51 = vpop.f32.mrf.mxu0 }
 0x46f   : > { %v11910_v8 = vadd.f32 %v9239_v24, %v11810_v52  ;;  %9533 = vmatprep.mubr.bf16.mxu1 %v5328_v1  ;;  %v3512_v52 = vadd.f32 %v11828_v12, %v11698_v0  ;;  %v5313_v12 = vld [vmem:[#allocation2 + $0xba] sm:$0xff] }
 0x470   : > { %v3599_v4 = vpop.f32.mrf.mxu1 }
 0x471   : > { %v11915_v41 = vadd.f32 %v3599_v4, %v11812_v62  ;;  %v5330_v62 = vpack.c.bf16 %v5311_v59, %v5310_v33  ;;  %v3504_v4 = vadd.f32 %v11832_v46, %v11700_v39  ;;  %v5314_v46 = vld [vmem:[#allocation2 + $0xc2] sm:$0xff] }
 0x472   : > { %v9240_v42 = vpop.f32.mrf.mxu1 }
 0x473   : > { %v11918_v40 = vadd.f32 %v9240_v42, %v11819_v50 }
 0x474   : > { %v3602_v57 = vpop.f32.mrf.mxu1 }
 0x475   : > { %v11925_v1 = vadd.f32 %v3602_v57, %v11823_v26  ;;  %v5315_v57 = vld [vmem:[#allocation2 + $0xca] sm:$0xff] }
 0x476   : > { %v9259_v24 = vpop.f32.mrf.mxu1  ;;  %9534 = vmatmul.mubr.bf16.gmra.mxu1 %v5329_v14  ;;  %v5312_v14 = vld [vmem:[#allocation2 + $0xb2] sm:$0xff]  ;;  %v5332_v56 = vpack.c.bf16 %v5315_v57, %v5314_v46 }
 0x477   : > { %v11929_v50 = vadd.f32 %v9259_v24, %v3512_v52  ;;  %9537 = vmatprep.mubr.bf16.mxu1 %v5330_v62  ;;  %v5331_v39 = vpack.c.bf16 %v5313_v12, %v5312_v14  ;;  %v3528_v52 = vadd.f32 %v11840_v44, %v11710_v2  ;;  %v11943_v62 = vpop.f32.mrf.mxu0  ;;  %v3520_v24 = vadd.f32 %v11844_v34, %v11715_v58  ;;  %v5317_v2 = vld [vmem:[#allocation2 + $0xda] sm:$0xff]  ;;  %v5319_v14 = vld [vmem:[#allocation2 + $0xea] sm:$0xff]  ;;  %v5318_v34 = vld [vmem:[#allocation2 + $0xe2] sm:$0xff] }
 0x478   : > { %v3755_v42 = vpop.f32.mrf.mxu1  ;;  %v3531_v12 = vadd.f32 %v11848_v5, %v11720_v49  ;;  %v3536_v49 = vadd.f32 %v11856_v3, %v11735_v30  ;;  %v3560_v3 = vadd.f32 %v11866_v7, %v11747_v63 }
 0x479   : > { %v11935_v0 = vadd.f32 %v3755_v42, %v3504_v4 }
 0x47a   : > { %v9260_v26 = vpop.f32.mrf.mxu1 }
 0x47b   : > { %v11937_v59 = vadd.f32 %v9260_v26, %v3515_v37  ;;  %v11949_v37 = vpop.f32.mrf.mxu0 }
 0x47c   : > { %v11939_v33 = vpop.f32.mrf.mxu1  ;;  %13019 = vst [vmem:[#allocation30_spill] sm:$0xff] %v11949_v37 }
 0x47e   : > { %v9263_v19 = vpop.f32.mrf.mxu1  ;;  %9538 = vmatmul.mubr.bf16.gmra.mxu1 %v5331_v39  ;;  %v5316_v39 = vld [vmem:[#allocation2 + $0xd2] sm:$0xff] }
 0x47f   : > { %v11947_v4 = vadd.f32 %v9263_v19, %v3528_v52  ;;  %9541 = vmatprep.mubr.bf16.mxu1 %v5332_v56  ;;  %v5333_v58 = vpack.c.bf16 %v5317_v2, %v5316_v39  ;;  %v11959_v52 = vpop.f32.mrf.mxu0  ;;  %v3544_v56 = vadd.f32 %v11854_v6, %v11730_v9  ;;  %v5334_v19 = vpack.c.bf16 %v5319_v14, %v5318_v34  ;;  %v5320_v6 = vld [vmem:[#allocation2 + $0xf2] sm:$0xff] }
 0x480   : > { %v3771_v42 = vpop.f32.mrf.mxu1 }
 0x481   : > { %v11953_v26 = vadd.f32 %v3771_v42, %v3520_v24  ;;  %v11967_v42 = vpop.f32.mrf.mxu0 }
 0x482   : > { %v9264_v44 = vpop.f32.mrf.mxu1 }
 0x483   : > { %v11955_v57 = vadd.f32 %v9264_v44, %v3531_v12  ;;  %v3547_v12 = vadd.f32 %v11860_v53, %v11740_v25  ;;  %v5321_v44 = vld [vmem:[#allocation2 + $0xfa] sm:$0xff]  ;;  %v11977_v30 = vpop.f32.mrf.mxu0  ;;  %v3552_v25 = vadd.f32 %v11870_v35, %v11749_v31  ;;  %v3576_v31 = vadd.f32 %v11878_v11, %v11762_v28 }
 0x484   : > { %v11957_v46 = vpop.f32.mrf.mxu1  ;;  %v3568_v35 = vadd.f32 %v11882_v36, %v11766_v43 }
 0x486   : > { %v9267_v37 = vpop.f32.mrf.mxu1  ;;  %9542 = vmatmul.mubr.bf16.gmra.mxu1 %v5333_v58  ;;  %v5335_v58 = vpack.c.bf16 %v5321_v44, %v5320_v6 }
 0x487   : > { %v11965_v5 = vadd.f32 %v9267_v37, %v3544_v56  ;;  %9545 = vmatprep.mubr.bf16.mxu1 %v5334_v19  ;;  %v11985_v56 = vpop.f32.mrf.mxu0  ;;  %v3563_v19 = vadd.f32 %v11872_v47, %v11753_v32  ;;  %v3579_v47 = vadd.f32 %v11884_v29, %v11771_v22 }
 0x488   : > { %v3787_v24 = vpop.f32.mrf.mxu1 }
 0x489   : > { %v11971_v2 = vadd.f32 %v3787_v24, %v3536_v49  ;;  %v11995_v63 = vpop.f32.mrf.mxu0 }
 0x48a   : > { %v9268_v39 = vpop.f32.mrf.mxu1 }
 0x48b   : > { %v11973_v9 = vadd.f32 %v9268_v39, %v3547_v12  ;;  %v12003_v32 = vpop.f32.mrf.mxu0 }
 0x48c   : > { %v11975_v14 = vpop.f32.mrf.mxu1 }
 0x48d   : > { %v12013_v28 = vpop.f32.mrf.mxu0 }
 0x48e   : > { %v9271_v37 = vpop.f32.mrf.mxu1  ;;  %9546 = vmatmul.mubr.bf16.gmra.mxu1 %v5335_v58 }
 0x48f   : > { %v11983_v53 = vadd.f32 %v9271_v37, %v3560_v3 }
 0x490   : > { %v3803_v34 = vpop.f32.mrf.mxu1 }
 0x491   : > { %v11989_v49 = vadd.f32 %v3803_v34, %v3552_v25  ;;  %v12018_v34 = vpop.f32.mrf.mxu0 }
 0x492   : > { %v9272_v24 = vpop.f32.mrf.mxu1 }
 0x493   : > { %v11991_v12 = vadd.f32 %v9272_v24, %v3563_v19 }
 0x494   : > { %v11993_v44 = vpop.f32.mrf.mxu1 }
 0x496   : > { %v9275_v7 = vpop.f32.mrf.mxu1 }
 0x497   : > { %v12001_v39 = vadd.f32 %v9275_v7, %v3576_v31  ;;  %v12028_v31 = vpop.f32.mrf.mxu0 }
 0x498   : > { %v3819_v6 = vpop.f32.mrf.mxu1  ;;  %13020 = vst [vmem:[#allocation31_spill] sm:$0xff] %v12028_v31 }
 0x499   : > { %v12007_v58 = vadd.f32 %v3819_v6, %v3568_v35  ;;  %v12033_v6 = vpop.f32.mrf.mxu0 }
 0x49a   : > { %v9276_v3 = vpop.f32.mrf.mxu1  ;;  %13021 = vst [vmem:[#allocation32_spill] sm:$0xff] %v12033_v6 }
 0x49b   : > { %v12009_v37 = vadd.f32 %v9276_v3, %v3579_v47 }
 0x49c   : > { %v12011_v25 = vpop.f32.mrf.mxu1 }
 0x49e   : > { %v9279_v11 = vpop.f32.mrf.mxu1 }
 0x49f   : > { %v12016_v43 = vadd.f32 %v9279_v11, %v11894_v48  ;;  %v12043_v11 = vpop.f32.mrf.mxu0 }
 0x4a0   : > { %v3835_v36 = vpop.f32.mrf.mxu1  ;;  %13022 = vst [vmem:[#allocation33_spill] sm:$0xff] %v12043_v11 }
 0x4a1   : > { %v12021_v19 = vadd.f32 %v3835_v36, %v11899_v45  ;;  %v4148_v36 = vadd.f32 %v11751_v13, %v11929_v50  ;;  %v4152_v50 = vadd.f32 %v11769_v15, %v11947_v4  ;;  %v4156_v4 = vadd.f32 %v11794_v16, %v11965_v5  ;;  %v13028_v16 = vld [vmem:[#allocation24_spill] sm:$0xff] }
 0x4a2   : > { %v9280_v22 = vpop.f32.mrf.mxu1  ;;  %v3555_v5 = vadd.f32 %v13028_v16, %v11758_v18  ;;  %v13033_v18 = vld [vmem:[#allocation13_spill] sm:$0xff] }
 0x4a3   : > { %v12024_v29 = vadd.f32 %v9280_v22, %v11902_v17  ;;  %v4161_v16 = vadd.f32 %v13033_v18, %v11991_v12  ;;  %v13040_v12 = vld [vmem:[#allocation18_spill] sm:$0xff] }
 0x4a4   : > { %v12026_v24 = vpop.f32.mrf.mxu1 }
 0x4a6   : > { %v9283_v7 = vpop.f32.mrf.mxu1 }
 0x4a7   : > { %v12031_v35 = vadd.f32 %v9283_v7, %v11910_v8  ;;  %v4146_v7 = vadd.f32 %v11755_v60, %v11935_v0  ;;  %v4150_v0 = vadd.f32 %v11773_v55, %v11953_v26  ;;  %v4154_v26 = vadd.f32 %v11801_v20, %v11971_v2  ;;  %v13030_v20 = vld [vmem:[#allocation11_spill] sm:$0xff] }
 0x4a8   : > { %v3851_v48 = vpop.f32.mrf.mxu1  ;;  %v4160_v2 = vadd.f32 %v13030_v20, %v11983_v53  ;;  %v13035_v53 = vld [vmem:[#allocation15_spill] sm:$0xff] }
 0x4a9   : > { %v12036_v47 = vadd.f32 %v3851_v48, %v11915_v41  ;;  %v12051_v41 = vpop.f32.mrf.mxu0 }
 0x4aa   : > { %v9284_v45 = vpop.f32.mrf.mxu1  ;;  %13023 = vst [vmem:[#allocation34_spill] sm:$0xff] %v12051_v41 }
 0x4ab   : > { %v12039_v3 = vadd.f32 %v9284_v45, %v11918_v40  ;;  %v4149_v40 = vadd.f32 %v11760_v38, %v11937_v59  ;;  %v12061_v13 = vpop.f32.mrf.mxu0  ;;  %v4153_v59 = vadd.f32 %v11780_v23, %v11955_v57  ;;  %v4157_v57 = vadd.f32 %v11808_v54, %v11973_v9  ;;  %v13031_v54 = vld [vmem:[#allocation12_spill] sm:$0xff] }
 0x4ac   : > { %v12041_v17 = vpop.f32.mrf.mxu1  ;;  %13024 = vst [vmem:[#allocation35_spill] sm:$0xff] %v12061_v13  ;;  %v4158_v9 = vadd.f32 %v13031_v54, %v11989_v49  ;;  %v13038_v49 = vld [vmem:[#allocation16_spill] sm:$0xff]  ;;  %v3883_v54 = vadd.f32 %v12011_v25, %v11891_v21 }
 0x4ae   : > { %v9347_v22 = vpop.f32.mrf.mxu1 }
 0x4af   : > { %v12047_v8 = vadd.f32 %v9347_v22, %v4148_v36  ;;  %v12069_v22 = vpop.f32.mrf.mxu0 }
 0x4b0   : > { %v4315_v6 = vpop.f32.mrf.mxu1  ;;  %13025 = vst [vmem:[#allocation36_spill] sm:$0xff] %v12069_v22 }
 0x4b1   : > { %v12053_v48 = vadd.f32 %v4315_v6, %v4146_v7  ;;  %v12079_v15 = vpop.f32.mrf.mxu0 }
 0x4b2   : > { %v9348_v45 = vpop.f32.mrf.mxu1  ;;  %13026 = vst [vmem:[#allocation37_spill] sm:$0xff] %v12079_v15 }
 0x4b3   : > { %v12057_v31 = vadd.f32 %v9348_v45, %v4149_v40 }
 0x4b4   : > { %v12059_v11 = vpop.f32.mrf.mxu1 }
 0x4b6   : > { %v9351_v36 = vpop.f32.mrf.mxu1 }
 0x4b7   : > { %v12065_v60 = vadd.f32 %v9351_v36, %v4152_v50 }
 0x4b8   : > { %v4331_v6 = vpop.f32.mrf.mxu1 }
 0x4b9   : > { %v12071_v38 = vadd.f32 %v4331_v6, %v4150_v0  ;;  %v12087_v0 = vpop.f32.mrf.mxu0 }
 0x4ba   : > { %v9352_v7 = vpop.f32.mrf.mxu1  ;;  %13027 = vst [vmem:[#allocation38_spill] sm:$0xff] %v12087_v0 }
 0x4bb   : > { %v12075_v40 = vadd.f32 %v9352_v7, %v4153_v59 }
 0x4bc   : > { %v12077_v45 = vpop.f32.mrf.mxu1 }
 0x4be   : > { %v9355_v50 = vpop.f32.mrf.mxu1 }
 0x4bf   : > { %v12083_v55 = vadd.f32 %v9355_v50, %v4156_v4  ;;  %v12099_v4 = vpop.f32.mrf.mxu0 }
 0x4c0   : > { %v4347_v36 = vpop.f32.mrf.mxu1  ;;  %13029 = vst [vmem:[#allocation24_spill] sm:$0xff] %v12099_v4 }
 0x4c1   : > { %v12089_v23 = vadd.f32 %v4347_v36, %v4154_v26  ;;  %v3879_v26 = vadd.f32 %v11993_v44, %v3555_v5 }
 0x4c2   : > { %v9356_v6 = vpop.f32.mrf.mxu1 }
 0x4c3   : > { %v12093_v59 = vadd.f32 %v9356_v6, %v4157_v57  ;;  %v12108_v6 = vpop.f32.mrf.mxu0  ;;  %v4159_v20 = vadd.f32 %v13035_v53, %v3879_v26 }
 0x4c4   : > { %v12095_v7 = vpop.f32.mrf.mxu1  ;;  %13032 = vst [vmem:[#allocation11_spill] sm:$0xff] %v12108_v6 }
 0x4c5   : > { %v12117_v44 = vpop.f32.mrf.mxu0 }
 0x4c6   : > { %v9359_v50 = vpop.f32.mrf.mxu1  ;;  %13036 = vst [vmem:[#allocation13_spill] sm:$0xff] %v12117_v44 }
 0x4c7   : > { %v12104_v36 = vadd.f32 %v9359_v50, %v4160_v2  ;;  %v4164_v2 = vadd.f32 %v13038_v49, %v12001_v39  ;;  %v12129_v18 = vpop.f32.mrf.mxu0  ;;  %v13045_v39 = vld [vmem:[#allocation21_spill] sm:$0xff] }
 0x4c8   : > { %v4363_v57 = vpop.f32.mrf.mxu1  ;;  %13041 = vst [vmem:[#allocation18_spill] sm:$0xff] %v12129_v18  ;;  %v4163_v49 = vadd.f32 %v13045_v39, %v3883_v54  ;;  %v12992_v39 = vmov 0  }
 0x4c9   : > { %v12110_v0 = vadd.f32 %v4363_v57, %v4158_v9  ;;  %v12138_v21 = vpop.f32.mrf.mxu0  ;;  %5939 = vmatprep.subr.bf16.mxu0 %v12992_v39 }
 0x4ca   : > { %v9360_v4 = vpop.f32.mrf.mxu1  ;;  %13046 = vst [vmem:[#allocation21_spill] sm:$0xff] %v12138_v21 }
 0x4cb   : > { %v12114_v15 = vadd.f32 %v9360_v4, %v4161_v16  ;;  %v4162_v4 = vadd.f32 %v13040_v12, %v12007_v58  ;;  %v13048_v58 = vld [vmem:[#allocation22_spill] sm:$0xff]  ;;  %v3887_v12 = vadd.f32 %v12026_v24, %v11907_v10 }
 0x4cc   : > { %v4366_v22 = vpop.f32.mrf.mxu1  ;;  %v13055_v10 = vld [vmem:[#allocation26_spill] sm:$0xff] }
 0x4cd   : > { %13034 = vst [vmem:[#allocation12_spill] sm:$0xff] %v12114_v15  ;;  %v12119_v5 = vadd.f32 %v4366_v22, %v4159_v20  ;;  %v13043_v22 = vld [vmem:[#allocation19_spill] sm:$0xff]  ;;  %v4167_v24 = vadd.f32 %v13055_v10, %v3887_v12  ;;  %v13063_v10 = vld [vmem:[#allocation29_spill] sm:$0xff] }
 0x4ce   : > { %v9363_v50 = vpop.f32.mrf.mxu1  ;;  %v4165_v16 = vadd.f32 %v13043_v22, %v12009_v37  ;;  %v13050_v37 = vld [vmem:[#allocation23_spill] sm:$0xff] }
 0x4cf   : > { %13037 = vst [vmem:[#allocation15_spill] sm:$0xff] %v12119_v5  ;;  %v12125_v9 = vadd.f32 %v9363_v50, %v4164_v2  ;;  %v4168_v2 = vadd.f32 %v13048_v58, %v12016_v43 }
 0x4d0   : > { %v4379_v57 = vpop.f32.mrf.mxu1 }
 0x4d1   : > { %13039 = vst [vmem:[#allocation16_spill] sm:$0xff] %v12125_v9  ;;  %v12131_v26 = vadd.f32 %v4379_v57, %v4162_v4  ;;  %v4166_v57 = vadd.f32 %v13050_v37, %v12021_v19 }
 0x4d2   : > { %v9364_v53 = vpop.f32.mrf.mxu1 }
 0x4d3   : > { %13042 = vst [vmem:[#allocation39_spill] sm:$0xff] %v12131_v26  ;;  %v12135_v20 = vadd.f32 %v9364_v53, %v4165_v16  ;;  %v12150_v16 = vpop.f32.mrf.mxu0 }
 0x4d4   : > { %v4382_v44 = vpop.f32.mrf.mxu1  ;;  %13051 = vst [vmem:[#allocation23_spill] sm:$0xff] %v12150_v16 }
 0x4d5   : > { %13044 = vst [vmem:[#allocation19_spill] sm:$0xff] %v12135_v20  ;;  %v12140_v25 = vadd.f32 %v4382_v44, %v4163_v49  ;;  %v13053_v44 = vld [vmem:[#allocation25_spill] sm:$0xff]  ;;  %v9852_v20 = vld [vmem:[%s12990_s7 + $0x4] ss:$8 sps:$4 sm:$0xff]  }
 0x4d6   : > { %v9367_v50 = vpop.f32.mrf.mxu1  ;;  %v4169_v53 = vadd.f32 %v13053_v44, %v12024_v29  ;;  %v3891_v29 = vadd.f32 %v12041_v17, %v11925_v1  ;;  %v13060_v44 = vld [vmem:[#allocation28_spill] sm:$0xff]  ;;  %7844 = vmatprep.mubr.msk.bf16.mxu0 %vm5910_vm3, %v9852_v20 }
 0x4d7   : > { %13047 = vst [vmem:[#allocation40_spill] sm:$0xff] %v12140_v25  ;;  %v12146_v4 = vadd.f32 %v9367_v50, %v4168_v2  ;;  %v12160_v2 = vpop.f32.mrf.mxu0  ;;  %v13058_v50 = vld [vmem:[#allocation27_spill] sm:$0xff]  ;;  %v13082_v20 = vld [vmem:[#allocation8_spill] sm:$0xff] }
 0x4d8   : > { %v4395_v22 = vpop.f32.mrf.mxu1  ;;  %13056 = vst [vmem:[#allocation26_spill] sm:$0xff] %v12160_v2  ;;  %v4172_v37 = vadd.f32 %v13058_v50, %v12031_v35  ;;  %v4171_v35 = vadd.f32 %v11912_v61, %v3891_v29 }
 0x4d9   : > { %13049 = vst [vmem:[#allocation22_spill] sm:$0xff] %v12146_v4  ;;  %v12152_v54 = vadd.f32 %v4395_v22, %v4166_v57  ;;  %v12172_v39 = vpop.f32.mrf.mxu0 }
 0x4da   : > { %v9368_v43 = vpop.f32.mrf.mxu1  ;;  %13061 = vst [vmem:[#allocation28_spill] sm:$0xff] %v12172_v39 }
 0x4db   : > { %13052 = vst [vmem:[#allocation41_spill] sm:$0xff] %v12152_v54  ;;  %v12157_v49 = vadd.f32 %v9368_v43, %v4169_v53  ;;  %v4170_v53 = vadd.f32 %v13060_v44, %v12036_v47  ;;  %v9479_v1 = vpop.f32.mrf.mxu0 }
 0x4dc   : > { %v4398_v58 = vpop.f32.mrf.mxu1 }
 0x4dd   : > { %13054 = vst [vmem:[#allocation25_spill] sm:$0xff] %v12157_v49  ;;  %v12162_v19 = vadd.f32 %v4398_v58, %v4167_v24  ;;  %v4173_v24 = vadd.f32 %v13063_v10, %v12039_v3  ;;  %v12183_v47 = vpop.f32.mrf.mxu0 }
 0x4de   : > { %v9371_v57 = vpop.f32.mrf.mxu1 }
 0x4df   : > { %13057 = vst [vmem:[#allocation42_spill] sm:$0xff] %v12162_v19  ;;  %v12168_v22 = vadd.f32 %v9371_v57, %v4172_v37 }
 0x4e0   : > { %v4411_v43 = vpop.f32.mrf.mxu1 }
 0x4e1   : > { %13059 = vst [vmem:[#allocation27_spill] sm:$0xff] %v12168_v22  ;;  %v12174_v12 = vadd.f32 %v4411_v43, %v4170_v53  ;;  %v12185_v53 = vpop.f32.mrf.mxu0 }
 0x4e2   : > { %v9372_v58 = vpop.f32.mrf.mxu1 }
 0x4e3   : > { %13062 = vst [vmem:[#allocation43_spill] sm:$0xff] %v12174_v12  ;;  %v12178_v2 = vadd.f32 %v9372_v58, %v4173_v24  ;;  %v12189_v3 = vpop.f32.mrf.mxu0 }
 0x4e4   : > { %v4414_v50 = vpop.f32.mrf.mxu1 }
 0x4e5   : > { %13064 = vst [vmem:[#allocation29_spill] sm:$0xff] %v12178_v2  ;;  %v12181_v17 = vadd.f32 %v4414_v50, %v4171_v35  ;;  %v12195_v29 = vpop.f32.mrf.mxu0 }
 0x4e6   : > { %v9435_v37 = vpop.f32.mrf.mxu1 }
 0x4e7   : > { %13065 = vst [vmem:[#allocation44_spill] sm:$0xff] %v12181_v17  ;;  %v12201_v35 = vpop.f32.mrf.mxu0 }
 0x4e8   : > { %v4875_v57 = vpop.f32.mrf.mxu1 }
 0x4e9   : > { %v12207_v2 = vpop.f32.mrf.mxu0 }
 0x4ea   : > { %v9436_v44 = vpop.f32.mrf.mxu1 }
 0x4eb   : > { %v12213_v22 = vpop.f32.mrf.mxu0 }
 0x4ec   : > { %v4878_v39 = vpop.f32.mrf.mxu1 }
 0x4ed   : > { %v12219_v49 = vpop.f32.mrf.mxu0 }
 0x4ee   : > { %v9439_v43 = vpop.f32.mrf.mxu1 }
 0x4ef   : > { %v12225_v4 = vpop.f32.mrf.mxu0 }
 0x4f0   : > { %v12187_v16 = vpop.f32.mrf.mxu1 }
 0x4f2   : > { %v12191_v10 = vpop.f32.mrf.mxu1 }
 0x4f4   : > { %v12193_v61 = vpop.f32.mrf.mxu1 }
 0x4f6   : > { %v12197_v24 = vpop.f32.mrf.mxu1 }
 0x4f8   : > { %v12199_v58 = vpop.f32.mrf.mxu1 }
 0x4fa   : > { %v12203_v50 = vpop.f32.mrf.mxu1 }
 0x4fc   : > { %v12205_v17 = vpop.f32.mrf.mxu1 }
 0x4fe   : > { %v12209_v12 = vpop.f32.mrf.mxu1 }
 0x4ff   : > { %13066 = vst [vmem:[#allocation45_spill] sm:$0xff] %v12209_v12 }
 0x500   : > { %v12211_v21 = vpop.f32.mrf.mxu1 }
 0x501   : > { %13067 = vst [vmem:[#allocation46_spill] sm:$0xff] %v12211_v21  ;;  %v13077_v21 = vld [vmem:[#allocation14_spill] sm:$0xff] }
 0x502   : > { %v12215_v18 = vpop.f32.mrf.mxu1 }
 0x503   : > { %13068 = vst [vmem:[#allocation47_spill] sm:$0xff] %v12215_v18 }
 0x504   : > { %v12217_v19 = vpop.f32.mrf.mxu1 }
 0x505   : > { %13069 = vst [vmem:[#allocation48_spill] sm:$0xff] %v12217_v19  ;;  %v12235_v19 = vpop.f32.mrf.mxu0 }
 0x506   : > { %v12221_v6 = vpop.f32.mrf.mxu1  ;;  %13074 = vst [vmem:[#allocation53_spill] sm:$0xff] %v12235_v19 }
 0x507   : > { %13070 = vst [vmem:[#allocation49_spill] sm:$0xff] %v12221_v6  ;;  %v13076_v6 = vld [vmem:[#allocation5_spill] sm:$0xff]  ;;  %v12243_v9 = vpop.f32.mrf.mxu0 }
 0x508   : > { %v12223_v54 = vpop.f32.mrf.mxu1  ;;  %13079 = vst [vmem:[#allocation14_spill] sm:$0xff] %v12243_v9 }
 0x509   : > { %13071 = vst [vmem:[#allocation50_spill] sm:$0xff] %v12223_v54  ;;  %v3507_v54 = vadd.f32 %v13077_v21, %v13076_v6  ;;  %v13084_v6 = vld [vmem:[#allocation6_spill] sm:$0xff]  ;;  %v13085_v21 = vld [vmem:[#allocation17_spill] sm:$0xff] }
 0x50a   : > { %v12227_v25 = vpop.f32.mrf.mxu1 }
 0x50b   : > { %13072 = vst [vmem:[#allocation51_spill] sm:$0xff] %v12227_v25  ;;  %v3867_v25 = vadd.f32 %v11939_v33, %v3507_v54 }
 0x50c   : > { %v12232_v26 = vpop.f32.mrf.mxu1 }
 0x50d   : > { %13073 = vst [vmem:[#allocation52_spill] sm:$0xff] %v12232_v26  ;;  %v12250_v26 = vpop.f32.mrf.mxu0  ;;  %v4147_v15 = vadd.f32 %v13082_v20, %v3867_v25 }
 0x50e   : > { %v12237_v18 = vpop.f32.mrf.mxu1 }
 0x50f   : > { %13075 = vst [vmem:[#allocation54_spill] sm:$0xff] %v12237_v18  ;;  %v4708_v18 = vadd.f32 %v11922_v27, %v12047_v8  ;;  %v4427_v9 = vadd.f32 %v12059_v11, %v4147_v15  ;;  %v12262_v33 = vpop.f32.mrf.mxu0  ;;  %v4709_v27 = vadd.f32 %v11943_v62, %v12057_v31  ;;  %v13087_v8 = vld [vmem:[#allocation30_spill] sm:$0xff] }
 0x510   : > { %v12241_v13 = vpop.f32.mrf.mxu1 }
 0x511   : > { %13078 = vst [vmem:[#allocation5_spill] sm:$0xff] %v12241_v13  ;;  %v3523_v13 = vadd.f32 %v13085_v21, %v13084_v6  ;;  %v4988_v54 = vadd.f32 %v9435_v37, %v4708_v18  ;;  %v4707_v6 = vadd.f32 %v13087_v8, %v4427_v9  ;;  %v12274_v11 = vpop.f32.mrf.mxu0  ;;  %v4989_v15 = vadd.f32 %v9436_v44, %v4709_v27  ;;  %v13088_v18 = vld [vmem:[#allocation9_spill] sm:$0xff] }
 0x512   : > { %v12246_v41 = vpop.f32.mrf.mxu1 }
 0x513   : > { %13080 = vst [vmem:[#allocation55_spill] sm:$0xff] %v12246_v41  ;;  %v3871_v25 = vadd.f32 %v11957_v46, %v3523_v13  ;;  %v4987_v41 = vadd.f32 %v4878_v39, %v4707_v6  ;;  %v13089_v13 = vld [vmem:[#allocation7_spill] sm:$0xff]  ;;  %v12288_v39 = vpop.f32.mrf.mxu0 }
 0x514   : > { %v12248_v5 = vpop.f32.mrf.mxu1 }
 0x515   : > { %13081 = vst [vmem:[#allocation56_spill] sm:$0xff] %v12248_v5  ;;  %v4706_v5 = vadd.f32 %v11933_v51, %v12053_v48  ;;  %v4151_v37 = vadd.f32 %v13088_v18, %v3871_v25  ;;  %v4712_v51 = vadd.f32 %v11959_v52, %v12065_v60  ;;  %v12282_v48 = vld [vmem:[%s12987_s4] ss:$0 sm:$0xff]  ;;  %v4710_v52 = vadd.f32 %v11967_v42, %v12071_v38 }
 0x516   : > { %v12253_v19 = vpop.f32.mrf.mxu1 }
 0x517   : > { %13083 = vst [vmem:[#allocation8_spill] sm:$0xff] %v12253_v19  ;;  %v4986_v19 = vadd.f32 %v4875_v57, %v4706_v5  ;;  %v13090_v5 = vld [vmem:[#allocation20_spill] sm:$0xff]  ;;  %v4992_v57 = vadd.f32 %v9439_v43, %v4712_v51  ;;  %v4990_v43 = vadd.f32 %v12187_v16, %v4710_v52 }
 0x518   : > { %v12260_v12 = vpop.f32.mrf.mxu1  ;;  %v3539_v9 = vadd.f32 %v13090_v5, %v13089_v13 }
 0x519   : > { %13086 = vst [vmem:[#allocation6_spill] sm:$0xff] %v12260_v12  ;;  %v5268_v12 = vadd.f32 %v9479_v1, %v4988_v54  ;;  %v5266_v31 = vadd.f32 %v12183_v47, %v4986_v19  ;;  %v4431_v1 = vadd.f32 %v12077_v45, %v4151_v37  ;;  %v4713_v47 = vadd.f32 %v11977_v30, %v12075_v40 }
 0x51a   : > { %v12267_v20 = vpop.f32.mrf.mxu1  ;;  %v3875_v19 = vadd.f32 %v11975_v14, %v3539_v9  ;;  %v5267_v45 = vadd.f32 %v12189_v3, %v4987_v41  ;;  %v12307_v14 = vpop.f32.mrf.mxu0  ;;  %v13091_v3 = vld [vmem:[#allocation10_spill] sm:$0xff] }
 0x51b   : > { %v4711_v8 = vadd.f32 %v11985_v56, %v4431_v1  ;;  %v4993_v30 = vadd.f32 %v12191_v10, %v4713_v47 }
 0x51c   : > { %v12272_v21 = vpop.f32.mrf.mxu1 }
 0x51d   : > { %v4991_v56 = vadd.f32 %v12193_v61, %v4711_v8  ;;  %v4714_v61 = vadd.f32 %v12003_v32, %v12089_v23 }
 0x51e   : > { %v9523_v46 = vpop.f32.mrf.mxu1 }
 0x51f   : > { %v5548_v62 = vadd.f32 %v9523_v46, %v5268_v12  ;;  %v5269_v12 = vadd.f32 %v12185_v53, %v4989_v15  ;;  %v5272_v53 = vadd.f32 %v12195_v29, %v4992_v57  ;;  %v4155_v15 = vadd.f32 %v13091_v3, %v3875_v19  ;;  %v13098_v3 = vld [vmem:[#allocation34_spill] sm:$0xff] }
 0x520   : > { %v5435_v44 = vpop.f32.mrf.mxu1  ;;  %v4716_v29 = vadd.f32 %v11995_v63, %v12083_v55  ;;  %v5270_v46 = vadd.f32 %v12201_v35, %v4990_v43  ;;  %v12331_v55 = vpop.f32.mrf.mxu0  ;;  %v5273_v35 = vadd.f32 %v12207_v2, %v4993_v30  ;;  %v5271_v32 = vadd.f32 %v12213_v22, %v4991_v56  ;;  %v13096_v30 = vld [vmem:[#allocation33_spill] sm:$0xff]  ;;  %v13100_v56 = vld [vmem:[#allocation35_spill] sm:$0xff] }
 0x521   : > { %v12293_v60 = vadd.f32 %v12282_v48, %v5548_v62  ;;  %v5546_v54 = vadd.f32 %v5435_v44, %v5266_v31  ;;  %v4435_v62 = vadd.f32 %v12095_v7, %v4155_v15  ;;  %v4717_v7 = vadd.f32 %v12013_v28, %v12093_v59  ;;  %v13099_v15 = vld [vmem:[#allocation16_spill] sm:$0xff] }
 0x522   : > { %v9524_v25 = vpop.f32.mrf.mxu1  ;;  %v4996_v31 = vadd.f32 %v12197_v24, %v4716_v29  ;;  %v4994_v23 = vadd.f32 %v12199_v58, %v4714_v61  ;;  %v12352_v28 = vpop.f32.mrf.mxu0  ;;  %v4724_v29 = vadd.f32 %v13100_v56, %v13099_v15  ;;  %v13101_v61 = vld [vmem:[#allocation53_spill] sm:$0xff]  ;;  %v13111_v15 = vld [vmem:[#allocation48_spill] sm:$0xff] }
 0x523   : > { %v5611_v27 = vmax.f32 %v12293_v60, 0.0  ;;  %v12303_v42 = vadd.f32 %v12282_v48, %v5546_v54  ;;  %v5549_v38 = vadd.f32 %v9524_v25, %v5269_v12  ;;  %v4715_v52 = vadd.f32 %v12018_v34, %v4435_v62  ;;  %v13092_v34 = vld [vmem:[#allocation31_spill] sm:$0xff] }
 0x524   : > { %v5438_v6 = vpop.f32.mrf.mxu1  ;;  %v5276_v54 = vadd.f32 %v12219_v49, %v4996_v31  ;;  %v4997_v59 = vadd.f32 %v12203_v50, %v4717_v7  ;;  %v4720_v47 = vadd.f32 %v13092_v34, %v12104_v36  ;;  %v13093_v49 = vld [vmem:[#allocation32_spill] sm:$0xff]  ;;  %v5274_v8 = vadd.f32 %v12225_v4, %v4994_v23  ;;  %v13103_v7 = vld [vmem:[#allocation39_spill] sm:$0xff] }
 0x525   : > { %5639 = vst [vmem:[#allocation3 + $0x10] sm:$0xff] %v5611_v27  ;;  %v5609_v41 = vmax.f32 %v12303_v42, 0.0  ;;  %v12314_v40 = vadd.f32 %v12282_v48, %v5549_v38  ;;  %v5547_v16 = vadd.f32 %v5438_v6, %v5267_v45  ;;  %v4995_v19 = vadd.f32 %v12205_v17, %v4715_v52  ;;  %v13094_v6 = vld [vmem:[#allocation45_spill] sm:$0xff] }
 0x526   : > { %v9527_v18 = vpop.f32.mrf.mxu1  ;;  %v4718_v25 = vadd.f32 %v13093_v49, %v12110_v0  ;;  %v5000_v17 = vadd.f32 %v13094_v6, %v4720_v47  ;;  %v13106_v49 = vld [vmem:[#allocation47_spill] sm:$0xff] }
 0x527   : > { %5637 = vst [vmem:[#allocation3] sm:$0xff] %v5609_v41  ;;  %v5612_v10 = vmax.f32 %v12314_v40, 0.0  ;;  %v12324_v37 = vadd.f32 %v12282_v48, %v5547_v16  ;;  %v5552_v51 = vadd.f32 %v9527_v18, %v5272_v53  ;;  %v13095_v53 = vld [vmem:[#allocation12_spill] sm:$0xff]  ;;  %v13097_v16 = vld [vmem:[#allocation15_spill] sm:$0xff] }
 0x528   : > { %v5451_v63 = vpop.f32.mrf.mxu1  ;;  %v4721_v36 = vadd.f32 %v13096_v30, %v13095_v53  ;;  %v4719_v0 = vadd.f32 %v13098_v3, %v13097_v16  ;;  %v5280_v53 = vadd.f32 %v12250_v26, %v5000_v17  ;;  %v13114_v26 = vld [vmem:[#allocation41_spill] sm:$0xff]  ;;  %v13115_v17 = vld [vmem:[#allocation11_spill] sm:$0xff] }
 0x529   : > { %5640 = vst [vmem:[#allocation3 + $0x18] sm:$0xff] %v5612_v10  ;;  %v5610_v13 = vmax.f32 %v12324_v37, 0.0  ;;  %v12337_v5 = vadd.f32 %v12282_v48, %v5552_v51  ;;  %v5550_v9 = vadd.f32 %v5451_v63, %v5270_v46  ;;  %v12380_v46 = vpop.f32.mrf.mxu0  ;;  %v5277_v63 = vadd.f32 %v13101_v61, %v4997_v59 }
 0x52a   : > { %v9528_v24 = vpop.f32.mrf.mxu1  ;;  %v4999_v56 = vadd.f32 %v13111_v15, %v4719_v0  ;;  %v12425_v61 = vadd.f32 %v13115_v17, %v13114_v26 }
 0x52b   : > { %5638 = vst [vmem:[#allocation3 + $0x8] sm:$0xff] %v5610_v13  ;;  %v5615_v1 = vmax.f32 %v12337_v5, 0.0  ;;  %v12348_v57 = vadd.f32 %v12282_v48, %v5550_v9  ;;  %v5553_v44 = vadd.f32 %v9528_v24, %v5273_v35  ;;  %v13102_v9 = vld [vmem:[#allocation46_spill] sm:$0xff]  ;;  %v13104_v24 = vld [vmem:[#allocation36_spill] sm:$0xff]  ;;  %v12411_v30 = vpop.f32.mrf.mxu0 }
 0x52c   : > { %v5454_v2 = vpop.f32.mrf.mxu1  ;;  %v4998_v35 = vadd.f32 %v13102_v9, %v4718_v25  ;;  %v5001_v25 = vadd.f32 %v13106_v49, %v4721_v36 }
 0x52d   : > { %5643 = vst [vmem:[#allocation3 + $0x30] sm:$0xff] %v5615_v1  ;;  %v5613_v22 = vmax.f32 %v12348_v57, 0.0  ;;  %v12359_v58 = vadd.f32 %v12282_v48, %v5553_v44  ;;  %v5551_v12 = vadd.f32 %v5454_v2, %v5271_v32  ;;  %v4722_v32 = vadd.f32 %v13104_v24, %v13103_v7  ;;  %v13105_v44 = vld [vmem:[#allocation14_spill] sm:$0xff] }
 0x52e   : > { %v9531_v45 = vpop.f32.mrf.mxu1  ;;  %v5275_v52 = vadd.f32 %v13105_v44, %v4995_v19  ;;  %v13107_v19 = vld [vmem:[#allocation19_spill] sm:$0xff]  ;;  %v5278_v9 = vadd.f32 %v12262_v33, %v4998_v35  ;;  %v13119_v33 = vld [vmem:[#allocation42_spill] sm:$0xff] }
 0x52f   : > { %5641 = vst [vmem:[#allocation3 + $0x20] sm:$0xff] %v5613_v22  ;;  %v5616_v50 = vmax.f32 %v12359_v58, 0.0  ;;  %v12370_v43 = vadd.f32 %v12282_v48, %v5551_v12  ;;  %v5556_v38 = vadd.f32 %v9531_v45, %v5276_v54  ;;  %v13108_v45 = vld [vmem:[#allocation37_spill] sm:$0xff]  ;;  %v13120_v35 = vld [vmem:[#allocation18_spill] sm:$0xff] }
 0x530   : > { %v5467_v18 = vpop.f32.mrf.mxu1  ;;  %v5693_v51 = vld [vmem:[#allocation3 + $0x11] sm:$0xff]  ;;  %v4725_v60 = vadd.f32 %v13108_v45, %v13107_v19  ;;  %v12443_v19 = vadd.f32 %v13120_v35, %v13119_v33 }
 0x531   : > { %5644 = vst [vmem:[#allocation3 + $0x38] sm:$0xff] %v5616_v50  ;;  %v5614_v4 = vmax.f32 %v12370_v43, 0.0  ;;  %v12386_v62 = vadd.f32 %v12282_v48, %v5556_v38  ;;  %v5554_v31 = vadd.f32 %v5467_v18, %v5274_v8  ;;  %v12395_v2 = vmax.f32 %v5611_v27, %v5693_v51  ;;  %v13109_v27 = vld [vmem:[#allocation40_spill] sm:$0xff]  ;;  %v13110_v38 = vld [vmem:[#allocation38_spill] sm:$0xff]  ;;  %v9871_v43 = vld [vmem:[%s12988_s5 + $0x70] sm:$0xff]  }
 0x532   : > { %v9532_v23 = vpop.f32.mrf.mxu1  ;;  %v5691_v54 = vld [vmem:[#allocation3 + $0x1] sm:$0xff]  ;;  %v4723_v8 = vadd.f32 %v13110_v38, %v13109_v27  ;;  %v5692_v36 = vld [vmem:[#allocation3 + $0x9] sm:$0xff] }
 0x533   : > { %5642 = vst [vmem:[#allocation3 + $0x28] sm:$0xff] %v5614_v4  ;;  %v5619_v12 = vmax.f32 %v12386_v62, 0.0  ;;  %v12401_v59 = vadd.f32 %v12282_v48, %v5554_v31  ;;  %v5557_v34 = vadd.f32 %v9532_v23, %v5277_v63  ;;  %v5717_v47 = vmax.f32 %v5609_v41, %v5691_v54  ;;  %v13112_v18 = vld [vmem:[#allocation22_spill] sm:$0xff]  ;;  %v13113_v51 = vld [vmem:[#allocation24_spill] sm:$0xff] }
 0x534   : > { %v5470_v6 = vpop.f32.mrf.mxu1  ;;  %v4728_v31 = vadd.f32 %v13113_v51, %v13112_v18  ;;  %v5718_v38 = vmax.f32 %v5610_v13, %v5692_v36  ;;  %v5279_v51 = vadd.f32 %v12288_v39, %v4999_v56  ;;  %v13122_v39 = vld [vmem:[#allocation51_spill] sm:$0xff] }
 0x535   : > { %5647 = vst [vmem:[#allocation3 + $0x50] sm:$0xff] %v5619_v12  ;;  %v5617_v16 = vmax.f32 %v12401_v59, 0.0  ;;  %v12417_v42 = vadd.f32 %v12282_v48, %v5557_v34  ;;  %v5555_v41 = vadd.f32 %v5470_v6, %v5275_v52  ;;  %v5798_v3 = vmax.f32 %v5717_v47, %v12395_v2  ;;  %v13116_v52 = vld [vmem:[#allocation49_spill] sm:$0xff]  ;;  %v12447_v6 = vpop.f32.mrf.mxu0 }
 0x536   : > { %v9535_v63 = vpop.f32.mrf.mxu1  ;;  %v5694_v7 = vld [vmem:[#allocation3 + $0x19] sm:$0xff]  ;;  %v5004_v54 = vadd.f32 %v13116_v52, %v4724_v29  ;;  %v13117_v34 = vld [vmem:[#allocation25_spill] sm:$0xff] }
 0x537   : > { %5645 = vst [vmem:[#allocation3 + $0x40] sm:$0xff] %v5617_v16  ;;  %v5620_v24 = vmax.f32 %v12417_v42, 0.0  ;;  %v12432_v23 = vadd.f32 %v12282_v48, %v5555_v41  ;;  %v5560_v0 = vadd.f32 %v9535_v63, %v5280_v53  ;;  %v5720_v44 = vmax.f32 %v5612_v10, %v5694_v7  ;;  %v13118_v47 = vld [vmem:[#allocation13_spill] sm:$0xff]  ;;  %v13121_v41 = vld [vmem:[#allocation50_spill] sm:$0xff]  ;;  %v12476_v7 = vpop.f32.mrf.mxu0 }
 0x538   : > { %v12439_v49 = vadd.f32 %v13118_v47, %v13117_v34  ;;  %v5483_v45 = vpop.f32.mrf.mxu1  ;;  %v5697_v27 = vld [vmem:[#allocation3 + $0x31] sm:$0xff]  ;;  %v5281_v53 = vadd.f32 %v12274_v11, %v5001_v25  ;;  %v5002_v15 = vadd.f32 %v13121_v41, %v4722_v32  ;;  %v5005_v25 = vadd.f32 %v13122_v39, %v4725_v60 }
 0x539   : > { %5648 = vst [vmem:[#allocation3 + $0x58] sm:$0xff] %v5620_v24  ;;  %v5618_v40 = vmax.f32 %v12432_v23, 0.0  ;;  %v12453_v10 = vadd.f32 %v12282_v48, %v5560_v0  ;;  %v5558_v29 = vadd.f32 %v5483_v45, %v5278_v9  ;;  %v12460_v37 = vmax.f32 %v5615_v1, %v5697_v27  ;;  %v13131_v23 = vld [vmem:[#allocation56_spill] sm:$0xff] }
 0x53a   : > { %v9536_v18 = vpop.f32.mrf.mxu1  ;;  %v5695_v13 = vld [vmem:[#allocation3 + $0x21] sm:$0xff]  ;;  %v5696_v36 = vld [vmem:[#allocation3 + $0x29] sm:$0xff]  ;;  %v5799_v26 = vmax.f32 %v5718_v38, %v5720_v44  ;;  %v5284_v1 = vadd.f32 %v12307_v14, %v5004_v54  ;;  %v5282_v54 = vadd.f32 %v12331_v55, %v5002_v15  ;;  %v13125_v55 = vld [vmem:[#allocation27_spill] sm:$0xff] }
 0x53b   : > { %5646 = vst [vmem:[#allocation3 + $0x48] sm:$0xff] %v5618_v40  ;;  %v5623_v17 = vmax.f32 %v12453_v10, 0.0  ;;  %v12466_v63 = vadd.f32 %v12282_v48, %v5558_v29  ;;  %v5561_v11 = vadd.f32 %v9536_v18, %v5281_v53  ;;  %v5721_v32 = vmax.f32 %v5613_v22, %v5695_v13  ;;  %v9870_v14 = vld [vmem:[%s12988_s5 + $0x78] sm:$0xff]   ;;  %v13126_v53 = vld [vmem:[#allocation21_spill] sm:$0xff] }
 0x53c   : > { %v5486_v5 = vpop.f32.mrf.mxu1  ;;  %v5722_v56 = vmax.f32 %v5614_v4, %v5696_v36  ;;  %v12474_v9 = vpack.c.bf16 %v5799_v26, %v5798_v3  ;;  %v13123_v4 = vld [vmem:[#allocation52_spill] sm:$0xff]  ;;  %9549 = vmatprep.subr.bf16.mxu1 %v9870_v14  ;;  %v4732_v41 = vadd.f32 %v13126_v53, %v13125_v55  ;;  %v5238_v36 = vpop.f32.mrf.mxu0  ;;  %v5285_v26 = vadd.f32 %v12352_v28, %v5005_v25 }
 0x53d   : > { %5651 = vst [vmem:[#allocation3 + $0x70] sm:$0xff] %v5623_v17  ;;  %v5621_v0 = vmax.f32 %v12466_v63, 0.0  ;;  %v12482_v57 = vadd.f32 %v12282_v48, %v5561_v11  ;;  %v5559_v22 = vadd.f32 %v5486_v5, %v5279_v51  ;;  %v5802_v60 = vmax.f32 %v5721_v32, %v12460_v37  ;;  %9550 = vmatpush3.bf16.msra.mxu1 %v9870_v14  ;;  %v9872_v11 = vld [vmem:[%s12988_s5 + $0x68] sm:$0xff]  }
 0x53e   : > { %v5003_v3 = vadd.f32 %v13123_v4, %v4723_v8  ;;  %v9539_v52 = vpop.f32.mrf.mxu1  ;;  %v5698_v34 = vld [vmem:[#allocation3 + $0x39] sm:$0xff]  ;;  %v5800_v47 = vmax.f32 %v12395_v2, %v5721_v32  ;;  %v5801_v33 = vmax.f32 %v5720_v44, %v5722_v56  ;;  %v13124_v8 = vld [vmem:[#allocation54_spill] sm:$0xff]  ;;  %9551 = vmatprep.subr.bf16.mxu1 %v9871_v43  ;;  %v13129_v32 = vld [vmem:[#allocation5_spill] sm:$0xff] }
 0x53f   : > { %5649 = vst [vmem:[#allocation3 + $0x60] sm:$0xff] %v5621_v0  ;;  %v5624_v35 = vmax.f32 %v12482_v57, 0.0  ;;  %v12498_v45 = vadd.f32 %v12282_v48, %v5559_v22  ;;  %v5564_v27 = vadd.f32 %v9539_v52, %v5284_v1  ;;  %v5724_v38 = vmax.f32 %v5616_v50, %v5698_v34  ;;  %v13127_v2 = vld [vmem:[#allocation43_spill] sm:$0xff] }
 0x540   : > { %v5008_v29 = vadd.f32 %v13124_v8, %v4728_v31  ;;  %v13128_v44 = vld [vmem:[#allocation23_spill] sm:$0xff]  ;;  %v5499_v18 = vpop.f32.mrf.mxu1  ;;  %v12509_v13 = vpack.c.bf16 %v5801_v33, %v5800_v47  ;;  %v5006_v39 = vadd.f32 %v13129_v32, %v12425_v61  ;;  %v5283_v1 = vadd.f32 %v12380_v46, %v5003_v3  ;;  %v9503_v47 = vpop.f32.mrf.mxu0 }
 0x541   : > { %v12507_v15 = vadd.f32 %v13128_v44, %v13127_v2  ;;  %v5701_v51 = vld [vmem:[#allocation3 + $0x51] sm:$0xff]  ;;  %5652 = vst [vmem:[#allocation3 + $0x78] sm:$0xff] %v5624_v35  ;;  %v5622_v58 = vmax.f32 %v12498_v45, 0.0  ;;  %v12515_v50 = vadd.f32 %v12282_v48, %v5564_v27  ;;  %v5562_v31 = vadd.f32 %v5499_v18, %v5282_v54  ;;  %9552 = vmatpush3.bf16.msra.mxu1 %v9871_v43 }
 0x542   : > { %v9540_v5 = vpop.f32.mrf.mxu1  ;;  %v12526_v22 = vmax.f32 %v5619_v12, %v5701_v51  ;;  %v5699_v14 = vld [vmem:[#allocation3 + $0x41] sm:$0xff]  ;;  %v5700_v4 = vld [vmem:[#allocation3 + $0x49] sm:$0xff]  ;;  %v5803_v52 = vmax.f32 %v5722_v56, %v5724_v38  ;;  %v13130_v46 = vld [vmem:[#allocation55_spill] sm:$0xff]  ;;  %v5288_v3 = vadd.f32 %v12411_v30, %v5008_v29  ;;  %9553 = vmatprep.subr.bf16.mxu1 %v9872_v11  ;;  %v5286_v43 = vadd.f32 %v12447_v6, %v5006_v39 }
 0x543   : > { %5650 = vst [vmem:[#allocation3 + $0x68] sm:$0xff] %v5622_v58  ;;  %v5627_v28 = vmax.f32 %v12515_v50, 0.0  ;;  %v12532_v25 = vadd.f32 %v12282_v48, %v5562_v31  ;;  %v5565_v54 = vadd.f32 %v9540_v5, %v5285_v26  ;;  %v5725_v61 = vmax.f32 %v5617_v16, %v5699_v14  ;;  %v9875_v30 = vld [vmem:[%s12988_s5 + $0x60] sm:$0xff]   ;;  %v13133_v51 = vld [vmem:[#allocation29_spill] sm:$0xff]  ;;  %v13134_v6 = vld [vmem:[#allocation26_spill] sm:$0xff] }
 0x544   : > { %v5009_v62 = vadd.f32 %v13130_v46, %v12439_v49  ;;  %v5502_v12 = vpop.f32.mrf.mxu1  ;;  %v5726_v56 = vmax.f32 %v5618_v40, %v5700_v4  ;;  %v12541_v34 = vpack.c.bf16 %v5803_v52, %v5802_v60  ;;  %v5007_v40 = vadd.f32 %v13131_v23, %v12443_v19  ;;  %v13132_v19 = vld [vmem:[#allocation8_spill] sm:$0xff]  ;;  %v13137_v4 = vld [vmem:[#allocation6_spill] sm:$0xff] }
 0x545   : > { %5655 = vst [vmem:[#allocation3 + $0x90] sm:$0xff] %v5627_v28  ;;  %v5625_v33 = vmax.f32 %v12532_v25, 0.0  ;;  %v12547_v59 = vadd.f32 %v12282_v48, %v5565_v54  ;;  %v5563_v16 = vadd.f32 %v5502_v12, %v5283_v1  ;;  %v5806_v49 = vmax.f32 %v5725_v61, %v12526_v22  ;;  %v13135_v26 = vld [vmem:[#allocation44_spill] sm:$0xff]  ;;  %9554 = vmatpush3.bf16.msra.mxu1 %v9872_v11  ;;  %v5251_v1 = vpop.f32.mrf.mxu0 }
 0x546   : > { %v9543_v60 = vpop.f32.mrf.mxu1  ;;  %v5702_v27 = vld [vmem:[#allocation3 + $0x59] sm:$0xff]  ;;  %v5804_v8 = vmax.f32 %v12460_v37, %v5725_v61  ;;  %v5805_v29 = vmax.f32 %v5724_v38, %v5726_v56  ;;  %v5012_v18 = vadd.f32 %v13132_v19, %v4732_v41  ;;  %v4733_v31 = vadd.f32 %v13134_v6, %v13133_v51  ;;  %9555 = vmatprep.subr.bf16.mxu1 %v9875_v30 }
 0x547   : > { %5653 = vst [vmem:[#allocation3 + $0x80] sm:$0xff] %v5625_v33  ;;  %v5628_v55 = vmax.f32 %v12547_v59, 0.0  ;;  %v12561_v53 = vadd.f32 %v12282_v48, %v5563_v16  ;;  %v5568_v2 = vadd.f32 %v9543_v60, %v5288_v3  ;;  %v5728_v44 = vmax.f32 %v5620_v24, %v5702_v27  ;;  %v13136_v37 = vld [vmem:[#allocation28_spill] sm:$0xff] }
 0x548   : > { %v4731_v38 = vadd.f32 %v13136_v37, %v13135_v26  ;;  %v5515_v32 = vpop.f32.mrf.mxu1  ;;  %v5705_v39 = vld [vmem:[#allocation3 + $0x71] sm:$0xff]  ;;  %v12570_v5 = vpack.c.bf16 %v5805_v29, %v5804_v8  ;;  %v5289_v14 = vadd.f32 %v12476_v7, %v5009_v62  ;;  %v5010_v52 = vadd.f32 %v13137_v4, %v12507_v15 }
 0x549   : > { %5656 = vst [vmem:[#allocation3 + $0x98] sm:$0xff] %v5628_v55  ;;  %v5626_v42 = vmax.f32 %v12561_v53, 0.0  ;;  %v12576_v24 = vadd.f32 %v12282_v48, %v5568_v2  ;;  %v5566_v41 = vadd.f32 %v5515_v32, %v5286_v43  ;;  %v5287_v61 = vadd.f32 %v5238_v36, %v5007_v40  ;;  %9556 = vmatpush3.bf16.msra.mxu1 %v9875_v30 }
 0x54a   : > { %v9544_v54 = vpop.f32.mrf.mxu1  ;;  %v12583_v11 = vmax.f32 %v5623_v17, %v5705_v39  ;;  %v5703_v46 = vld [vmem:[#allocation3 + $0x61] sm:$0xff]  ;;  %v5704_v12 = vld [vmem:[#allocation3 + $0x69] sm:$0xff]  ;;  %v5807_v3 = vmax.f32 %v5726_v56, %v5728_v44  ;;  %v5013_v15 = vadd.f32 %v12267_v20, %v4733_v31  ;;  %v5292_v40 = vadd.f32 %v9503_v47, %v5012_v18  ;;  %v9504_v56 = vpop.f32.mrf.mxu0 }
 0x54b   : > { %5654 = vst [vmem:[#allocation3 + $0x88] sm:$0xff] %v5626_v42  ;;  %v5631_v16 = vmax.f32 %v12576_v24, 0.0  ;;  %v12587_v23 = vadd.f32 %v12282_v48, %v5566_v41  ;;  %v5569_v7 = vadd.f32 %v9544_v54, %v5289_v14  ;;  %v5729_v62 = vmax.f32 %v5621_v0, %v5703_v46 }
 0x54c   : > { %v5518_v36 = vpop.f32.mrf.mxu1  ;;  %v5730_v10 = vmax.f32 %v5622_v58, %v5704_v12  ;;  %v12594_v17 = vpack.c.bf16 %v5807_v3, %v5806_v49  ;;  %v5011_v0 = vadd.f32 %v12272_v21, %v4731_v38  ;;  %v5290_v45 = vadd.f32 %v5251_v1, %v5010_v52  ;;  %v5254_v51 = vpop.f32.mrf.mxu0 }
 0x54d   : > { %5659 = vst [vmem:[#allocation3 + $0xb0] sm:$0xff] %v5631_v16  ;;  %v5629_v60 = vmax.f32 %v12587_v23, 0.0  ;;  %v12600_v43 = vadd.f32 %v12282_v48, %v5569_v7  ;;  %v5567_v63 = vadd.f32 %v5518_v36, %v5287_v61  ;;  %v5810_v20 = vmax.f32 %v5729_v62, %v12583_v11 }
 0x54e   : > { %v9547_v47 = vpop.f32.mrf.mxu1  ;;  %v5706_v58 = vld [vmem:[#allocation3 + $0x79] sm:$0xff]  ;;  %v5808_v49 = vmax.f32 %v12526_v22, %v5729_v62  ;;  %v5809_v30 = vmax.f32 %v5728_v44, %v5730_v10  ;;  %v5293_v19 = vadd.f32 %v9504_v56, %v5013_v15  ;;  %v5291_v37 = vadd.f32 %v5254_v51, %v5011_v0 }
 0x54f   : > { %5657 = vst [vmem:[#allocation3 + $0xa0] sm:$0xff] %v5629_v60  ;;  %v5632_v27 = vmax.f32 %v12600_v43, 0.0  ;;  %v5602_v8 = vadd.f32 %v12282_v48, %v5567_v63  ;;  %v5572_v29 = vadd.f32 %v9547_v47, %v5292_v40  ;;  %v5732_v53 = vmax.f32 %v5624_v35, %v5706_v58 }
 0x550   : > { %v5531_v2 = vpop.f32.mrf.mxu1  ;;  %v5842_v18 = vpack.c.bf16 %v5809_v30, %v5808_v49  ;;  %v5709_v44 = vld [vmem:[#allocation3 + $0x91] sm:$0xff] }
 0x551   : > { %5660 = vst [vmem:[#allocation3 + $0xb8] sm:$0xff] %v5632_v27  ;;  %v5630_v21 = vmax.f32 %v5602_v8, 0.0  ;;  %v5607_v6 = vadd.f32 %v12282_v48, %v5572_v29  ;;  %v5570_v31 = vadd.f32 %v5531_v2, %v5290_v45  ;;  %v5811_v22 = vmax.f32 %v5730_v10, %v5732_v53 }
 0x552   : > { %v9548_v26 = vpop.f32.mrf.mxu1  ;;  %v5760_v38 = vld [vmem:[#allocation3 + $0x81] sm:$0xff]  ;;  %v5761_v32 = vld [vmem:[#allocation3 + $0x89] sm:$0xff]  ;;  %v5735_v52 = vmax.f32 %v5627_v28, %v5709_v44 }
 0x553   : > { %5658 = vst [vmem:[#allocation3 + $0xa8] sm:$0xff] %v5630_v21  ;;  %v5635_v39 = vmax.f32 %v5607_v6, 0.0  ;;  %v5605_v57 = vadd.f32 %v12282_v48, %v5570_v31  ;;  %v5573_v35 = vadd.f32 %v9548_v26, %v5293_v19  ;;  %v5786_v1 = vmax.f32 %v5625_v33, %v5760_v38  ;;  %v9874_v38 = vld [vmem:[%s12988_s5 + $0x30] sm:$0xff]  }
 0x554   : > { %v5534_v41 = vpop.f32.mrf.mxu1  ;;  %v5787_v14 = vmax.f32 %v5626_v42, %v5761_v32  ;;  %v5843_v4 = vpack.c.bf16 %v5811_v22, %v5810_v20  ;;  %v9953_v22 = vmov 65535   ;;  %v9876_v32 = vld [vmem:[%s12988_s5 + $0x28] sm:$0xff]  }
 0x555   : > { %5663 = vst [vmem:[#allocation3 + $0xd0] sm:$0xff] %v5635_v39  ;;  %v5633_v54 = vmax.f32 %v5605_v57, 0.0  ;;  %v5608_v61 = vadd.f32 %v12282_v48, %v5573_v35  ;;  %v5571_v46 = vadd.f32 %v5534_v41, %v5291_v37  ;;  %v5812_v12 = vmax.f32 %v12583_v11, %v5786_v1  ;;  %v9856_v57 = vld [vmem:[%s12990_s7 + $0x24] ss:$8 sps:$4 sm:$0xff]   ;;  %v9858_v35 = vld [vmem:[%s12990_s7 + $0x20] ss:$8 sps:$4 sm:$0xff]  }
 0x556   : > { %v5813_v3 = vmax.f32 %v5732_v53, %v5787_v14  ;;  %v5710_v23 = vld [vmem:[#allocation3 + $0x99] sm:$0xff]  ;;  %v5814_v7 = vmax.f32 %v5786_v1, %v5735_v52  ;;  %v13138_v11 = vmov 0   ;;  %v5934_v44 = vsel %vm5932_vm4, 4294967295, %v9953_v22  ;;  %v9859_v1 = vld [vmem:[%s12990_s7 + $0x34] ss:$8 sps:$4 sm:$0xff]  }
 0x557   : > { %5661 = vst [vmem:[#allocation3 + $0xc0] sm:$0xff] %v5633_v54  ;;  %v5636_v62 = vmax.f32 %v5608_v61, 0.0  ;;  %v5606_v25 = vadd.f32 %v12282_v48, %v5571_v46  ;;  %v5736_v33 = vmax.f32 %v5628_v55, %v5710_v23  ;;  %v5935_v26 = vsel %vm5933_vm5, %v5934_v44, 0  ;;  %v9861_v41 = vld [vmem:[%s12990_s7 + $0x30] ss:$8 sps:$4 sm:$0xff]  }
 0x558   : > { %v5844_v42 = vpack.c.bf16 %v5813_v3, %v5812_v12  ;;  %v5713_v50 = vld [vmem:[#allocation3 + $0xb1] sm:$0xff]  ;;  %v9896_v44 = vld [vmem:[%s12988_s5 + $0xd0] sm:$0xff]  }
 0x559   : > { %5664 = vst [vmem:[#allocation3 + $0xd8] sm:$0xff] %v5636_v62  ;;  %v5634_v28 = vmax.f32 %v5606_v25, 0.0  ;;  %v5815_v15 = vmax.f32 %v5787_v14, %v5736_v33  ;;  %v5739_v10 = vmax.f32 %v5631_v16, %v5713_v50  ;;  %v9862_v14 = vld [vmem:[%s12990_s7 + $0x44] ss:$8 sps:$4 sm:$0xff]   ;;  %v9867_v61 = vld [vmem:[%s12990_s7 + $0x50] ss:$8 sps:$4 sm:$0xff]  }
 0x55a   : > { %5940 = vmatpush1.bf16.msra.mxu0 %v5844_v42  ;;  %v5711_v36 = vld [vmem:[#allocation3 + $0xa1] sm:$0xff]  ;;  %v5712_v40 = vld [vmem:[#allocation3 + $0xa9] sm:$0xff]  ;;  %v9877_v3 = vld [vmem:[%s12988_s5 + $0x20] sm:$0xff]  }
 0x55b   : > { %5662 = vst [vmem:[#allocation3 + $0xc8] sm:$0xff] %v5634_v28  ;;  %5941 = vmatprep.subr.bf16.mxu0 %v13138_v11  ;;  %v5737_v56 = vmax.f32 %v5629_v60, %v5711_v36  ;;  %v5738_v43 = vmax.f32 %v5630_v21, %v5712_v40  ;;  %v5845_v48 = vpack.c.bf16 %v5815_v15, %v5814_v7  ;;  %v9879_v23 = vld [vmem:[%s12988_s5 + $0x18] sm:$0xff]   ;;  %v9881_v7 = vld [vmem:[%s12988_s5 + $0x10] sm:$0xff]   ;;  %v9882_v25 = vld [vmem:[%s12988_s5 + $0x8] sm:$0xff]  }
 0x55c   : > { %v9878_v62 = vld [vmem:[%s12988_s5 + $0x58] sm:$0xff]   ;;  %v9880_v42 = vld [vmem:[%s12988_s5 + $0x50] sm:$0xff]   ;;  %v9885_v15 = vld [vmem:[%s12988_s5 + $0x40] sm:$0xff]  }
 0x55d   : > { %v5818_v63 = vmax.f32 %v5737_v56, %v5739_v10  ;;  %v5816_v59 = vmax.f32 %v5735_v52, %v5737_v56  ;;  %v5817_v55 = vmax.f32 %v5736_v33, %v5738_v43  ;;  %v9865_v52 = vld [vmem:[%s12990_s7 + $0x54] ss:$8 sps:$4 sm:$0xff]   ;;  %9557 = vmatprep.subr.bf16.mxu1 %v9878_v62  ;;  %v9884_v33 = vld [vmem:[%s12988_s5] sm:$0xff]  }
 0x55e   : > { %5942 = vmatpush1.bf16.msra.mxu0 %v5843_v4  ;;  %v5714_v20 = vld [vmem:[#allocation3 + $0xb9] sm:$0xff]  ;;  %9558 = vmatpush3.bf16.msra.mxu1 %v9878_v62  ;;  %v9886_v50 = vld [vmem:[%s12988_s5 + $0xf8] sm:$0xff]  }
 0x55f   : > { %5943 = vmatprep.subr.bf16.mxu0 %v13138_v11  ;;  %v5740_v0 = vmax.f32 %v5632_v27, %v5714_v20  ;;  %v5846_v47 = vpack.c.bf16 %v5817_v55, %v5816_v59  ;;  %v9864_v4 = vld [vmem:[%s12990_s7 + $0x40] ss:$8 sps:$4 sm:$0xff]   ;;  %9559 = vmatprep.subr.bf16.mxu1 %v9880_v42  ;;  %v9887_v36 = vld [vmem:[%s12988_s5 + $0xb8] sm:$0xff]   ;;  %v9888_v20 = vld [vmem:[%s12988_s5 + $0xf0] sm:$0xff]  }
 0x560   : > { %v5770_v45 = vld [vmem:[#allocation3 + $0xd1] sm:$0xff]  ;;  %v5771_v21 = vld [vmem:[#allocation3 + $0xd9] sm:$0x7f] }
 0x561   : > { %v5819_v58 = vmax.f32 %v5738_v43, %v5740_v0  ;;  %v5796_v16 = vmax.f32 %v5635_v39, %v5770_v45  ;;  %v9855_v39 = vld [vmem:[%s12990_s7 + $0x10] ss:$8 sps:$4 sm:$0xff]  }
 0x562   : > { %5944 = vmatpush1.bf16.msra.mxu0 %v5842_v18  ;;  %v5715_v49 = vld [vmem:[#allocation3 + $0xc1] sm:$0xff]  ;;  %v5769_v60 = vld [vmem:[#allocation3 + $0xc9] sm:$0xff]  ;;  %v5745_v18 = vld [vmem:[#allocation3 + $0xd8] sm:$0x7f]  ;;  %9560 = vmatpush3.bf16.msra.mxu1 %v9880_v42 }
 0x563   : > { %5945 = vmatprep.subr.bf16.mxu0 %v13138_v11  ;;  %v5741_v24 = vmax.f32 %v5633_v54, %v5715_v49  ;;  %v5847_v30 = vpack.c.bf16 %v5819_v58, %v5818_v63  ;;  %v5795_v8 = vmax.f32 %v5634_v28, %v5769_v60  ;;  %v5690_v19 = vld [vmem:[#allocation3 + $0xc8] sm:$0x7f]  ;;  %v5797_v31 = vmax.f32 %v5745_v18, %v5771_v21  ;;  %v5836_v54 = vld [vmem:[%s12990_s7 + $0x60] sm:$0xff]  ;;  %v9883_v28 = vld [vmem:[%s12988_s5 + $0x48] sm:$0xff]  }
 0x564   : > { %v5716_v51 = vld [vmem:[#allocation3 + $0xc9] sm:$0x7f]  ;;  %v7843_v46 = vcombine.high %v5836_v54, %v5836_v54  ;;  %v7842_v12 = vcombine.low %v5836_v54, %v5836_v54  ;;  %9561 = vmatprep.subr.bf16.mxu1 %v9883_v28  ;;  %v9894_v18 = vld [vmem:[%s12988_s5 + $0xd8] sm:$0xff]  }
 0x565   : > { %v5822_v29 = vmax.f32 %v5741_v24, %v5796_v16  ;;  %v5820_v53 = vmax.f32 %v5739_v10, %v5741_v24  ;;  %v5821_v2 = vmax.f32 %v5740_v0, %v5795_v8  ;;  %v5742_v6 = vmax.f32 %v5690_v19, %v5716_v51  ;;  %v9890_v24 = vld [vmem:[%s12988_s5 + $0xe8] sm:$0xff]   ;;  %v9892_v8 = vld [vmem:[%s12988_s5 + $0xe0] sm:$0xff]   ;;  %v9889_v51 = vld [vmem:[%s12988_s5 + $0xb0] sm:$0xff]  }
 0x566   : > { %5946 = vmatpush1.bf16.msra.mxu0 %v12594_v17  ;;  %9562 = vmatpush3.bf16.msra.mxu1 %v9883_v28 }
 0x567   : > { %5947 = vmatprep.subr.bf16.mxu0 %v13138_v11  ;;  %v5848_v27 = vpack.c.bf16 %v5821_v2, %v5820_v53  ;;  %v5823_v17 = vmax.f32 %v5742_v6, %v5797_v31  ;;  %9563 = vmatprep.subr.bf16.mxu1 %v9885_v15  ;;  %v9891_v31 = vld [vmem:[%s12988_s5 + $0xa8] sm:$0xff]  }
 0x56a   : > { %5948 = vmatpush1.bf16.msra.mxu0 %v12570_v5  ;;  %v5849_v5 = vpack.c.bf16 %v5823_v17, %v5822_v29  ;;  %9564 = vmatpush3.bf16.msra.mxu1 %v9885_v15  ;;  %v9906_v15 = vld [vmem:[%s12988_s5 + $0x168] sm:$0xff]  }
 0x56b   : > { %5949 = vmatprep.subr.bf16.mxu0 %v13138_v11  ;;  %9597 = vmatprep.subr.bf16.mxu1 %v9887_v36 }
 0x56c   : > { %v5937_v37 = vand.u32 %v5935_v26, %v5849_v5 }
 0x56e   : > { %5950 = vmatpush1.bf16.msra.mxu0 %v12541_v34  ;;  %v9853_v34 = vld [vmem:[%s12990_s7 + $0x14] ss:$8 sps:$4 sm:$0xff]  }
 0x56f   : > { %5951 = vmatprep.subr.bf16.mxu0 %v13138_v11 }
 0x572   : > { %5952 = vmatpush1.bf16.msra.mxu0 %v12509_v13  ;;  %v9873_v13 = vld [vmem:[%s12988_s5 + $0x38] sm:$0xff]  }
 0x573   : > { %5953 = vmatprep.subr.bf16.mxu0 %v13138_v11 }
 0x576   : > { %5954 = vmatpush1.bf16.msra.mxu0 %v12474_v9  ;;  %v9850_v9 = vld [vmem:[%s12990_s7] ss:$8 sps:$4 sm:$0xff]  }
 0x577   : > { %5961 = vmatprep.subr.bf16.mxu0 %v13138_v11 }
 0x57a   : > { %5962 = vmatpush2.bf16.msra.mxu0 %v5937_v37 }
 0x57b   : > { %5963 = vmatprep.subr.bf16.mxu0 %v13138_v11 }
 0x57e   : > { %5964 = vmatpush2.bf16.msra.mxu0 %v5848_v27 }
 0x57f   : > { %5965 = vmatprep.subr.bf16.mxu0 %v13138_v11 }
 0x582   : > { %5966 = vmatpush2.bf16.msra.mxu0 %v5847_v30 }
 0x583   : > { %5967 = vmatprep.subr.bf16.mxu0 %v13138_v11 }
 0x586   : > { %5968 = vmatpush2.bf16.msra.mxu0 %v5846_v47 }
 0x587   : > { %5969 = vmatprep.subr.bf16.mxu0 %v13138_v11 }
 0x58a   : > { %5970 = vmatpush2.bf16.msra.mxu0 %v5845_v48 }
 0x58b   : > { %9573 = vmatprep.subr.bf16.mxu0 %v9873_v13 }
 0x58d   : > { %5972 = vmatmul.mubr.bf16.vlgmr.msra.gmra.mxu0 %v9850_v9  ;;  %v9893_v9 = vld [vmem:[%s12988_s5 + $0xa0] sm:$0xff]  }
 0x58e   : > { %7845 = vmatprep.mubr.msk.bf16.mxu0 %vm5910_vm3, %v9853_v34  ;;  %9574 = vmatpush3.bf16.msra.mxu0 %v9873_v13  ;;  %v9898_v34 = vld [vmem:[%s12988_s5 + $0xc8] sm:$0xff]  }
 0x58f   : > { %9575 = vmatprep.subr.bf16.mxu0 %v9874_v38 }
 0x592   : > { %9576 = vmatpush3.bf16.msra.mxu0 %v9874_v38 }
 0x593   : > { %9577 = vmatprep.subr.bf16.mxu0 %v9876_v32 }
 0x595   : > { %5980 = vmatmul.mubr.bf16.gmra.mxu0 %v9855_v39  ;;  %v9895_v39 = vld [vmem:[%s12988_s5 + $0x98] sm:$0xff]  }
 0x596   : > { %7846 = vmatprep.mubr.msk.bf16.mxu0 %vm5910_vm3, %v9856_v57  ;;  %9578 = vmatpush3.bf16.msra.mxu0 %v9876_v32  ;;  %v9900_v57 = vld [vmem:[%s12988_s5 + $0xc0] sm:$0xff]  }
 0x597   : > { %9579 = vmatprep.subr.bf16.mxu0 %v9877_v3 }
 0x59a   : > { %9580 = vmatpush3.bf16.msra.mxu0 %v9877_v3 }
 0x59b   : > { %9581 = vmatprep.subr.bf16.mxu0 %v9879_v23 }
 0x59d   : > { %5988 = vmatmul.mubr.bf16.gmra.mxu0 %v9858_v35 }
 0x59e   : > { %7847 = vmatprep.mubr.msk.bf16.mxu0 %vm5910_vm3, %v9859_v1  ;;  %9582 = vmatpush3.bf16.msra.mxu0 %v9879_v23 }
 0x59f   : > { %9583 = vmatprep.subr.bf16.mxu0 %v9881_v7 }
 0x5a2   : > { %9584 = vmatpush3.bf16.msra.mxu0 %v9881_v7  ;;  %v9899_v7 = vld [vmem:[%s12988_s5 + $0x88] sm:$0xff]  }
 0x5a3   : > { %9585 = vmatprep.subr.bf16.mxu0 %v9882_v25 }
 0x5a5   : > { %5996 = vmatmul.mubr.bf16.gmra.mxu0 %v9861_v41 }
 0x5a6   : > { %7848 = vmatprep.mubr.msk.bf16.mxu0 %vm5910_vm3, %v9862_v14  ;;  %9586 = vmatpush3.bf16.msra.mxu0 %v9882_v25 }
 0x5a7   : > { %9587 = vmatprep.subr.bf16.mxu0 %v9884_v33 }
 0x5aa   : > { %9588 = vmatpush3.bf16.msra.mxu0 %v9884_v33  ;;  %v9904_v33 = vld [vmem:[%s12988_s5 + $0x170] sm:$0xff]  }
 0x5ab   : > { %9621 = vmatprep.subr.bf16.mxu0 %v9886_v50 }
 0x5ad   : > { %6004 = vmatmul.mubr.bf16.gmra.mxu0 %v9864_v4 }
 0x5ae   : > { %7849 = vmatprep.mubr.msk.bf16.mxu0 %vm5910_vm3, %v9865_v52 }
 0x5b5   : > { %6012 = vmatmul.mubr.bf16.gmra.mxu0 %v9867_v61  ;;  %v9897_v61 = vld [vmem:[%s12988_s5 + $0x90] sm:$0xff]  }
 0x5b6   : > { %7850 = vmatprep.mubr.msk.bf16.mxu0 %vm5910_vm3, %v7843_v46 }
 0x5bd   : > { %6020 = vmatmul.mubr.bf16.gmra.mxu0 %v7842_v12  ;;  %v9902_v12 = vld [vmem:[%s12988_s5 + $0x178] sm:$0xff]  }
 0x64d   : > { %v5973_v40 = vpop.f32.mrf.mxu0 }
 0x64e   : > { %6027 = vst [vmem:[#allocation4] sm:$0xff] %v5973_v40 }
 0x64f   : > { %v5975_v11 = vpop.f32.mrf.mxu0 }
 0x650   : > { %v9903_v11 = vld [vmem:[%s12988_s5 + $0x138] sm:$0xff]  }
 0x651   : > { %v5976_v10 = vpop.f32.mrf.mxu0 }
 0x652   : > { %6028 = vst [vmem:[#allocation4 + $0x8] sm:$0xff] %v5976_v10  ;;  %v6048_v56 = vpack.c.bf16 %v5976_v10, %v5973_v40 }
 0x653   : > { %v5978_v43 = vpop.f32.mrf.mxu0 }
 0x654   : > { %9589 = vmatprep.mubr.bf16.mxu0 %v6048_v56 }
 0x655   : > { %v5981_v48 = vpop.f32.mrf.mxu0 }
 0x656   : > { %6029 = vst [vmem:[#allocation4 + $0x10] sm:$0xff] %v5981_v48 }
 0x657   : > { %v5983_v63 = vpop.f32.mrf.mxu0 }
 0x659   : > { %v5984_v59 = vpop.f32.mrf.mxu0  ;;  %v6068_v45 = vld [vmem:[#allocation4 + $0x1] sm:$0xff] }
 0x65a   : > { %6030 = vst [vmem:[#allocation4 + $0x18] sm:$0xff] %v5984_v59  ;;  %v6049_v55 = vpack.c.bf16 %v5984_v59, %v5981_v48  ;;  %v6323_v54 = vld [vmem:[#allocation4 + $0x2] sm:$0xff]  ;;  %v9908_v59 = vld [vmem:[%s12988_s5 + $0x160] sm:$0xff]  }
 0x65b   : > { %v5986_v0 = vpop.f32.mrf.mxu0 }
 0x65c   : > { %9590 = vmatmul.mubr.bf16.vlgmr.msra.gmra.mxu0 %v6049_v55 }
 0x65d   : > { %v5989_v47 = vpop.f32.mrf.mxu0  ;;  %v6069_v58 = vld [vmem:[#allocation4 + $0x9] sm:$0xff]  ;;  %9622 = vmatpush3.bf16.msra.mxu0 %v9886_v50  ;;  %v9901_v50 = vld [vmem:[%s12988_s5 + $0x80] sm:$0xff]  }
 0x65e   : > { %6031 = vst [vmem:[#allocation4 + $0x20] sm:$0xff] %v5989_v47  ;;  %v6076_v49 = vpack.c.bf16 %v6069_v58, %v6068_v45  ;;  %9623 = vmatprep.subr.bf16.mxu0 %v9888_v20  ;;  %v6324_v41 = vld [vmem:[#allocation4 + $0xa] sm:$0xff]  ;;  %v9907_v45 = vld [vmem:[%s12988_s5 + $0x128] sm:$0xff]  }
 0x65f   : > { %v5991_v16 = vpop.f32.mrf.mxu0  ;;  %v6331_v46 = vpack.c.bf16 %v6324_v41, %v6323_v54  ;;  %v9929_v41 = vld [vmem:[%s12988_s5 + $0x190] sm:$0xff]  }
 0x660   : > { %9565 = vmatprep.mubr.bf16.mxu1 %v6076_v49 }
 0x661   : > { %v5992_v60 = vpop.f32.mrf.mxu0  ;;  %9624 = vmatpush3.bf16.msra.mxu0 %v9888_v20  ;;  %v6070_v2 = vld [vmem:[#allocation4 + $0x11] sm:$0xff]  ;;  %v9905_v20 = vld [vmem:[%s12988_s5 + $0x130] sm:$0xff]  }
 0x662   : > { %6032 = vst [vmem:[#allocation4 + $0x28] sm:$0xff] %v5992_v60  ;;  %9625 = vmatprep.subr.bf16.mxu0 %v9890_v24  ;;  %v12729_v30 = vpack.c.bf16 %v5992_v60, %v5989_v47  ;;  %v6325_v10 = vld [vmem:[#allocation4 + $0x12] sm:$0xff] }
 0x663   : > { %v5994_v29 = vpop.f32.mrf.mxu0  ;;  %v9910_v47 = vld [vmem:[%s12988_s5 + $0x158] sm:$0xff]   ;;  %v9909_v60 = vld [vmem:[%s12988_s5 + $0x120] sm:$0xff]  }
 0x664   : > { %9593 = vmatprep.mubr.bf16.mxu0 %v12729_v30  ;;  %v9911_v29 = vld [vmem:[%s12988_s5 + $0x118] sm:$0xff]  }
 0x665   : > { %v5997_v53 = vpop.f32.mrf.mxu0  ;;  %v6071_v27 = vld [vmem:[#allocation4 + $0x19] sm:$0xff]  ;;  %9626 = vmatpush3.bf16.msra.mxu0 %v9890_v24  ;;  %v9912_v24 = vld [vmem:[%s12988_s5 + $0x150] sm:$0xff]  }
 0x666   : > { %6033 = vst [vmem:[#allocation4 + $0x30] sm:$0xff] %v5997_v53  ;;  %v12735_v19 = vpack.c.bf16 %v6071_v27, %v6070_v2  ;;  %9627 = vmatprep.subr.bf16.mxu0 %v9892_v8  ;;  %v9913_v2 = vld [vmem:[%s12988_s5 + $0x110] sm:$0xff]   ;;  %v9918_v27 = vld [vmem:[%s12988_s5 + $0x1f8] sm:$0xff]  }
 0x667   : > { %v5999_v21 = vpop.f32.mrf.mxu0 }
 0x668   : > { %9566 = vmatmul.mubr.bf16.vlgmr.msra.gmra.mxu1 %v12735_v19  ;;  %v9922_v21 = vld [vmem:[%s12988_s5 + $0x1e8] sm:$0xff]  }
 0x669   : > { %9598 = vmatpush3.bf16.msra.mxu1 %v9887_v36  ;;  %v6000_v6 = vpop.f32.mrf.mxu0  ;;  %9628 = vmatpush3.bf16.msra.mxu0 %v9892_v8  ;;  %v6072_v26 = vld [vmem:[#allocation4 + $0x21] sm:$0xff] }
 0x66a   : > { %6034 = vst [vmem:[#allocation4 + $0x38] sm:$0xff] %v6000_v6  ;;  %9599 = vmatprep.subr.bf16.mxu1 %v9889_v51  ;;  %9629 = vmatprep.subr.bf16.mxu0 %v9894_v18  ;;  %v12747_v17 = vpack.c.bf16 %v6000_v6, %v5997_v53  ;;  %v6326_v36 = vld [vmem:[#allocation4 + $0x1a] sm:$0xff] }
 0x66b   : > { %v6002_v22 = vpop.f32.mrf.mxu0  ;;  %v6332_v48 = vpack.c.bf16 %v6326_v36, %v6325_v10  ;;  %v9914_v8 = vld [vmem:[%s12988_s5 + $0x148] sm:$0xff]   ;;  %v9916_v53 = vld [vmem:[%s12988_s5 + $0x140] sm:$0xff]  }
 0x66c   : > { %9594 = vmatmul.mubr.bf16.gmra.mxu0 %v12747_v17  ;;  %v9919_v22 = vld [vmem:[%s12988_s5 + $0x1b8] sm:$0xff]  }
 0x66d   : > { %9600 = vmatpush3.bf16.msra.mxu1 %v9889_v51  ;;  %v12753_v5 = vpop.f32.mrf.mxu0  ;;  %v6073_v37 = vld [vmem:[#allocation4 + $0x29] sm:$0xff]  ;;  %9630 = vmatpush3.bf16.msra.mxu0 %v9894_v18  ;;  %v9917_v18 = vld [vmem:[%s12988_s5 + $0x100] sm:$0xff]  }
 0x66e   : > { %6035 = vst [vmem:[#allocation4 + $0x40] sm:$0xff] %v12753_v5  ;;  %9601 = vmatprep.subr.bf16.mxu1 %v9891_v31  ;;  %v12756_v13 = vpack.c.bf16 %v6073_v37, %v6072_v26  ;;  %9637 = vmatprep.mubr.bf16.mxu0 %v6049_v55  ;;  %v6328_v63 = vld [vmem:[#allocation4 + $0x2a] sm:$0xff]  ;;  %v6327_v55 = vld [vmem:[#allocation4 + $0x22] sm:$0xff] }
 0x66f   : > { %v6007_v38 = vpop.f32.mrf.mxu0  ;;  %9631 = vmatprep.subr.bf16.mxu0 %v9896_v44  ;;  %v12815_v0 = vpack.c.bf16 %v6328_v63, %v6327_v55  ;;  %v9920_v51 = vld [vmem:[%s12988_s5 + $0x1f0] sm:$0xff]   ;;  %v9926_v37 = vld [vmem:[%s12988_s5 + $0x1d8] sm:$0xff]  }
 0x670   : > { %9569 = vmatprep.mubr.bf16.mxu1 %v12756_v13  ;;  %v9921_v26 = vld [vmem:[%s12988_s5 + $0x1b0] sm:$0xff]  }
 0x671   : > { %9602 = vmatpush3.bf16.msra.mxu1 %v9891_v31  ;;  %v6008_v32 = vpop.f32.mrf.mxu0  ;;  %9632 = vmatpush3.bf16.msra.mxu0 %v9896_v44  ;;  %v6074_v1 = vld [vmem:[#allocation4 + $0x31] sm:$0xff] }
 0x672   : > { %9603 = vmatprep.subr.bf16.mxu1 %v9893_v9  ;;  %6036 = vst [vmem:[#allocation4 + $0x48] sm:$0xff] %v6008_v32  ;;  %9633 = vmatprep.subr.bf16.mxu0 %v9898_v34  ;;  %v12806_v56 = vpack.c.bf16 %v6008_v32, %v12753_v5  ;;  %v6329_v58 = vld [vmem:[#allocation4 + $0x32] sm:$0xff] }
 0x673   : > { %v6010_v35 = vpop.f32.mrf.mxu0  ;;  %v9924_v5 = vld [vmem:[%s12988_s5 + $0x1e0] sm:$0xff]  }
 0x674   : > { %v9927_v35 = vld [vmem:[%s12988_s5 + $0x198] sm:$0xff]  }
 0x675   : > { %9604 = vmatpush3.bf16.msra.mxu1 %v9893_v9  ;;  %v6075_v14 = vld [vmem:[#allocation4 + $0x39] sm:$0xff]  ;;  %v12771_v4 = vpop.f32.mrf.mxu0  ;;  %9634 = vmatpush3.bf16.msra.mxu0 %v9898_v34 }
 0x676   : > { %9605 = vmatprep.subr.bf16.mxu1 %v9895_v39  ;;  %v12773_v52 = vpack.c.bf16 %v6075_v14, %v6074_v1  ;;  %6037 = vst [vmem:[#allocation4 + $0x50] sm:$0xff] %v12771_v4  ;;  %9635 = vmatprep.subr.bf16.mxu0 %v9900_v57  ;;  %v6330_v49 = vld [vmem:[#allocation4 + $0x3a] sm:$0xff] }
 0x677   : > { %v6015_v3 = vpop.f32.mrf.mxu0  ;;  %v12827_v16 = vpack.c.bf16 %v6330_v49, %v6329_v58  ;;  %v9923_v9 = vld [vmem:[%s12988_s5 + $0x1a8] sm:$0xff]   ;;  %v9932_v1 = vld [vmem:[%s12988_s5 + $0x1c0] sm:$0xff]  }
 0x678   : > { %9570 = vmatmul.mubr.bf16.gmra.mxu1 %v12773_v52  ;;  %v9933_v14 = vld [vmem:[%s12988_s5 + $0x180] sm:$0xff]   ;;  %v9935_v3 = vld [vmem:[%s12988_s5 + $0x230] sm:$0xff]  }
 0x679   : > { %9606 = vmatpush3.bf16.msra.mxu1 %v9895_v39  ;;  %9613 = vmatprep.mubr.bf16.mxu1 %v6331_v46  ;;  %v12783_v23 = vpop.f32.mrf.mxu0  ;;  %v6779_v6 = vld [vmem:[#allocation4 + $0x42] sm:$0xff]  ;;  %v9925_v39 = vld [vmem:[%s12988_s5 + $0x1a0] sm:$0xff]   ;;  %v9934_v46 = vld [vmem:[%s12988_s5 + $0x238] sm:$0xff]  }
 0x67a   : > { %9607 = vmatprep.subr.bf16.mxu1 %v9897_v61  ;;  %9636 = vmatpush3.bf16.msra.mxu0 %v9900_v57  ;;  %6038 = vst [vmem:[#allocation4 + $0x58] sm:$0xff] %v12783_v23  ;;  %v6934_v62 = vpack.c.bf16 %v12783_v23, %v12771_v4  ;;  %v6629_v34 = vld [vmem:[#allocation4 + $0x41] sm:$0xff]  ;;  %v9941_v23 = vld [vmem:[%s12988_s5 + $0x200] sm:$0xff]  }
 0x67b   : > { %9669 = vmatprep.subr.bf16.mxu0 %v9902_v12  ;;  %v6018_v25 = vpop.f32.mrf.mxu0  ;;  %v9930_v57 = vld [vmem:[%s12988_s5 + $0x1c8] sm:$0xff]  }
 0x67c   : > { %v9939_v25 = vld [vmem:[%s12988_s5 + $0x210] sm:$0xff]   ;;  %v9940_v4 = vld [vmem:[%s12988_s5 + $0x208] sm:$0xff]  }
 0x67d   : > { %9608 = vmatpush3.bf16.msra.mxu1 %v9897_v61  ;;  %9638 = vmatmul.mubr.bf16.vlgmr.msra.gmra.mxu0 %v12729_v30  ;;  %v6021_v42 = vpop.f32.mrf.mxu0  ;;  %v6780_v31 = vld [vmem:[#allocation4 + $0x4a] sm:$0xff] }
 0x67e   : > { %9609 = vmatprep.subr.bf16.mxu1 %v9899_v7  ;;  %9641 = vmatprep.mubr.bf16.mxu0 %v12747_v17  ;;  %6039 = vst [vmem:[#allocation4 + $0x60] sm:$0xff] %v6021_v42  ;;  %v12866_v44 = vpack.c.bf16 %v6780_v31, %v6779_v6  ;;  %v6630_v38 = vld [vmem:[#allocation4 + $0x49] sm:$0xff] }
 0x67f   : > { %9670 = vmatpush3.bf16.msra.mxu0 %v9902_v12  ;;  %v6023_v28 = vpop.f32.mrf.mxu0  ;;  %v6634_v32 = vpack.c.bf16 %v6630_v38, %v6629_v34 }
 0x680   : > { %9671 = vmatprep.subr.bf16.mxu0 %v9904_v33 }
 0x681   : > { %9610 = vmatpush3.bf16.msra.mxu1 %v9899_v7  ;;  %v6024_v40 = vpop.f32.mrf.mxu0  ;;  %v7079_v54 = vld [vmem:[#allocation4 + $0x51] sm:$0xff] }
 0x682   : > { %9611 = vmatprep.subr.bf16.mxu1 %v9901_v50  ;;  %v9937_v7 = vld [vmem:[%s12988_s5 + $0x220] sm:$0xff]  }
 0x683   : > { %9672 = vmatpush3.bf16.msra.mxu0 %v9904_v33  ;;  %v6025_v43 = vpop.f32.mrf.mxu0 }
 0x684   : > { %9673 = vmatprep.subr.bf16.mxu0 %v9906_v15 }
 0x685   : > { %9612 = vmatpush3.bf16.msra.mxu1 %v9901_v50  ;;  %9642 = vmatmul.mubr.bf16.gmra.mxu0 %v12806_v56  ;;  %v7080_v61 = vld [vmem:[#allocation4 + $0x59] sm:$0xff] }
 0x686   : > { %9645 = vmatprep.subr.bf16.mxu1 %v9903_v11  ;;  %9685 = vmatprep.mubr.bf16.mxu0 %v6332_v48  ;;  %v7084_v12 = vpack.c.bf16 %v7080_v61, %v7079_v54  ;;  %v7230_v33 = vld [vmem:[#allocation4 + $0x5a] sm:$0xff] }
 0x687   : > { %9674 = vmatpush3.bf16.msra.mxu0 %v9906_v15 }
 0x688   : > { %9614 = vmatmul.mubr.bf16.vlgmr.msra.gmra.mxu1 %v6332_v48  ;;  %9675 = vmatprep.subr.bf16.mxu0 %v9908_v59 }
 0x689   : > { %9617 = vmatprep.mubr.bf16.mxu1 %v12815_v0  ;;  %9646 = vmatpush3.bf16.msra.mxu1 %v9903_v11 }
 0x68a   : > { %9647 = vmatprep.subr.bf16.mxu1 %v9905_v20 }
 0x68b   : > { %9676 = vmatpush3.bf16.msra.mxu0 %v9908_v59 }
 0x68c   : > { %9677 = vmatprep.subr.bf16.mxu0 %v9910_v47 }
 0x68d   : > { %9648 = vmatpush3.bf16.msra.mxu1 %v9905_v20 }
 0x68e   : > { %9649 = vmatprep.subr.bf16.mxu1 %v9907_v45 }
 0x68f   : > { %9678 = vmatpush3.bf16.msra.mxu0 %v9910_v47 }
 0x690   : > { %9618 = vmatmul.mubr.bf16.gmra.mxu1 %v12827_v16  ;;  %9679 = vmatprep.subr.bf16.mxu0 %v9912_v24 }
 0x691   : > { %9650 = vmatpush3.bf16.msra.mxu1 %v9907_v45  ;;  %9661 = vmatprep.mubr.bf16.mxu1 %v12735_v19  ;;  %v9915_v19 = vld [vmem:[%s12988_s5 + $0x108] sm:$0xff]  }
 0x692   : > { %9651 = vmatprep.subr.bf16.mxu1 %v9909_v60 }
 0x693   : > { %9680 = vmatpush3.bf16.msra.mxu0 %v9912_v24 }
 0x694   : > { %9681 = vmatprep.subr.bf16.mxu0 %v9914_v8 }
 0x695   : > { %9652 = vmatpush3.bf16.msra.mxu1 %v9909_v60 }
 0x696   : > { %9653 = vmatprep.subr.bf16.mxu1 %v9911_v29 }
 0x697   : > { %9682 = vmatpush3.bf16.msra.mxu0 %v9914_v8 }
 0x698   : > { %9683 = vmatprep.subr.bf16.mxu0 %v9916_v53 }
 0x699   : > { %9654 = vmatpush3.bf16.msra.mxu1 %v9911_v29 }
 0x69a   : > { %9655 = vmatprep.subr.bf16.mxu1 %v9913_v2 }
 0x69b   : > { %9684 = vmatpush3.bf16.msra.mxu0 %v9916_v53 }
 0x69c   : > { %9717 = vmatprep.subr.bf16.mxu0 %v9918_v27 }
 0x69d   : > { %9656 = vmatpush3.bf16.msra.mxu1 %v9913_v2 }
 0x69e   : > { %9657 = vmatprep.subr.bf16.mxu1 %v9915_v19  ;;  %9686 = vmatmul.mubr.bf16.vlgmr.msra.gmra.mxu0 %v12815_v0 }
 0x69f   : > { %9689 = vmatprep.mubr.bf16.mxu0 %v12827_v16  ;;  %9718 = vmatpush3.bf16.msra.mxu0 %v9918_v27 }
 0x6a0   : > { %9719 = vmatprep.subr.bf16.mxu0 %v9920_v51 }
 0x6a1   : > { %9658 = vmatpush3.bf16.msra.mxu1 %v9915_v19 }
 0x6a2   : > { %9659 = vmatprep.subr.bf16.mxu1 %v9917_v18 }
 0x6a3   : > { %9720 = vmatpush3.bf16.msra.mxu0 %v9920_v51 }
 0x6a4   : > { %9721 = vmatprep.subr.bf16.mxu0 %v9922_v21 }
 0x6a5   : > { %9660 = vmatpush3.bf16.msra.mxu1 %v9917_v18 }
 0x6a6   : > { %9693 = vmatprep.subr.bf16.mxu1 %v9919_v22  ;;  %9690 = vmatmul.mubr.bf16.gmra.mxu0 %v12866_v44 }
 0x6a7   : > { %9722 = vmatpush3.bf16.msra.mxu0 %v9922_v21  ;;  %9733 = vmatprep.mubr.bf16.mxu0 %v12756_v13 }
 0x6a8   : > { %9662 = vmatmul.mubr.bf16.vlgmr.msra.gmra.mxu1 %v12756_v13  ;;  %9723 = vmatprep.subr.bf16.mxu0 %v9924_v5  ;;  %v9928_v13 = vld [vmem:[%s12988_s5 + $0x1d0] sm:$0xff]  }
 0x6a9   : > { %9665 = vmatprep.mubr.bf16.mxu1 %v12773_v52  ;;  %9694 = vmatpush3.bf16.msra.mxu1 %v9919_v22 }
 0x6aa   : > { %9695 = vmatprep.subr.bf16.mxu1 %v9921_v26 }
 0x6ab   : > { %9724 = vmatpush3.bf16.msra.mxu0 %v9924_v5 }
 0x6ac   : > { %9725 = vmatprep.subr.bf16.mxu0 %v9926_v37 }
 0x6ad   : > { %9696 = vmatpush3.bf16.msra.mxu1 %v9921_v26 }
 0x6ae   : > { %9697 = vmatprep.subr.bf16.mxu1 %v9923_v9 }
 0x6af   : > { %9726 = vmatpush3.bf16.msra.mxu0 %v9926_v37 }
 0x6b0   : > { %9666 = vmatmul.mubr.bf16.gmra.mxu1 %v6634_v32  ;;  %9727 = vmatprep.subr.bf16.mxu0 %v9928_v13 }
 0x6b1   : > { %9698 = vmatpush3.bf16.msra.mxu1 %v9923_v9  ;;  %9709 = vmatprep.mubr.bf16.mxu1 %v12729_v30  ;;  %v9931_v30 = vld [vmem:[%s12988_s5 + $0x188] sm:$0xff]  }
 0x6b2   : > { %9699 = vmatprep.subr.bf16.mxu1 %v9925_v39 }
 0x6b3   : > { %9728 = vmatpush3.bf16.msra.mxu0 %v9928_v13 }
 0x6b4   : > { %9729 = vmatprep.subr.bf16.mxu0 %v9930_v57 }
 0x6b5   : > { %9700 = vmatpush3.bf16.msra.mxu1 %v9925_v39 }
 0x6b6   : > { %9701 = vmatprep.subr.bf16.mxu1 %v9927_v35 }
 0x6b7   : > { %9730 = vmatpush3.bf16.msra.mxu0 %v9930_v57 }
 0x6b8   : > { %9731 = vmatprep.subr.bf16.mxu0 %v9932_v1 }
 0x6b9   : > { %9702 = vmatpush3.bf16.msra.mxu1 %v9927_v35 }
 0x6ba   : > { %9703 = vmatprep.subr.bf16.mxu1 %v9929_v41 }
 0x6bb   : > { %9732 = vmatpush3.bf16.msra.mxu0 %v9932_v1 }
 0x6bd   : > { %9704 = vmatpush3.bf16.msra.mxu1 %v9929_v41 }
 0x6be   : > { %9705 = vmatprep.subr.bf16.mxu1 %v9931_v30  ;;  %9734 = vmatmul.mubr.bf16.vlgmr.msra.gmra.mxu0 %v12773_v52  ;;  %v9936_v52 = vld [vmem:[%s12988_s5 + $0x228] sm:$0xff]  }
 0x6bf   : > { %9737 = vmatprep.mubr.bf16.mxu0 %v6634_v32 }
 0x6c1   : > { %9706 = vmatpush3.bf16.msra.mxu1 %v9931_v30 }
 0x6c2   : > { %9707 = vmatprep.subr.bf16.mxu1 %v9933_v14 }
 0x6c5   : > { %9708 = vmatpush3.bf16.msra.mxu1 %v9933_v14 }
 0x6c6   : > { %9741 = vmatprep.subr.bf16.mxu1 %v9934_v46  ;;  %9738 = vmatmul.mubr.bf16.gmra.mxu0 %v7084_v12 }
 0x6c8   : > { %9710 = vmatmul.mubr.bf16.vlgmr.msra.gmra.mxu1 %v12747_v17  ;;  %v9938_v17 = vld [vmem:[%s12988_s5 + $0x218] sm:$0xff]  }
 0x6c9   : > { %9713 = vmatprep.mubr.bf16.mxu1 %v12806_v56  ;;  %9742 = vmatpush3.bf16.msra.mxu1 %v9934_v46 }
 0x6ca   : > { %9743 = vmatprep.subr.bf16.mxu1 %v9935_v3 }
 0x6cd   : > { %9744 = vmatpush3.bf16.msra.mxu1 %v9935_v3 }
 0x6ce   : > { %9745 = vmatprep.subr.bf16.mxu1 %v9936_v52 }
 0x6d0   : > { %9714 = vmatmul.mubr.bf16.gmra.mxu1 %v6934_v62  ;;  %v7229_v62 = vld [vmem:[#allocation4 + $0x52] sm:$0xff] }
 0x6d1   : > { %9746 = vmatpush3.bf16.msra.mxu1 %v9936_v52  ;;  %9757 = vmatprep.mubr.bf16.mxu1 %v12815_v0  ;;  %v7234_v42 = vpack.c.bf16 %v7230_v33, %v7229_v62 }
 0x6d2   : > { %9747 = vmatprep.subr.bf16.mxu1 %v9937_v7 }
 0x6d5   : > { %9748 = vmatpush3.bf16.msra.mxu1 %v9937_v7 }
 0x6d6   : > { %9749 = vmatprep.subr.bf16.mxu1 %v9938_v17 }
 0x6d9   : > { %9750 = vmatpush3.bf16.msra.mxu1 %v9938_v17 }
 0x6da   : > { %9751 = vmatprep.subr.bf16.mxu1 %v9939_v25 }
 0x6dd   : > { %9752 = vmatpush3.bf16.msra.mxu1 %v9939_v25 }
 0x6de   : > { %9753 = vmatprep.subr.bf16.mxu1 %v9940_v4 }
 0x6e1   : > { %9754 = vmatpush3.bf16.msra.mxu1 %v9940_v4 }
 0x6e2   : > { %9755 = vmatprep.subr.bf16.mxu1 %v9941_v23 }
 0x6e5   : > { %9756 = vmatpush3.bf16.msra.mxu1 %v9941_v23 }
 0x6e8   : > { %9758 = vmatmul.mubr.bf16.vlgmr.msra.gmra.mxu1 %v12827_v16 }
 0x6e9   : > { %9761 = vmatprep.mubr.bf16.mxu1 %v12866_v44 }
 0x6f0   : > { %9762 = vmatmul.mubr.bf16.gmra.mxu1 %v7234_v42 }
 0x71c   : > { %v9591_v40 = vpop.f32.mrf.mxu0 }
 0x71e   : > { %v6292_v10 = vpop.f32.mrf.mxu0 }
 0x720   : > { %v9592_v43 = vpop.f32.mrf.mxu0 }
 0x722   : > { %v6295_v63 = vpop.f32.mrf.mxu0 }
 0x728   : > { %v9567_v50 = vpop.f32.mrf.mxu1 }
 0x729   : > { %v6301_v54 = vadd.f32 %v9591_v40, %v9567_v50 }
 0x72a   : > { %v6179_v28 = vpop.f32.mrf.mxu1 }
 0x72b   : > { %v6293_v12 = vadd.f32 %v6292_v10, %v6179_v28 }
 0x72c   : > { %v9568_v15 = vpop.f32.mrf.mxu1  ;;  %v9595_v55 = vpop.f32.mrf.mxu0 }
 0x72d   : > { %v6304_v7 = vadd.f32 %v9592_v43, %v9568_v15 }
 0x72e   : > { %v6182_v36 = vpop.f32.mrf.mxu1  ;;  %v6308_v0 = vpop.f32.mrf.mxu0 }
 0x72f   : > { %v6296_v4 = vadd.f32 %v6295_v63, %v6182_v36 }
 0x730   : > { %v9596_v45 = vpop.f32.mrf.mxu0 }
 0x732   : > { %v6311_v49 = vpop.f32.mrf.mxu0 }
 0x738   : > { %v9571_v11 = vpop.f32.mrf.mxu1 }
 0x739   : > { %v6317_v33 = vadd.f32 %v9595_v55, %v9571_v11 }
 0x73a   : > { %v6195_v56 = vpop.f32.mrf.mxu1 }
 0x73c   : > { %v12942_v48 = vpop.f32.mrf.mxu1 }
 0x73d   : > { %v9639_v16 = vpop.f32.mrf.mxu0  ;;  %v6320_v28 = vadd.f32 %v9596_v45, %v12942_v48 }
 0x73e   : > { %v12944_v59 = vpop.f32.mrf.mxu1 }
 0x73f   : > { %13139 = vst [vmem:[#allocation17_spill] sm:$0xff] %v12944_v59  ;;  %v6584_v8 = vpop.f32.mrf.mxu0 }
 0x741   : > { %v9640_v53 = vpop.f32.mrf.mxu0 }
 0x743   : > { %v6587_v27 = vpop.f32.mrf.mxu0 }
 0x745   : > { %v9643_v51 = vpop.f32.mrf.mxu0 }
 0x746   : > { %v13145_v36 = vld [vmem:[#allocation17_spill] sm:$0xff] }
 0x747   : > { %v6600_v21 = vpop.f32.mrf.mxu0  ;;  %v6312_v63 = vadd.f32 %v6311_v49, %v13145_v36 }
 0x748   : > { %v9615_v20 = vpop.f32.mrf.mxu1 }
 0x749   : > { %v9644_v31 = vpop.f32.mrf.mxu0  ;;  %v6467_v3 = vadd.f32 %v9615_v20, %v6301_v54 }
 0x74a   : > { %v6434_v47 = vpop.f32.mrf.mxu1 }
 0x74b   : > { %v12946_v44 = vpop.f32.mrf.mxu0  ;;  %v6465_v17 = vadd.f32 %v6434_v47, %v6293_v12  ;;  %v6617_v62 = vadd.f32 %v9639_v16, %v6467_v3 }
 0x74c   : > { %v9616_v58 = vpop.f32.mrf.mxu1  ;;  %13140 = vst [vmem:[#allocation30_spill] sm:$0xff] %v12946_v44 }
 0x74d   : > { %v6468_v23 = vadd.f32 %v9616_v58, %v6304_v7  ;;  %v6615_v44 = vadd.f32 %v6584_v8, %v6465_v17 }
 0x74e   : > { %v6437_v24 = vpop.f32.mrf.mxu1 }
 0x750   : > { %v9619_v60 = vpop.f32.mrf.mxu1 }
 0x751   : > { %v6471_v59 = vadd.f32 %v9619_v60, %v6317_v33 }
 0x752   : > { %v6450_v29 = vpop.f32.mrf.mxu1 }
 0x753   : > { %v6621_v11 = vadd.f32 %v9643_v51, %v6471_v59 }
 0x754   : > { %v9620_v2 = vpop.f32.mrf.mxu1 }
 0x755   : > { %v6472_v58 = vadd.f32 %v9620_v2, %v6320_v28  ;;  %v13146_v2 = vld [vmem:[#allocation30_spill] sm:$0xff] }
 0x756   : > { %v6453_v19 = vpop.f32.mrf.mxu1 }
 0x75e   : > { %v9687_v26 = vpop.f32.mrf.mxu0 }
 0x760   : > { %v6884_v9 = vpop.f32.mrf.mxu0 }
 0x762   : > { %v9688_v38 = vpop.f32.mrf.mxu0 }
 0x764   : > { %v6887_v32 = vpop.f32.mrf.mxu0 }
 0x766   : > { %v9691_v57 = vpop.f32.mrf.mxu0 }
 0x768   : > { %v9663_v18 = vpop.f32.mrf.mxu1  ;;  %v12950_v1 = vpop.f32.mrf.mxu0 }
 0x769   : > { %13142 = vst [vmem:[#allocation7_spill] sm:$0xff] %v12950_v1  ;;  %v6466_v1 = vadd.f32 %v6437_v24, %v6296_v4 }
 0x76a   : > { %v6734_v6 = vpop.f32.mrf.mxu1  ;;  %v12952_v30 = vpop.f32.mrf.mxu0 }
 0x76b   : > { %13143 = vst [vmem:[#allocation20_spill] sm:$0xff] %v12952_v30  ;;  %v6309_v30 = vadd.f32 %v6308_v0, %v6195_v56  ;;  %v6765_v40 = vadd.f32 %v6734_v6, %v6615_v44  ;;  %v6616_v43 = vadd.f32 %v6587_v27, %v6466_v1  ;;  %v6470_v56 = vadd.f32 %v6453_v19, %v6312_v63  ;;  %v8051_v19 = vld [vmem:[%s12989_s6] ss:$0 sm:$0xff] }
 0x76c   : > { %v9664_v22 = vpop.f32.mrf.mxu1  ;;  %v12954_v61 = vpop.f32.mrf.mxu0 }
 0x76d   : > { %13144 = vst [vmem:[#allocation10_spill] sm:$0xff] %v12954_v61  ;;  %v6618_v61 = vadd.f32 %v9640_v53, %v6468_v23  ;;  %v6469_v10 = vadd.f32 %v6450_v29, %v6309_v30  ;;  %v6915_v8 = vadd.f32 %v6884_v9, %v6765_v40  ;;  %v6622_v29 = vadd.f32 %v9644_v31, %v6472_v58 }
 0x76e   : > { %v6737_v5 = vpop.f32.mrf.mxu1  ;;  %v6620_v59 = vadd.f32 %v13146_v2, %v6470_v56 }
 0x76f   : > { %v6768_v15 = vadd.f32 %v9664_v22, %v6618_v61  ;;  %v6766_v24 = vadd.f32 %v6737_v5, %v6616_v43  ;;  %v6619_v60 = vadd.f32 %v6600_v21, %v6469_v10 }
 0x770   : > { %v9667_v37 = vpop.f32.mrf.mxu1 }
 0x771   : > { %v6771_v0 = vadd.f32 %v9667_v37, %v6621_v11  ;;  %v6918_v48 = vadd.f32 %v9688_v38, %v6768_v15  ;;  %v6916_v22 = vadd.f32 %v6887_v32, %v6766_v24 }
 0x772   : > { %v6750_v34 = vpop.f32.mrf.mxu1 }
 0x773   : > { %v6769_v45 = vadd.f32 %v6750_v34, %v6619_v60  ;;  %v6921_v5 = vadd.f32 %v9691_v57, %v6771_v0 }
 0x774   : > { %v9668_v13 = vpop.f32.mrf.mxu1  ;;  %v13150_v7 = vld [vmem:[#allocation10_spill] sm:$0xff] }
 0x775   : > { %v6772_v49 = vadd.f32 %v9668_v13, %v6622_v29 }
 0x776   : > { %v12948_v39 = vpop.f32.mrf.mxu1 }
 0x777   : > { %13141 = vst [vmem:[#allocation9_spill] sm:$0xff] %v12948_v39  ;;  %v6767_v39 = vadd.f32 %v9663_v18, %v6617_v62 }
 0x779   : > { %v6917_v47 = vadd.f32 %v9687_v26, %v6767_v39  ;;  %v13148_v39 = vld [vmem:[#allocation7_spill] sm:$0xff] }
 0x77a   : > { %v6919_v32 = vadd.f32 %v13148_v39, %v6769_v45 }
 0x77e   : > { %v9735_v52 = vpop.f32.mrf.mxu0  ;;  %v13147_v34 = vld [vmem:[#allocation9_spill] sm:$0xff] }
 0x77f   : > { %v6770_v31 = vadd.f32 %v13147_v34, %v6620_v59 }
 0x780   : > { %v7184_v42 = vpop.f32.mrf.mxu0 }
 0x781   : > { %v6920_v17 = vadd.f32 %v13150_v7, %v6770_v31 }
 0x782   : > { %v9736_v20 = vpop.f32.mrf.mxu0 }
 0x784   : > { %v7187_v18 = vpop.f32.mrf.mxu0 }
 0x786   : > { %v9739_v51 = vpop.f32.mrf.mxu0 }
 0x788   : > { %v9711_v35 = vpop.f32.mrf.mxu1  ;;  %v7200_v30 = vpop.f32.mrf.mxu0 }
 0x789   : > { %v7067_v16 = vadd.f32 %v9711_v35, %v6917_v47 }
 0x78a   : > { %v7034_v41 = vpop.f32.mrf.mxu1 }
 0x78b   : > { %v7065_v53 = vadd.f32 %v7034_v41, %v6915_v8  ;;  %v7217_v44 = vadd.f32 %v9735_v52, %v7067_v16 }
 0x78c   : > { %v9712_v14 = vpop.f32.mrf.mxu1 }
 0x78d   : > { %v7068_v27 = vadd.f32 %v9712_v14, %v6918_v48  ;;  %v7215_v9 = vadd.f32 %v7184_v42, %v7065_v53  ;;  %v13149_v14 = vld [vmem:[#allocation20_spill] sm:$0xff] }
 0x78e   : > { %v7037_v46 = vpop.f32.mrf.mxu1  ;;  %v6922_v54 = vadd.f32 %v13149_v14, %v6772_v49 }
 0x78f   : > { %v7066_v21 = vadd.f32 %v7037_v46, %v6916_v22  ;;  %v7218_v41 = vadd.f32 %v9736_v20, %v7068_v27 }
 0x790   : > { %v9715_v25 = vpop.f32.mrf.mxu1 }
 0x791   : > { %v7071_v38 = vadd.f32 %v9715_v25, %v6921_v5  ;;  %v7216_v52 = vadd.f32 %v7187_v18, %v7066_v21 }
 0x792   : > { %v7050_v50 = vpop.f32.mrf.mxu1 }
 0x793   : > { %v7069_v57 = vadd.f32 %v7050_v50, %v6919_v32  ;;  %v7221_v4 = vadd.f32 %v9739_v51, %v7071_v38  ;;  %v9740_v50 = vpop.f32.mrf.mxu0 }
 0x794   : > { %v9716_v55 = vpop.f32.mrf.mxu1 }
 0x795   : > { %v7072_v23 = vadd.f32 %v9716_v55, %v6922_v54  ;;  %v7219_v28 = vadd.f32 %v7200_v30, %v7069_v57  ;;  %v7203_v55 = vpop.f32.mrf.mxu0 }
 0x796   : > { %v7053_v6 = vpop.f32.mrf.mxu1 }
 0x797   : > { %v7070_v10 = vadd.f32 %v7053_v6, %v6920_v17  ;;  %v7222_v11 = vadd.f32 %v9740_v50, %v7072_v23 }
 0x799   : > { %v7220_v0 = vadd.f32 %v7203_v55, %v7070_v10 }
 0x7a8   : > { %v9759_v26 = vpop.f32.mrf.mxu1 }
 0x7a9   : > { %v7367_v37 = vadd.f32 %v9759_v26, %v7217_v44 }
 0x7aa   : > { %v7334_v35 = vpop.f32.mrf.mxu1 }
 0x7ab   : > { %v7382_v13 = vadd.f32 %v8051_v19, %v7367_v37  ;;  %v7365_v1 = vadd.f32 %v7334_v35, %v7215_v9 }
 0x7ac   : > { %v9760_v61 = vpop.f32.mrf.mxu1 }
 0x7ad   : > { %v7390_v46 = vmax.f32 %v7382_v13, 0.0  ;;  %v7380_v12 = vadd.f32 %v8051_v19, %v7365_v1  ;;  %v7368_v3 = vadd.f32 %v9760_v61, %v7218_v41 }
 0x7ae   : > { %v7337_v25 = vpop.f32.mrf.mxu1 }
 0x7af   : > { %7398 = vst [vmem:[%s12969_s13 + $0x10] sm:$0xff] %v7390_v46  ;;  %v7388_v62 = vmax.f32 %v7380_v12, 0.0  ;;  %v7383_v33 = vadd.f32 %v8051_v19, %v7368_v3  ;;  %v7366_v42 = vadd.f32 %v7337_v25, %v7216_v52 }
 0x7b0   : > { %v9763_v40 = vpop.f32.mrf.mxu1 }
 0x7b1   : > { %7396 = vst [vmem:[%s12969_s13] sm:$0xff] %v7388_v62  ;;  %v7391_v20 = vmax.f32 %v7383_v33, 0.0  ;;  %v7381_v15 = vadd.f32 %v8051_v19, %v7366_v42  ;;  %v7371_v43 = vadd.f32 %v9763_v40, %v7221_v4 }
 0x7b2   : > { %v7350_v47 = vpop.f32.mrf.mxu1 }
 0x7b3   : > { %7399 = vst [vmem:[%s12969_s13 + $0x18] sm:$0xff] %v7391_v20  ;;  %v7389_v36 = vmax.f32 %v7381_v15, 0.0  ;;  %v7386_v63 = vadd.f32 %v8051_v19, %v7371_v43  ;;  %v7369_v58 = vadd.f32 %v7350_v47, %v7219_v28 }
 0x7b4   : > { %v9764_v24 = vpop.f32.mrf.mxu1 }
 0x7b5   : > { %7397 = vst [vmem:[%s12969_s13 + $0x8] sm:$0xff] %v7389_v36  ;;  %v7394_v16 = vmax.f32 %v7386_v63, 0.0  ;;  %v7384_v8 = vadd.f32 %v8051_v19, %v7369_v58  ;;  %v7372_v56 = vadd.f32 %v9764_v24, %v7222_v11 }
 0x7b6   : > { %v7353_v60 = vpop.f32.mrf.mxu1 }
 0x7b7   : > { %7402 = vst [vmem:[%s12969_s13 + $0x30] sm:$0xff] %v7394_v16  ;;  %v7392_v18 = vmax.f32 %v7384_v8, 0.0  ;;  %v7387_v53 = vadd.f32 %v8051_v19, %v7372_v56  ;;  %v7370_v48 = vadd.f32 %v7353_v60, %v7220_v0 }
 0x7b9   : > { %7400 = vst [vmem:[%s12969_s13 + $0x20] sm:$0xff] %v7392_v18  ;;  %v7395_v45 = vmax.f32 %v7387_v53, 0.0  ;;  %v7385_v29 = vadd.f32 %v8051_v19, %v7370_v48 }
 0x7bb   : > { %7403 = vst [vmem:[%s12969_s13 + $0x38] sm:$0xff] %v7395_v45  ;;  %v7393_v6 = vmax.f32 %v7385_v29, 0.0 }
 0x7bd   : > { %7401 = vst [vmem:[%s12969_s13 + $0x28] sm:$0xff] %v7393_v6 }
 0x7be PF: > { %s18_s27 = sadd.s32 1, %s9948_s27  }
 0x7bf   : > { %p15_p4 = scmp.ge.s32.totalorder %s18_s27, 4  }
 0x7c1   :  { %17 = sbr.rel (!%p15_p4) target bundleno = 1 (0x1), region = 106 }

</bundles_post_ra>
